<compile_context>
chip_gen: v5e
topology: v5e:2x2
jax: 0.10.0
libtpu: 0.0.40
codegen_flags: <defaults>
</compile_context>

<pallas_src>
import functools
import math

import numpy as np
import jax
import jax.numpy as jnp
from jax.experimental import pallas as pl
from jax.experimental.pallas import tpu as pltpu


# -----------------------------------------------------------------------------
# Fused DANet kernel: synthetic-backbone 1x1 -> both DANetHead branches
# (conv3x3+BN+ReLU, position / channel attention, conv3x3+BN+ReLU) -> head 1x1
# -> bilinear upsample.  One batch element per grid step.
# -----------------------------------------------------------------------------
def _danet_kernel(xp_ref, alphas_ref,
                  bb_w_ref, bb_b_ref, masks_ref,
                  pa_c1w_ref, pa_c1b_ref,
                  pa_qkvw_ref, pa_qkvb_ref,
                  pa_c2w_ref, pa_c2b_ref,
                  ca_c1w_ref, ca_c1b_ref,
                  ca_c2w_ref, ca_c2b_ref,
                  head_w_ref, head_b_ref,
                  e1_ref, e2_ref,
                  o_ref, pad_ref, stk_ref,
                  *, h, w, att_mid, kv_t):
    f32 = jnp.float32
    bf16 = jnp.bfloat16
    hw = h * w
    lo = w + 1                      # left zero-pad width of the padded row buffer
    a8 = ((att_mid + 7) // 8) * 8   # 8-aligned q/k row groups

    # Zero the padded scratch once (grid step 0).  Only the interior columns
    # lo:lo+hw are ever written afterwards, so the pad columns stay zero for
    # every conv on every grid step.
    @pl.when(pl.program_id(0) == 0)
    def _():
        pad_ref[...] = jnp.zeros(pad_ref.shape, f32)

    def conv3x3_bn_relu(x, wstk_ref, shift_ref):
        # x: (cin, hw) f32.  3x3 conv (pad=1, no bias) as ONE stacked matmul;
        # eval-BN scale is folded into wstk; '+shift' and ReLU done here.
        cin = x.shape[0]
        pad_ref[0:cin, lo:lo + hw] = x
        mi = 0
        k = 0
        for oy in (-1, 0, 1):
            for ox in (-1, 0, 1):
                off = oy * w + ox
                sl = pad_ref[0:cin, lo + off:lo + off + hw]
                if ox != 0:          # column-wrap masks; row edges come from the zero pad
                    sl = sl * masks_ref[mi]
                    mi += 1
                stk_ref[k * cin:(k + 1) * cin, :] = sl.astype(bf16)
                k += 1
        y = jnp.dot(wstk_ref[...], stk_ref[0:9 * cin, :],
                    preferred_element_type=f32)
        return jnp.maximum(y + shift_ref[...], 0.0)

    def softmax_lastdim(e):
        e = e - jnp.max(e, axis=-1, keepdims=True)
        p = jnp.exp(e)
        return p * pl.reciprocal(jnp.sum(p, axis=-1, keepdims=True), approx=True)

    # synthetic backbone 1x1 conv (stand-in for the external feature extractor)
    feat = (jnp.dot(bb_w_ref[...], xp_ref[0].astype(bf16),
                    preferred_element_type=f32) + bb_b_ref[...])        # (bb_out, hw)

    # ---- position-attention branch ------------------------------------------
    x1 = conv3x3_bn_relu(feat, pa_c1w_ref, pa_c1b_ref)                  # (mid, hw)
    mid = x1.shape[0]
    qkv = (jnp.dot(pa_qkvw_ref[...], x1.astype(bf16),
                   preferred_element_type=f32) + pa_qkvb_ref[...])      # (2*a8+mid, hw)
    # q/k use the full zero-padded 8-row groups (padded rows have zero weights
    # and biases -> contribute nothing, but keep the energy matmul K 8-aligned).
    q = qkv[0:a8].astype(bf16)                                          # (a8, hw)
    k_ = qkv[a8:2 * a8].astype(bf16)                                    # (a8, hw)
    v = qkv[2 * a8:].astype(bf16)                                       # (mid, hw)

    # Flash-style online softmax over kv tiles (key-major layout -> no
    # transposes anywhere; kv_t == hw for small maps => single chunk).
    n_kv = hw // kv_t
    m_i = jnp.full((1, hw), -1e30, f32)
    l_i = jnp.zeros((1, hw), f32)
    acc = jnp.zeros((mid, hw), f32)
    for c in range(n_kv):
        kc = k_[:, c * kv_t:(c + 1) * kv_t]                             # (a8, kv_t)
        vc = v[:, c * kv_t:(c + 1) * kv_t]                              # (mid, kv_t)
        # s[j, i] = sum_c kc[c, j] * q[c, i]  (== energy[i, j])
        s = jax.lax.dot_general(kc, q, (((0,), (0,)), ((), ())),
                                preferred_element_type=f32)              # (kv_t, hw)
        m_new = jnp.maximum(m_i, jnp.max(s, axis=0, keepdims=True))
        a = jnp.exp(m_i - m_new)
        p = jnp.exp(s - m_new)
        l_i = a * l_i + jnp.sum(p, axis=0, keepdims=True)
        acc = acc * a + jnp.dot(vc, p.astype(bf16), preferred_element_type=f32)
        m_i = m_new
    ya = acc * pl.reciprocal(l_i, approx=True)                           # (mid, hw)
    xa = alphas_ref[0] * ya + x1
    pa_y = conv3x3_bn_relu(xa, pa_c2w_ref, pa_c2b_ref)

    # ---- channel-attention branch -------------------------------------------
    x1c = conv3x3_bn_relu(feat, ca_c1w_ref, ca_c1b_ref)                  # (mid, hw)
    x1c_b = x1c.astype(bf16)
    energy_c = jax.lax.dot_general(x1c_b, x1c_b, (((1,), (1,)), ((), ())),
                                   preferred_element_type=f32)           # (mid, mid)
    energy_new = jnp.max(energy_c, axis=-1, keepdims=True) - energy_c
    wgt_c = softmax_lastdim(energy_new)
    yc = jnp.dot(wgt_c.astype(bf16), x1c_b, preferred_element_type=f32)  # (mid, hw)
    xac = alphas_ref[1] * yc + x1c
    ca_y = conv3x3_bn_relu(xac, ca_c2w_ref, ca_c2b_ref)

    # ---- head 1x1 conv + fused bilinear upsample (Dropout == identity) -------
    # (per-branch conv3/dropout outputs are dead when aux=False -> skipped)
    logits = (jnp.dot(head_w_ref[...], (pa_y + ca_y).astype(bf16),
                      preferred_element_type=f32) + head_b_ref[...])     # (ncls, hw)
    up1 = jnp.dot(logits.astype(bf16), e1_ref[...],
                  preferred_element_type=f32)                            # (ncls, h*W)
    o_ref[0] = jnp.dot(up1.astype(bf16), e2_ref[...],
                       preferred_element_type=f32)                       # (ncls, H*W)


# -----------------------------------------------------------------------------
# Host-side constant builders (layout glue only)
# -----------------------------------------------------------------------------
def _interp_matrix(out_size, in_size):
    # 1-D bilinear interpolation matrix, align_corners=True semantics.
    m = np.zeros((out_size, in_size), np.float32)
    if in_size == 1 or out_size == 1:
        m[:, 0] = 1.0
        return m
    for i in range(out_size):
        s = i * (in_size - 1) / (out_size - 1)
        i0 = min(int(math.floor(s)), in_size - 2)
        frac = s - i0
        m[i, i0] += 1.0 - frac
        m[i, i0 + 1] += frac
    return m


def _conv_masks(h, w):
    # Column-wrap masks for the six ox=+-1 taps only (row edges are handled by
    # the zero-padded row buffer).  masks[m, 0, i*w+j] = 1 iff (i+oy, j+ox) in.
    out = []
    for oy in (-1, 0, 1):
        for ox in (-1, 0, 1):
            if ox == 0:
                continue
            m = np.zeros((1, h * w), np.float32)
            for i in range(h):
                for j in range(w):
                    if 0 <= i + oy < h and 0 <= j + ox < w:
                        m[0, i * w + j] = 1.0
            out.append(m)
    return jnp.asarray(np.stack(out))            # (6, 1, hw)


def _stack_conv_w(wt, bn_scale):
    # torch (Cout, Cin, 3, 3) -> (Cout, 9*Cin): K is tap-major / Cin-minor so it
    # matches the in-kernel stacked operand; eval-BN scale folded in; bf16.
    cout, cin = wt.shape[0], wt.shape[1]
    w9 = jnp.transpose(wt, (0, 2, 3, 1)).reshape(cout, 9 * cin)
    return (w9 * bn_scale.reshape(cout, 1)).astype(jnp.bfloat16)


def _kv_tile(hw, cap=512):
    if hw <= cap:
        return hw
    for t in range(cap, 0, -1):
        if hw % t == 0:
            return t
    return hw


def _vmem_limit_bytes(hw, hW, HW, bb_out, mid, nclass, cin, a8, kv_t, w):
    f32, bf16 = 4, 2
    scratch = bb_out * (hw + 2 * (w + 1)) * f32 + 9 * bb_out * hw * bf16
    weights = ((bb_out * cin + nclass * mid + (2 * a8 + mid) * mid) * bf16
               + 9 * mid * (bb_out + mid) * 2 * bf16
               + (hw * hW + hW * HW) * bf16
               + 6 * hw * f32 + 3 * (bb_out + mid + nclass) * f32)
    io = cin * hw * f32 + nclass * HW * f32
    acts = f32 * (bb_out * hw + 10 * mid * hw + (2 * a8 + mid) * hw
                  + 3 * kv_t * hw + nclass * (hw + hW + HW))
    est = scratch + 2 * weights + 2 * io + 2 * acts
    return int(min(56 * 2 ** 20, max(32 * 2 ** 20, 2 * est)))


# -----------------------------------------------------------------------------
# Parameters (deterministic, synthetic; mirrors nn.Module __init__ shapes)
# -----------------------------------------------------------------------------
def _kaiming_uniform(key, shape):
    fan_in = int(np.prod(shape[1:]))
    bound = math.sqrt(6.0 / fan_in)
    return jax.random.uniform(key, shape, jnp.float32, -bound, bound)


def init_params(key, in_ch=3, bb_out=64, num_classes=4):
    mid = bb_out // 4                 # DANetHead mid_channels
    att_mid = max(mid // 8, 1)        # PosAttBlock reduction=8
    ks = jax.random.split(key, 10)
    bn_scale = lambda c: jnp.full((c,), 1.0 / math.sqrt(1.0 + 1e-5), jnp.float32)
    bn_shift = lambda c: jnp.zeros((c,), jnp.float32)

    def branch(keys, pose_att):
        p = {
            'conv1_w': _kaiming_uniform(keys[0], (mid, bb_out, 3, 3)),
            'conv1_bn_scale': bn_scale(mid), 'conv1_bn_shift': bn_shift(mid),
            'conv2_w': _kaiming_uniform(keys[1], (mid, mid, 3, 3)),
            'conv2_bn_scale': bn_scale(mid), 'conv2_bn_shift': bn_shift(mid),
            'alpha': jnp.ones((1,), jnp.float32),   # Parameter(torch.Tensor((1,)))
        }
        if pose_att:
            p['q_w'] = _kaiming_uniform(keys[2], (att_mid, mid))
            p['q_b'] = jnp.zeros((att_mid,), jnp.float32)
            p['k_w'] = _kaiming_uniform(keys[3], (att_mid, mid))
            p['k_b'] = jnp.zeros((att_mid,), jnp.float32)
            p['v_w'] = _kaiming_uniform(keys[4], (mid, mid))
            p['v_b'] = jnp.zeros((mid,), jnp.float32)
        return p

    return {
        # synthetic backbone: avg-pool + 1x1 conv (in_ch -> bb_out)
        'bb_w': _kaiming_uniform(ks[0], (bb_out, in_ch)),
        'bb_b': jnp.zeros((bb_out,), jnp.float32),
        'pa': branch(ks[1:6], True),
        'ca': branch(ks[6:8], False),
        'head_w': _kaiming_uniform(ks[8], (num_classes, mid)),
        'head_b': jnp.zeros((num_classes,), jnp.float32),
    }


# -----------------------------------------------------------------------------
# DANet forward (eval mode)
# -----------------------------------------------------------------------------
def danet_forward(x_img, params, num_classes=4, pool=4):
    B, Cin, H, W = x_img.shape
    h, w = H // pool, W // pool
    hw = h * w
    bb_out = params['bb_w'].shape[0]
    mid = bb_out // 4
    att_mid = max(mid // 8, 1)
    a8 = ((att_mid + 7) // 8) * 8
    nclass = params['head_w'].shape[0]
    assert nclass == num_classes
    pa, ca = params['pa'], params['ca']
    kv_t = _kv_tile(hw)

    # --- synthetic backbone pooling (layout glue; stands in for the external
    #     nn.Sequential feature extractor that DANet receives as `backbone`) ---
    xp = x_img.reshape(B, Cin, h, pool, w, pool).mean(axis=(3, 5)).reshape(B, Cin, hw)

    def col(b):
        return jnp.asarray(b, jnp.float32).reshape(-1, 1)

    alphas = jnp.concatenate([pa['alpha'], ca['alpha']]).astype(jnp.float32)  # -> SMEM
    masks = _conv_masks(h, w)

    # q/k/v 1x1 convs fused into one stacked, 8-row-aligned matmul
    rows = 2 * a8 + mid
    qkv_w = jnp.zeros((rows, mid), jnp.float32)
    qkv_w = qkv_w.at[0:att_mid].set(pa['q_w'])
    qkv_w = qkv_w.at[a8:a8 + att_mid].set(pa['k_w'])
    qkv_w = qkv_w.at[2 * a8:].set(pa['v_w'])
    qkv_b = jnp.zeros((rows, 1), jnp.float32)
    qkv_b = qkv_b.at[0:att_mid].set(col(pa['q_b']))
    qkv_b = qkv_b.at[a8:a8 + att_mid].set(col(pa['k_b']))
    qkv_b = qkv_b.at[2 * a8:].set(col(pa['v_b']))

    # kron-factored separable bilinear (align_corners=True) upsample operands
    ah = _interp_matrix(H, h)                                   # (H, h)
    aw = _interp_matrix(W, w)                                   # (W, w)
    e1 = jnp.asarray(np.kron(np.eye(h, dtype=np.float32), aw.T), jnp.bfloat16)  # (hw, h*W)
    e2 = jnp.asarray(np.kron(ah.T, np.eye(W, dtype=np.float32)), jnp.bfloat16)  # (h*W, H*W)

    shared = [
        jnp.asarray(params['bb_w'], jnp.bfloat16), col(params['bb_b']), masks,
        _stack_conv_w(pa['conv1_w'], pa['conv1_bn_scale']), col(pa['conv1_bn_shift']),
        qkv_w.astype(jnp.bfloat16), qkv_b,
        _stack_conv_w(pa['conv2_w'], pa['conv2_bn_scale']), col(pa['conv2_bn_shift']),
        _stack_conv_w(ca['conv1_w'], ca['conv1_bn_scale']), col(ca['conv1_bn_shift']),
        _stack_conv_w(ca['conv2_w'], ca['conv2_bn_scale']), col(ca['conv2_bn_shift']),
        jnp.asarray(params['head_w'], jnp.bfloat16), col(params['head_b']),
        e1, e2,
    ]

    def shared_spec(a):
        nd = a.ndim
        return pl.BlockSpec(tuple(a.shape), lambda b, _nd=nd: (0,) * _nd)

    vmem_limit = _vmem_limit_bytes(hw, h * W, H * W, bb_out, mid, nclass,
                                   Cin, a8, kv_t, w)

    out_flat = pl.pallas_call(
        functools.partial(_danet_kernel, h=h, w=w, att_mid=att_mid, kv_t=kv_t),
        out_shape=jax.ShapeDtypeStruct((B, nclass, H * W), jnp.float32),
        grid=(B,),
        in_specs=([pl.BlockSpec((1, Cin, hw), lambda b: (b, 0, 0)),
                   pl.BlockSpec(memory_space=pltpu.MemorySpace.SMEM)]
                  + [shared_spec(a) for a in shared]),
        out_specs=pl.BlockSpec((1, nclass, H * W), lambda b: (b, 0, 0)),
        scratch_shapes=[pltpu.VMEM((bb_out, hw + 2 * (w + 1)), jnp.float32),
                        pltpu.VMEM((9 * bb_out, hw), jnp.bfloat16)],
        compiler_params=pltpu.CompilerParams(
            dimension_semantics=("parallel",),
            vmem_limit_bytes=vmem_limit),
    )(xp, alphas, *shared)

    return out_flat.reshape(B, nclass, H, W)


# -----------------------------------------------------------------------------
if __name__ == "__main__":
    # small demo shapes; in_size % 8 == 0 as the module asserts
    B, IN_CH, H, W = 2, 3, 32, 32
    NUM_CLASSES = 4

    x = jax.random.normal(jax.random.PRNGKey(0), (B, IN_CH, H, W), jnp.float32)
    params = init_params(jax.random.PRNGKey(42), in_ch=IN_CH,
                         bb_out=64, num_classes=NUM_CLASSES)

    out = danet_forward(x, params, num_classes=NUM_CLASSES, pool=4)
    out = jax.block_until_ready(out)
    assert out.shape == (B, NUM_CLASSES, H, W), out.shape
    assert bool(jnp.all(jnp.isfinite(out)))
    print("KERNEL_OK")
</pallas_src>

<mosaic_0001>
module attributes {stable_mosaic.version = 11 : i64} {
  func.func @_danet_kernel(%arg0: i32, %arg1: memref<1x3x64xf32, #tpu.memory_space<vmem>>, %arg2: memref<2xf32, #tpu.memory_space<smem>>, %arg3: memref<64x3xbf16, #tpu.memory_space<vmem>>, %arg4: memref<64x1xf32, #tpu.memory_space<vmem>>, %arg5: memref<6x1x64xf32, #tpu.memory_space<vmem>>, %arg6: memref<16x576xbf16, #tpu.memory_space<vmem>>, %arg7: memref<16x1xf32, #tpu.memory_space<vmem>>, %arg8: memref<32x16xbf16, #tpu.memory_space<vmem>>, %arg9: memref<32x1xf32, #tpu.memory_space<vmem>>, %arg10: memref<16x144xbf16, #tpu.memory_space<vmem>>, %arg11: memref<16x1xf32, #tpu.memory_space<vmem>>, %arg12: memref<16x576xbf16, #tpu.memory_space<vmem>>, %arg13: memref<16x1xf32, #tpu.memory_space<vmem>>, %arg14: memref<16x144xbf16, #tpu.memory_space<vmem>>, %arg15: memref<16x1xf32, #tpu.memory_space<vmem>>, %arg16: memref<4x16xbf16, #tpu.memory_space<vmem>>, %arg17: memref<4x1xf32, #tpu.memory_space<vmem>>, %arg18: memref<64x256xbf16, #tpu.memory_space<vmem>>, %arg19: memref<256x1024xbf16, #tpu.memory_space<vmem>>, %arg20: memref<1x4x1024xf32, #tpu.memory_space<vmem>>, %arg21: memref<64x82xf32, #tpu.memory_space<vmem>>, %arg22: memref<576x64xbf16, #tpu.memory_space<vmem>>) attributes {dimension_semantics = [#tpu.dimension_semantics<parallel>], iteration_bounds = array<i64: 2>, scalar_prefetch = 0 : i64, scratch_operands = 2 : i64, tpu.core_type = #tpu.core_type<tc>, window_params = [{transform_indices = @transform_0, window_bounds = array<i64: 1, 3, 64>}, {transform_indices = @transform_1, window_bounds = array<i64: 2>}, {pipeline_mode = #tpu.pipeline_mode<synchronous>, transform_indices = @transform_2, window_bounds = array<i64: 64, 3>}, {pipeline_mode = #tpu.pipeline_mode<synchronous>, transform_indices = @transform_3, window_bounds = array<i64: 64, 1>}, {pipeline_mode = #tpu.pipeline_mode<synchronous>, transform_indices = @transform_4, window_bounds = array<i64: 6, 1, 64>}, {pipeline_mode = #tpu.pipeline_mode<synchronous>, transform_indices = @transform_5, window_bounds = array<i64: 16, 576>}, {pipeline_mode = #tpu.pipeline_mode<synchronous>, transform_indices = @transform_6, window_bounds = array<i64: 16, 1>}, {pipeline_mode = #tpu.pipeline_mode<synchronous>, transform_indices = @transform_7, window_bounds = array<i64: 32, 16>}, {pipeline_mode = #tpu.pipeline_mode<synchronous>, transform_indices = @transform_8, window_bounds = array<i64: 32, 1>}, {pipeline_mode = #tpu.pipeline_mode<synchronous>, transform_indices = @transform_9, window_bounds = array<i64: 16, 144>}, {pipeline_mode = #tpu.pipeline_mode<synchronous>, transform_indices = @transform_10, window_bounds = array<i64: 16, 1>}, {pipeline_mode = #tpu.pipeline_mode<synchronous>, transform_indices = @transform_11, window_bounds = array<i64: 16, 576>}, {pipeline_mode = #tpu.pipeline_mode<synchronous>, transform_indices = @transform_12, window_bounds = array<i64: 16, 1>}, {pipeline_mode = #tpu.pipeline_mode<synchronous>, transform_indices = @transform_13, window_bounds = array<i64: 16, 144>}, {pipeline_mode = #tpu.pipeline_mode<synchronous>, transform_indices = @transform_14, window_bounds = array<i64: 16, 1>}, {pipeline_mode = #tpu.pipeline_mode<synchronous>, transform_indices = @transform_15, window_bounds = array<i64: 4, 16>}, {pipeline_mode = #tpu.pipeline_mode<synchronous>, transform_indices = @transform_16, window_bounds = array<i64: 4, 1>}, {pipeline_mode = #tpu.pipeline_mode<synchronous>, transform_indices = @transform_17, window_bounds = array<i64: 64, 256>}, {pipeline_mode = #tpu.pipeline_mode<synchronous>, transform_indices = @transform_18, window_bounds = array<i64: 256, 1024>}, {transform_indices = @transform_19, window_bounds = array<i64: 1, 4, 1024>}]} {
    %c0_i32 = arith.constant 0 : i32
    %0 = arith.cmpi eq, %arg0, %c0_i32 : i32
    %1 = arith.extui %0 : i1 to i32
    %c0_i32_0 = arith.constant 0 : i32
    %2 = arith.cmpi ne, %1, %c0_i32_0 : i32
    scf.if %2 {
      %cst_272 = arith.constant 0.000000e+00 : f32
      %329 = vector.broadcast %cst_272 : f32 to vector<64x82xf32>
      %c0_273 = arith.constant 0 : index
      %c0_274 = arith.constant 0 : index
      %330 = vector.load %arg21[%c0_273, %c0_274] : memref<64x82xf32, #tpu.memory_space<vmem>>, vector<64x82xf32>
      tpu.vector_store %arg21[%c0_273, %c0_274], %329 {strides = array<i32>} : memref<64x82xf32, #tpu.memory_space<vmem>>, vector<64x82xf32>,
    } else {
    }
    %c0 = arith.constant 0 : index
    %c0_1 = arith.constant 0 : index
    %3 = vector.load %arg3[%c0, %c0_1] : memref<64x3xbf16, #tpu.memory_space<vmem>>, vector<64x3xbf16>
    %c0_2 = arith.constant 0 : index
    %c0_3 = arith.constant 0 : index
    %c0_4 = arith.constant 0 : index
    %4 = vector.load %arg1[%c0_2, %c0_3, %c0_4] : memref<1x3x64xf32, #tpu.memory_space<vmem>>, vector<1x3x64xf32>
    %5 = vector.shape_cast %4 : vector<1x3x64xf32> to vector<3x64xf32>
    %6 = arith.truncf %5 : vector<3x64xf32> to vector<3x64xbf16>
    %cst = arith.constant dense<0.000000e+00> : vector<64x64xf32>
    %7 = tpu.matmul %3, %6, %cst {dimension_numbers = #tpu.dot_dimension_numbers<[1], [0], [0], [1], [0, 0, 1, 1], [], []>} : vector<64x3xbf16>, vector<3x64xbf16>, vector<64x64xf32> -> vector<64x64xf32>
    %c0_5 = arith.constant 0 : index
    %c0_6 = arith.constant 0 : index
    %8 = vector.load %arg4[%c0_5, %c0_6] : memref<64x1xf32, #tpu.memory_space<vmem>>, vector<64x1xf32>
    %9 = vector.broadcast %8 : vector<64x1xf32> to vector<64x64xf32>
    %10 = arith.addf %7, %9 : vector<64x64xf32>
    %c0_7 = arith.constant 0 : index
    %c9 = arith.constant 9 : index
    %11 = vector.load %arg21[%c0_7, %c9] : memref<64x82xf32, #tpu.memory_space<vmem>>, vector<64x64xf32>
    tpu.vector_store %arg21[%c0_7, %c9], %10 {strides = array<i32>} : memref<64x82xf32, #tpu.memory_space<vmem>>, vector<64x64xf32>,
    %c0_8 = arith.constant 0 : index
    %c0_9 = arith.constant 0 : index
    %12 = vector.load %arg21[%c0_8, %c0_9] : memref<64x82xf32, #tpu.memory_space<vmem>>, vector<64x64xf32>
    %c0_10 = arith.constant 0 : index
    %c0_11 = arith.constant 0 : index
    %c0_12 = arith.constant 0 : index
    %13 = vector.load %arg5[%c0_10, %c0_11, %c0_12] : memref<6x1x64xf32, #tpu.memory_space<vmem>>, vector<1x1x64xf32>
    %14 = vector.shape_cast %13 : vector<1x1x64xf32> to vector<1x64xf32>
    %15 = vector.broadcast %14 : vector<1x64xf32> to vector<64x64xf32>
    %16 = arith.mulf %12, %15 : vector<64x64xf32>
    %17 = arith.truncf %16 : vector<64x64xf32> to vector<64x64xbf16>
    %c0_13 = arith.constant 0 : index
    %c0_14 = arith.constant 0 : index
    %18 = vector.load %arg22[%c0_13, %c0_14] : memref<576x64xbf16, #tpu.memory_space<vmem>>, vector<64x64xbf16>
    tpu.vector_store %arg22[%c0_13, %c0_14], %17 {strides = array<i32>} : memref<576x64xbf16, #tpu.memory_space<vmem>>, vector<64x64xbf16>,
    %c0_15 = arith.constant 0 : index
    %c1 = arith.constant 1 : index
    %19 = vector.load %arg21[%c0_15, %c1] : memref<64x82xf32, #tpu.memory_space<vmem>>, vector<64x64xf32>
    %20 = arith.truncf %19 : vector<64x64xf32> to vector<64x64xbf16>
    %c64 = arith.constant 64 : index
    %c0_16 = arith.constant 0 : index
    %21 = vector.load %arg22[%c64, %c0_16] : memref<576x64xbf16, #tpu.memory_space<vmem>>, vector<64x64xbf16>
    tpu.vector_store %arg22[%c64, %c0_16], %20 {strides = array<i32>} : memref<576x64xbf16, #tpu.memory_space<vmem>>, vector<64x64xbf16>,
    %c0_17 = arith.constant 0 : index
    %c2 = arith.constant 2 : index
    %22 = vector.load %arg21[%c0_17, %c2] : memref<64x82xf32, #tpu.memory_space<vmem>>, vector<64x64xf32>
    %c1_18 = arith.constant 1 : index
    %c0_19 = arith.constant 0 : index
    %c0_20 = arith.constant 0 : index
    %23 = vector.load %arg5[%c1_18, %c0_19, %c0_20] : memref<6x1x64xf32, #tpu.memory_space<vmem>>, vector<1x1x64xf32>
    %24 = vector.shape_cast %23 : vector<1x1x64xf32> to vector<1x64xf32>
    %25 = vector.broadcast %24 : vector<1x64xf32> to vector<64x64xf32>
    %26 = arith.mulf %22, %25 : vector<64x64xf32>
    %27 = arith.truncf %26 : vector<64x64xf32> to vector<64x64xbf16>
    %c128 = arith.constant 128 : index
    %c0_21 = arith.constant 0 : index
    %28 = vector.load %arg22[%c128, %c0_21] : memref<576x64xbf16, #tpu.memory_space<vmem>>, vector<64x64xbf16>
    tpu.vector_store %arg22[%c128, %c0_21], %27 {strides = array<i32>} : memref<576x64xbf16, #tpu.memory_space<vmem>>, vector<64x64xbf16>,
    %c0_22 = arith.constant 0 : index
    %c8 = arith.constant 8 : index
    %29 = vector.load %arg21[%c0_22, %c8] : memref<64x82xf32, #tpu.memory_space<vmem>>, vector<64x64xf32>
    %c2_23 = arith.constant 2 : index
    %c0_24 = arith.constant 0 : index
    %c0_25 = arith.constant 0 : index
    %30 = vector.load %arg5[%c2_23, %c0_24, %c0_25] : memref<6x1x64xf32, #tpu.memory_space<vmem>>, vector<1x1x64xf32>
    %31 = vector.shape_cast %30 : vector<1x1x64xf32> to vector<1x64xf32>
    %32 = vector.broadcast %31 : vector<1x64xf32> to vector<64x64xf32>
    %33 = arith.mulf %29, %32 : vector<64x64xf32>
    %34 = arith.truncf %33 : vector<64x64xf32> to vector<64x64xbf16>
    %c192 = arith.constant 192 : index
    %c0_26 = arith.constant 0 : index
    %35 = vector.load %arg22[%c192, %c0_26] : memref<576x64xbf16, #tpu.memory_space<vmem>>, vector<64x64xbf16>
    tpu.vector_store %arg22[%c192, %c0_26], %34 {strides = array<i32>} : memref<576x64xbf16, #tpu.memory_space<vmem>>, vector<64x64xbf16>,
    %c0_27 = arith.constant 0 : index
    %c9_28 = arith.constant 9 : index
    %36 = vector.load %arg21[%c0_27, %c9_28] : memref<64x82xf32, #tpu.memory_space<vmem>>, vector<64x64xf32>
    %37 = arith.truncf %36 : vector<64x64xf32> to vector<64x64xbf16>
    %c256 = arith.constant 256 : index
    %c0_29 = arith.constant 0 : index
    %38 = vector.load %arg22[%c256, %c0_29] : memref<576x64xbf16, #tpu.memory_space<vmem>>, vector<64x64xbf16>
    tpu.vector_store %arg22[%c256, %c0_29], %37 {strides = array<i32>} : memref<576x64xbf16, #tpu.memory_space<vmem>>, vector<64x64xbf16>,
    %c0_30 = arith.constant 0 : index
    %c10 = arith.constant 10 : index
    %39 = vector.load %arg21[%c0_30, %c10] : memref<64x82xf32, #tpu.memory_space<vmem>>, vector<64x64xf32>
    %c3 = arith.constant 3 : index
    %c0_31 = arith.constant 0 : index
    %c0_32 = arith.constant 0 : index
    %40 = vector.load %arg5[%c3, %c0_31, %c0_32] : memref<6x1x64xf32, #tpu.memory_space<vmem>>, vector<1x1x64xf32>
    %41 = vector.shape_cast %40 : vector<1x1x64xf32> to vector<1x64xf32>
    %42 = vector.broadcast %41 : vector<1x64xf32> to vector<64x64xf32>
    %43 = arith.mulf %39, %42 : vector<64x64xf32>
    %44 = arith.truncf %43 : vector<64x64xf32> to vector<64x64xbf16>
    %c320 = arith.constant 320 : index
    %c0_33 = arith.constant 0 : index
    %45 = vector.load %arg22[%c320, %c0_33] : memref<576x64xbf16, #tpu.memory_space<vmem>>, vector<64x64xbf16>
    tpu.vector_store %arg22[%c320, %c0_33], %44 {strides = array<i32>} : memref<576x64xbf16, #tpu.memory_space<vmem>>, vector<64x64xbf16>,
    %c0_34 = arith.constant 0 : index
    %c16 = arith.constant 16 : index
    %46 = vector.load %arg21[%c0_34, %c16] : memref<64x82xf32, #tpu.memory_space<vmem>>, vector<64x64xf32>
    %c4 = arith.constant 4 : index
    %c0_35 = arith.constant 0 : index
    %c0_36 = arith.constant 0 : index
    %47 = vector.load %arg5[%c4, %c0_35, %c0_36] : memref<6x1x64xf32, #tpu.memory_space<vmem>>, vector<1x1x64xf32>
    %48 = vector.shape_cast %47 : vector<1x1x64xf32> to vector<1x64xf32>
    %49 = vector.broadcast %48 : vector<1x64xf32> to vector<64x64xf32>
    %50 = arith.mulf %46, %49 : vector<64x64xf32>
    %51 = arith.truncf %50 : vector<64x64xf32> to vector<64x64xbf16>
    %c384 = arith.constant 384 : index
    %c0_37 = arith.constant 0 : index
    %52 = vector.load %arg22[%c384, %c0_37] : memref<576x64xbf16, #tpu.memory_space<vmem>>, vector<64x64xbf16>
    tpu.vector_store %arg22[%c384, %c0_37], %51 {strides = array<i32>} : memref<576x64xbf16, #tpu.memory_space<vmem>>, vector<64x64xbf16>,
    %c0_38 = arith.constant 0 : index
    %c17 = arith.constant 17 : index
    %53 = vector.load %arg21[%c0_38, %c17] : memref<64x82xf32, #tpu.memory_space<vmem>>, vector<64x64xf32>
    %54 = arith.truncf %53 : vector<64x64xf32> to vector<64x64xbf16>
    %c448 = arith.constant 448 : index
    %c0_39 = arith.constant 0 : index
    %55 = vector.load %arg22[%c448, %c0_39] : memref<576x64xbf16, #tpu.memory_space<vmem>>, vector<64x64xbf16>
    tpu.vector_store %arg22[%c448, %c0_39], %54 {strides = array<i32>} : memref<576x64xbf16, #tpu.memory_space<vmem>>, vector<64x64xbf16>,
    %c0_40 = arith.constant 0 : index
    %c18 = arith.constant 18 : index
    %56 = vector.load %arg21[%c0_40, %c18] : memref<64x82xf32, #tpu.memory_space<vmem>>, vector<64x64xf32>
    %c5 = arith.constant 5 : index
    %c0_41 = arith.constant 0 : index
    %c0_42 = arith.constant 0 : index
    %57 = vector.load %arg5[%c5, %c0_41, %c0_42] : memref<6x1x64xf32, #tpu.memory_space<vmem>>, vector<1x1x64xf32>
    %58 = vector.shape_cast %57 : vector<1x1x64xf32> to vector<1x64xf32>
    %59 = vector.broadcast %58 : vector<1x64xf32> to vector<64x64xf32>
    %60 = arith.mulf %56, %59 : vector<64x64xf32>
    %61 = arith.truncf %60 : vector<64x64xf32> to vector<64x64xbf16>
    %c512 = arith.constant 512 : index
    %c0_43 = arith.constant 0 : index
    %62 = vector.load %arg22[%c512, %c0_43] : memref<576x64xbf16, #tpu.memory_space<vmem>>, vector<64x64xbf16>
    tpu.vector_store %arg22[%c512, %c0_43], %61 {strides = array<i32>} : memref<576x64xbf16, #tpu.memory_space<vmem>>, vector<64x64xbf16>,
    %c0_44 = arith.constant 0 : index
    %c0_45 = arith.constant 0 : index
    %63 = vector.load %arg6[%c0_44, %c0_45] : memref<16x576xbf16, #tpu.memory_space<vmem>>, vector<16x576xbf16>
    %c0_46 = arith.constant 0 : index
    %c0_47 = arith.constant 0 : index
    %64 = vector.load %arg22[%c0_46, %c0_47] : memref<576x64xbf16, #tpu.memory_space<vmem>>, vector<576x64xbf16>
    %cst_48 = arith.constant dense<0.000000e+00> : vector<16x64xf32>
    %65 = tpu.matmul %63, %64, %cst_48 {dimension_numbers = #tpu.dot_dimension_numbers<[1], [0], [0], [1], [0, 0, 1, 1], [], []>} : vector<16x576xbf16>, vector<576x64xbf16>, vector<16x64xf32> -> vector<16x64xf32>
    %c0_49 = arith.constant 0 : index
    %c0_50 = arith.constant 0 : index
    %66 = vector.load %arg7[%c0_49, %c0_50] : memref<16x1xf32, #tpu.memory_space<vmem>>, vector<16x1xf32>
    %67 = vector.broadcast %66 : vector<16x1xf32> to vector<16x64xf32>
    %68 = arith.addf %65, %67 : vector<16x64xf32>
    %cst_51 = arith.constant 0.000000e+00 : f32
    %69 = vector.broadcast %cst_51 : f32 to vector<16x64xf32>
    %70 = arith.maximumf %68, %69 : vector<16x64xf32>
    %c0_52 = arith.constant 0 : index
    %c0_53 = arith.constant 0 : index
    %71 = vector.load %arg8[%c0_52, %c0_53] : memref<32x16xbf16, #tpu.memory_space<vmem>>, vector<32x16xbf16>
    %72 = arith.truncf %70 : vector<16x64xf32> to vector<16x64xbf16>
    %cst_54 = arith.constant dense<0.000000e+00> : vector<32x64xf32>
    %73 = tpu.matmul %71, %72, %cst_54 {dimension_numbers = #tpu.dot_dimension_numbers<[1], [0], [0], [1], [0, 0, 1, 1], [], []>} : vector<32x16xbf16>, vector<16x64xbf16>, vector<32x64xf32> -> vector<32x64xf32>
    %c0_55 = arith.constant 0 : index
    %c0_56 = arith.constant 0 : index
    %74 = vector.load %arg9[%c0_55, %c0_56] : memref<32x1xf32, #tpu.memory_space<vmem>>, vector<32x1xf32>
    %75 = vector.broadcast %74 : vector<32x1xf32> to vector<32x64xf32>
    %76 = arith.addf %73, %75 : vector<32x64xf32>
    %77 = vector.extract_strided_slice %76 {offsets = [0, 0], sizes = [8, 64], strides = [1, 1]} : vector<32x64xf32> to vector<8x64xf32>
    %78 = arith.truncf %77 : vector<8x64xf32> to vector<8x64xbf16>
    %79 = vector.extract_strided_slice %76 {offsets = [8, 0], sizes = [8, 64], strides = [1, 1]} : vector<32x64xf32> to vector<8x64xf32>
    %80 = arith.truncf %79 : vector<8x64xf32> to vector<8x64xbf16>
    %81 = vector.extract_strided_slice %76 {offsets = [16, 0], sizes = [16, 64], strides = [1, 1]} : vector<32x64xf32> to vector<16x64xf32>
    %82 = arith.truncf %81 : vector<16x64xf32> to vector<16x64xbf16>
    %cst_57 = arith.constant -1.000000e+30 : f32
    %83 = vector.broadcast %cst_57 : f32 to vector<1x64xf32>
    %cst_58 = arith.constant 0.000000e+00 : f32
    %84 = vector.broadcast %cst_58 : f32 to vector<1x64xf32>
    %cst_59 = arith.constant 0.000000e+00 : f32
    %85 = vector.broadcast %cst_59 : f32 to vector<16x64xf32>
    %cst_60 = arith.constant dense<0.000000e+00> : vector<64x64xf32>
    %86 = tpu.matmul %80, %78, %cst_60 {dimension_numbers = #tpu.dot_dimension_numbers<[0], [0], [1], [1], [0, 1, 1, 1], [], []>} : vector<8x64xbf16>, vector<8x64xbf16>, vector<64x64xf32> -> vector<64x64xf32>
    %cst_61 = arith.constant dense<0xFF800000> : vector<64xf32>
    %87 = vector.multi_reduction <maximumf>, %86, %cst_61 [0] : vector<64x64xf32> to vector<64xf32>
    %88 = vector.shape_cast %87 : vector<64xf32> to vector<1x64xf32>
    %89 = arith.maximumf %83, %88 : vector<1x64xf32>
    %90 = arith.subf %83, %89 : vector<1x64xf32>
    %91 = math.exp %90 : vector<1x64xf32>
    %92 = vector.broadcast %89 : vector<1x64xf32> to vector<64x64xf32>
    %93 = arith.subf %86, %92 : vector<64x64xf32>
    %94 = math.exp %93 : vector<64x64xf32>
    %95 = arith.mulf %91, %84 : vector<1x64xf32>
    %cst_62 = arith.constant dense<0.000000e+00> : vector<64xf32>
    %96 = vector.multi_reduction <add>, %94, %cst_62 [0] : vector<64x64xf32> to vector<64xf32>
    %97 = vector.shape_cast %96 : vector<64xf32> to vector<1x64xf32>
    %98 = arith.addf %95, %97 : vector<1x64xf32>
    %99 = vector.broadcast %91 : vector<1x64xf32> to vector<16x64xf32>
    %100 = arith.mulf %85, %99 : vector<16x64xf32>
    %101 = arith.truncf %94 : vector<64x64xf32> to vector<64x64xbf16>
    %cst_63 = arith.constant dense<0.000000e+00> : vector<16x64xf32>
    %102 = tpu.matmul %82, %101, %cst_63 {dimension_numbers = #tpu.dot_dimension_numbers<[1], [0], [0], [1], [0, 0, 1, 1], [], []>} : vector<16x64xbf16>, vector<64x64xbf16>, vector<16x64xf32> -> vector<16x64xf32>
    %103 = arith.addf %100, %102 : vector<16x64xf32>
    %104 = tpu.reciprocal %98 {approx = true} : vector<1x64xf32> -> vector<1x64xf32>
    %105 = vector.broadcast %104 : vector<1x64xf32> to vector<16x64xf32>
    %106 = arith.mulf %103, %105 : vector<16x64xf32>
    %c0_64 = arith.constant 0 : index
    %107 = memref.load %arg2[%c0_64] : memref<2xf32, #tpu.memory_space<smem>>
    %108 = vector.broadcast %107 : f32 to vector<16x64xf32>
    %109 = arith.mulf %108, %106 : vector<16x64xf32>
    %110 = arith.addf %109, %70 : vector<16x64xf32>
    %c0_65 = arith.constant 0 : index
    %c9_66 = arith.constant 9 : index
    %111 = vector.load %arg21[%c0_65, %c9_66] : memref<64x82xf32, #tpu.memory_space<vmem>>, vector<16x64xf32>
    tpu.vector_store %arg21[%c0_65, %c9_66], %110 {strides = array<i32>} : memref<64x82xf32, #tpu.memory_space<vmem>>, vector<16x64xf32>,
    %c0_67 = arith.constant 0 : index
    %c0_68 = arith.constant 0 : index
    %112 = vector.load %arg21[%c0_67, %c0_68] : memref<64x82xf32, #tpu.memory_space<vmem>>, vector<16x64xf32>
    %c0_69 = arith.constant 0 : index
    %c0_70 = arith.constant 0 : index
    %c0_71 = arith.constant 0 : index
    %113 = vector.load %arg5[%c0_69, %c0_70, %c0_71] : memref<6x1x64xf32, #tpu.memory_space<vmem>>, vector<1x1x64xf32>
    %114 = vector.shape_cast %113 : vector<1x1x64xf32> to vector<1x64xf32>
    %115 = vector.broadcast %114 : vector<1x64xf32> to vector<16x64xf32>
    %116 = arith.mulf %112, %115 : vector<16x64xf32>
    %117 = arith.truncf %116 : vector<16x64xf32> to vector<16x64xbf16>
    %c0_72 = arith.constant 0 : index
    %c0_73 = arith.constant 0 : index
    %118 = vector.load %arg22[%c0_72, %c0_73] : memref<576x64xbf16, #tpu.memory_space<vmem>>, vector<16x64xbf16>
    tpu.vector_store %arg22[%c0_72, %c0_73], %117 {strides = array<i32>} : memref<576x64xbf16, #tpu.memory_space<vmem>>, vector<16x64xbf16>,
    %c0_74 = arith.constant 0 : index
    %c1_75 = arith.constant 1 : index
    %119 = vector.load %arg21[%c0_74, %c1_75] : memref<64x82xf32, #tpu.memory_space<vmem>>, vector<16x64xf32>
    %120 = arith.truncf %119 : vector<16x64xf32> to vector<16x64xbf16>
    %c16_76 = arith.constant 16 : index
    %c0_77 = arith.constant 0 : index
    %121 = vector.load %arg22[%c16_76, %c0_77] : memref<576x64xbf16, #tpu.memory_space<vmem>>, vector<16x64xbf16>
    tpu.vector_store %arg22[%c16_76, %c0_77], %120 {strides = array<i32>} : memref<576x64xbf16, #tpu.memory_space<vmem>>, vector<16x64xbf16>,
    %c0_78 = arith.constant 0 : index
    %c2_79 = arith.constant 2 : index
    %122 = vector.load %arg21[%c0_78, %c2_79] : memref<64x82xf32, #tpu.memory_space<vmem>>, vector<16x64xf32>
    %c1_80 = arith.constant 1 : index
    %c0_81 = arith.constant 0 : index
    %c0_82 = arith.constant 0 : index
    %123 = vector.load %arg5[%c1_80, %c0_81, %c0_82] : memref<6x1x64xf32, #tpu.memory_space<vmem>>, vector<1x1x64xf32>
    %124 = vector.shape_cast %123 : vector<1x1x64xf32> to vector<1x64xf32>
    %125 = vector.broadcast %124 : vector<1x64xf32> to vector<16x64xf32>
    %126 = arith.mulf %122, %125 : vector<16x64xf32>
    %127 = arith.truncf %126 : vector<16x64xf32> to vector<16x64xbf16>
    %c32 = arith.constant 32 : index
    %c0_83 = arith.constant 0 : index
    %128 = vector.load %arg22[%c32, %c0_83] : memref<576x64xbf16, #tpu.memory_space<vmem>>, vector<16x64xbf16>
    tpu.vector_store %arg22[%c32, %c0_83], %127 {strides = array<i32>} : memref<576x64xbf16, #tpu.memory_space<vmem>>, vector<16x64xbf16>,
    %c0_84 = arith.constant 0 : index
    %c8_85 = arith.constant 8 : index
    %129 = vector.load %arg21[%c0_84, %c8_85] : memref<64x82xf32, #tpu.memory_space<vmem>>, vector<16x64xf32>
    %c2_86 = arith.constant 2 : index
    %c0_87 = arith.constant 0 : index
    %c0_88 = arith.constant 0 : index
    %130 = vector.load %arg5[%c2_86, %c0_87, %c0_88] : memref<6x1x64xf32, #tpu.memory_space<vmem>>, vector<1x1x64xf32>
    %131 = vector.shape_cast %130 : vector<1x1x64xf32> to vector<1x64xf32>
    %132 = vector.broadcast %131 : vector<1x64xf32> to vector<16x64xf32>
    %133 = arith.mulf %129, %132 : vector<16x64xf32>
    %134 = arith.truncf %133 : vector<16x64xf32> to vector<16x64xbf16>
    %c48 = arith.constant 48 : index
    %c0_89 = arith.constant 0 : index
    %135 = vector.load %arg22[%c48, %c0_89] : memref<576x64xbf16, #tpu.memory_space<vmem>>, vector<16x64xbf16>
    tpu.vector_store %arg22[%c48, %c0_89], %134 {strides = array<i32>} : memref<576x64xbf16, #tpu.memory_space<vmem>>, vector<16x64xbf16>,
    %c0_90 = arith.constant 0 : index
    %c9_91 = arith.constant 9 : index
    %136 = vector.load %arg21[%c0_90, %c9_91] : memref<64x82xf32, #tpu.memory_space<vmem>>, vector<16x64xf32>
    %137 = arith.truncf %136 : vector<16x64xf32> to vector<16x64xbf16>
    %c64_92 = arith.constant 64 : index
    %c0_93 = arith.constant 0 : index
    %138 = vector.load %arg22[%c64_92, %c0_93] : memref<576x64xbf16, #tpu.memory_space<vmem>>, vector<16x64xbf16>
    tpu.vector_store %arg22[%c64_92, %c0_93], %137 {strides = array<i32>} : memref<576x64xbf16, #tpu.memory_space<vmem>>, vector<16x64xbf16>,
    %c0_94 = arith.constant 0 : index
    %c10_95 = arith.constant 10 : index
    %139 = vector.load %arg21[%c0_94, %c10_95] : memref<64x82xf32, #tpu.memory_space<vmem>>, vector<16x64xf32>
    %c3_96 = arith.constant 3 : index
    %c0_97 = arith.constant 0 : index
    %c0_98 = arith.constant 0 : index
    %140 = vector.load %arg5[%c3_96, %c0_97, %c0_98] : memref<6x1x64xf32, #tpu.memory_space<vmem>>, vector<1x1x64xf32>
    %141 = vector.shape_cast %140 : vector<1x1x64xf32> to vector<1x64xf32>
    %142 = vector.broadcast %141 : vector<1x64xf32> to vector<16x64xf32>
    %143 = arith.mulf %139, %142 : vector<16x64xf32>
    %144 = arith.truncf %143 : vector<16x64xf32> to vector<16x64xbf16>
    %c80 = arith.constant 80 : index
    %c0_99 = arith.constant 0 : index
    %145 = vector.load %arg22[%c80, %c0_99] : memref<576x64xbf16, #tpu.memory_space<vmem>>, vector<16x64xbf16>
    tpu.vector_store %arg22[%c80, %c0_99], %144 {strides = array<i32>} : memref<576x64xbf16, #tpu.memory_space<vmem>>, vector<16x64xbf16>,
    %c0_100 = arith.constant 0 : index
    %c16_101 = arith.constant 16 : index
    %146 = vector.load %arg21[%c0_100, %c16_101] : memref<64x82xf32, #tpu.memory_space<vmem>>, vector<16x64xf32>
    %c4_102 = arith.constant 4 : index
    %c0_103 = arith.constant 0 : index
    %c0_104 = arith.constant 0 : index
    %147 = vector.load %arg5[%c4_102, %c0_103, %c0_104] : memref<6x1x64xf32, #tpu.memory_space<vmem>>, vector<1x1x64xf32>
    %148 = vector.shape_cast %147 : vector<1x1x64xf32> to vector<1x64xf32>
    %149 = vector.broadcast %148 : vector<1x64xf32> to vector<16x64xf32>
    %150 = arith.mulf %146, %149 : vector<16x64xf32>
    %151 = arith.truncf %150 : vector<16x64xf32> to vector<16x64xbf16>
    %c96 = arith.constant 96 : index
    %c0_105 = arith.constant 0 : index
    %152 = vector.load %arg22[%c96, %c0_105] : memref<576x64xbf16, #tpu.memory_space<vmem>>, vector<16x64xbf16>
    tpu.vector_store %arg22[%c96, %c0_105], %151 {strides = array<i32>} : memref<576x64xbf16, #tpu.memory_space<vmem>>, vector<16x64xbf16>,
    %c0_106 = arith.constant 0 : index
    %c17_107 = arith.constant 17 : index
    %153 = vector.load %arg21[%c0_106, %c17_107] : memref<64x82xf32, #tpu.memory_space<vmem>>, vector<16x64xf32>
    %154 = arith.truncf %153 : vector<16x64xf32> to vector<16x64xbf16>
    %c112 = arith.constant 112 : index
    %c0_108 = arith.constant 0 : index
    %155 = vector.load %arg22[%c112, %c0_108] : memref<576x64xbf16, #tpu.memory_space<vmem>>, vector<16x64xbf16>
    tpu.vector_store %arg22[%c112, %c0_108], %154 {strides = array<i32>} : memref<576x64xbf16, #tpu.memory_space<vmem>>, vector<16x64xbf16>,
    %c0_109 = arith.constant 0 : index
    %c18_110 = arith.constant 18 : index
    %156 = vector.load %arg21[%c0_109, %c18_110] : memref<64x82xf32, #tpu.memory_space<vmem>>, vector<16x64xf32>
    %c5_111 = arith.constant 5 : index
    %c0_112 = arith.constant 0 : index
    %c0_113 = arith.constant 0 : index
    %157 = vector.load %arg5[%c5_111, %c0_112, %c0_113] : memref<6x1x64xf32, #tpu.memory_space<vmem>>, vector<1x1x64xf32>
    %158 = vector.shape_cast %157 : vector<1x1x64xf32> to vector<1x64xf32>
    %159 = vector.broadcast %158 : vector<1x64xf32> to vector<16x64xf32>
    %160 = arith.mulf %156, %159 : vector<16x64xf32>
    %161 = arith.truncf %160 : vector<16x64xf32> to vector<16x64xbf16>
    %c128_114 = arith.constant 128 : index
    %c0_115 = arith.constant 0 : index
    %162 = vector.load %arg22[%c128_114, %c0_115] : memref<576x64xbf16, #tpu.memory_space<vmem>>, vector<16x64xbf16>
    tpu.vector_store %arg22[%c128_114, %c0_115], %161 {strides = array<i32>} : memref<576x64xbf16, #tpu.memory_space<vmem>>, vector<16x64xbf16>,
    %c0_116 = arith.constant 0 : index
    %c0_117 = arith.constant 0 : index
    %163 = vector.load %arg10[%c0_116, %c0_117] : memref<16x144xbf16, #tpu.memory_space<vmem>>, vector<16x144xbf16>
    %c0_118 = arith.constant 0 : index
    %c0_119 = arith.constant 0 : index
    %164 = vector.load %arg22[%c0_118, %c0_119] : memref<576x64xbf16, #tpu.memory_space<vmem>>, vector<144x64xbf16>
    %cst_120 = arith.constant dense<0.000000e+00> : vector<16x64xf32>
    %165 = tpu.matmul %163, %164, %cst_120 {dimension_numbers = #tpu.dot_dimension_numbers<[1], [0], [0], [1], [0, 0, 1, 1], [], []>} : vector<16x144xbf16>, vector<144x64xbf16>, vector<16x64xf32> -> vector<16x64xf32>
    %c0_121 = arith.constant 0 : index
    %c0_122 = arith.constant 0 : index
    %166 = vector.load %arg11[%c0_121, %c0_122] : memref<16x1xf32, #tpu.memory_space<vmem>>, vector<16x1xf32>
    %167 = vector.broadcast %166 : vector<16x1xf32> to vector<16x64xf32>
    %168 = arith.addf %165, %167 : vector<16x64xf32>
    %cst_123 = arith.constant 0.000000e+00 : f32
    %169 = vector.broadcast %cst_123 : f32 to vector<16x64xf32>
    %170 = arith.maximumf %168, %169 : vector<16x64xf32>
    %c0_124 = arith.constant 0 : index
    %c9_125 = arith.constant 9 : index
    %171 = vector.load %arg21[%c0_124, %c9_125] : memref<64x82xf32, #tpu.memory_space<vmem>>, vector<64x64xf32>
    tpu.vector_store %arg21[%c0_124, %c9_125], %10 {strides = array<i32>} : memref<64x82xf32, #tpu.memory_space<vmem>>, vector<64x64xf32>,
    %c0_126 = arith.constant 0 : index
    %c0_127 = arith.constant 0 : index
    %172 = vector.load %arg21[%c0_126, %c0_127] : memref<64x82xf32, #tpu.memory_space<vmem>>, vector<64x64xf32>
    %c0_128 = arith.constant 0 : index
    %c0_129 = arith.constant 0 : index
    %c0_130 = arith.constant 0 : index
    %173 = vector.load %arg5[%c0_128, %c0_129, %c0_130] : memref<6x1x64xf32, #tpu.memory_space<vmem>>, vector<1x1x64xf32>
    %174 = vector.shape_cast %173 : vector<1x1x64xf32> to vector<1x64xf32>
    %175 = vector.broadcast %174 : vector<1x64xf32> to vector<64x64xf32>
    %176 = arith.mulf %172, %175 : vector<64x64xf32>
    %177 = arith.truncf %176 : vector<64x64xf32> to vector<64x64xbf16>
    %c0_131 = arith.constant 0 : index
    %c0_132 = arith.constant 0 : index
    %178 = vector.load %arg22[%c0_131, %c0_132] : memref<576x64xbf16, #tpu.memory_space<vmem>>, vector<64x64xbf16>
    tpu.vector_store %arg22[%c0_131, %c0_132], %177 {strides = array<i32>} : memref<576x64xbf16, #tpu.memory_space<vmem>>, vector<64x64xbf16>,
    %c0_133 = arith.constant 0 : index
    %c1_134 = arith.constant 1 : index
    %179 = vector.load %arg21[%c0_133, %c1_134] : memref<64x82xf32, #tpu.memory_space<vmem>>, vector<64x64xf32>
    %180 = arith.truncf %179 : vector<64x64xf32> to vector<64x64xbf16>
    %c64_135 = arith.constant 64 : index
    %c0_136 = arith.constant 0 : index
    %181 = vector.load %arg22[%c64_135, %c0_136] : memref<576x64xbf16, #tpu.memory_space<vmem>>, vector<64x64xbf16>
    tpu.vector_store %arg22[%c64_135, %c0_136], %180 {strides = array<i32>} : memref<576x64xbf16, #tpu.memory_space<vmem>>, vector<64x64xbf16>,
    %c0_137 = arith.constant 0 : index
    %c2_138 = arith.constant 2 : index
    %182 = vector.load %arg21[%c0_137, %c2_138] : memref<64x82xf32, #tpu.memory_space<vmem>>, vector<64x64xf32>
    %c1_139 = arith.constant 1 : index
    %c0_140 = arith.constant 0 : index
    %c0_141 = arith.constant 0 : index
    %183 = vector.load %arg5[%c1_139, %c0_140, %c0_141] : memref<6x1x64xf32, #tpu.memory_space<vmem>>, vector<1x1x64xf32>
    %184 = vector.shape_cast %183 : vector<1x1x64xf32> to vector<1x64xf32>
    %185 = vector.broadcast %184 : vector<1x64xf32> to vector<64x64xf32>
    %186 = arith.mulf %182, %185 : vector<64x64xf32>
    %187 = arith.truncf %186 : vector<64x64xf32> to vector<64x64xbf16>
    %c128_142 = arith.constant 128 : index
    %c0_143 = arith.constant 0 : index
    %188 = vector.load %arg22[%c128_142, %c0_143] : memref<576x64xbf16, #tpu.memory_space<vmem>>, vector<64x64xbf16>
    tpu.vector_store %arg22[%c128_142, %c0_143], %187 {strides = array<i32>} : memref<576x64xbf16, #tpu.memory_space<vmem>>, vector<64x64xbf16>,
    %c0_144 = arith.constant 0 : index
    %c8_145 = arith.constant 8 : index
    %189 = vector.load %arg21[%c0_144, %c8_145] : memref<64x82xf32, #tpu.memory_space<vmem>>, vector<64x64xf32>
    %c2_146 = arith.constant 2 : index
    %c0_147 = arith.constant 0 : index
    %c0_148 = arith.constant 0 : index
    %190 = vector.load %arg5[%c2_146, %c0_147, %c0_148] : memref<6x1x64xf32, #tpu.memory_space<vmem>>, vector<1x1x64xf32>
    %191 = vector.shape_cast %190 : vector<1x1x64xf32> to vector<1x64xf32>
    %192 = vector.broadcast %191 : vector<1x64xf32> to vector<64x64xf32>
    %193 = arith.mulf %189, %192 : vector<64x64xf32>
    %194 = arith.truncf %193 : vector<64x64xf32> to vector<64x64xbf16>
    %c192_149 = arith.constant 192 : index
    %c0_150 = arith.constant 0 : index
    %195 = vector.load %arg22[%c192_149, %c0_150] : memref<576x64xbf16, #tpu.memory_space<vmem>>, vector<64x64xbf16>
    tpu.vector_store %arg22[%c192_149, %c0_150], %194 {strides = array<i32>} : memref<576x64xbf16, #tpu.memory_space<vmem>>, vector<64x64xbf16>,
    %c0_151 = arith.constant 0 : index
    %c9_152 = arith.constant 9 : index
    %196 = vector.load %arg21[%c0_151, %c9_152] : memref<64x82xf32, #tpu.memory_space<vmem>>, vector<64x64xf32>
    %197 = arith.truncf %196 : vector<64x64xf32> to vector<64x64xbf16>
    %c256_153 = arith.constant 256 : index
    %c0_154 = arith.constant 0 : index
    %198 = vector.load %arg22[%c256_153, %c0_154] : memref<576x64xbf16, #tpu.memory_space<vmem>>, vector<64x64xbf16>
    tpu.vector_store %arg22[%c256_153, %c0_154], %197 {strides = array<i32>} : memref<576x64xbf16, #tpu.memory_space<vmem>>, vector<64x64xbf16>,
    %c0_155 = arith.constant 0 : index
    %c10_156 = arith.constant 10 : index
    %199 = vector.load %arg21[%c0_155, %c10_156] : memref<64x82xf32, #tpu.memory_space<vmem>>, vector<64x64xf32>
    %c3_157 = arith.constant 3 : index
    %c0_158 = arith.constant 0 : index
    %c0_159 = arith.constant 0 : index
    %200 = vector.load %arg5[%c3_157, %c0_158, %c0_159] : memref<6x1x64xf32, #tpu.memory_space<vmem>>, vector<1x1x64xf32>
    %201 = vector.shape_cast %200 : vector<1x1x64xf32> to vector<1x64xf32>
    %202 = vector.broadcast %201 : vector<1x64xf32> to vector<64x64xf32>
    %203 = arith.mulf %199, %202 : vector<64x64xf32>
    %204 = arith.truncf %203 : vector<64x64xf32> to vector<64x64xbf16>
    %c320_160 = arith.constant 320 : index
    %c0_161 = arith.constant 0 : index
    %205 = vector.load %arg22[%c320_160, %c0_161] : memref<576x64xbf16, #tpu.memory_space<vmem>>, vector<64x64xbf16>
    tpu.vector_store %arg22[%c320_160, %c0_161], %204 {strides = array<i32>} : memref<576x64xbf16, #tpu.memory_space<vmem>>, vector<64x64xbf16>,
    %c0_162 = arith.constant 0 : index
    %c16_163 = arith.constant 16 : index
    %206 = vector.load %arg21[%c0_162, %c16_163] : memref<64x82xf32, #tpu.memory_space<vmem>>, vector<64x64xf32>
    %c4_164 = arith.constant 4 : index
    %c0_165 = arith.constant 0 : index
    %c0_166 = arith.constant 0 : index
    %207 = vector.load %arg5[%c4_164, %c0_165, %c0_166] : memref<6x1x64xf32, #tpu.memory_space<vmem>>, vector<1x1x64xf32>
    %208 = vector.shape_cast %207 : vector<1x1x64xf32> to vector<1x64xf32>
    %209 = vector.broadcast %208 : vector<1x64xf32> to vector<64x64xf32>
    %210 = arith.mulf %206, %209 : vector<64x64xf32>
    %211 = arith.truncf %210 : vector<64x64xf32> to vector<64x64xbf16>
    %c384_167 = arith.constant 384 : index
    %c0_168 = arith.constant 0 : index
    %212 = vector.load %arg22[%c384_167, %c0_168] : memref<576x64xbf16, #tpu.memory_space<vmem>>, vector<64x64xbf16>
    tpu.vector_store %arg22[%c384_167, %c0_168], %211 {strides = array<i32>} : memref<576x64xbf16, #tpu.memory_space<vmem>>, vector<64x64xbf16>,
    %c0_169 = arith.constant 0 : index
    %c17_170 = arith.constant 17 : index
    %213 = vector.load %arg21[%c0_169, %c17_170] : memref<64x82xf32, #tpu.memory_space<vmem>>, vector<64x64xf32>
    %214 = arith.truncf %213 : vector<64x64xf32> to vector<64x64xbf16>
    %c448_171 = arith.constant 448 : index
    %c0_172 = arith.constant 0 : index
    %215 = vector.load %arg22[%c448_171, %c0_172] : memref<576x64xbf16, #tpu.memory_space<vmem>>, vector<64x64xbf16>
    tpu.vector_store %arg22[%c448_171, %c0_172], %214 {strides = array<i32>} : memref<576x64xbf16, #tpu.memory_space<vmem>>, vector<64x64xbf16>,
    %c0_173 = arith.constant 0 : index
    %c18_174 = arith.constant 18 : index
    %216 = vector.load %arg21[%c0_173, %c18_174] : memref<64x82xf32, #tpu.memory_space<vmem>>, vector<64x64xf32>
    %c5_175 = arith.constant 5 : index
    %c0_176 = arith.constant 0 : index
    %c0_177 = arith.constant 0 : index
    %217 = vector.load %arg5[%c5_175, %c0_176, %c0_177] : memref<6x1x64xf32, #tpu.memory_space<vmem>>, vector<1x1x64xf32>
    %218 = vector.shape_cast %217 : vector<1x1x64xf32> to vector<1x64xf32>
    %219 = vector.broadcast %218 : vector<1x64xf32> to vector<64x64xf32>
    %220 = arith.mulf %216, %219 : vector<64x64xf32>
    %221 = arith.truncf %220 : vector<64x64xf32> to vector<64x64xbf16>
    %c512_178 = arith.constant 512 : index
    %c0_179 = arith.constant 0 : index
    %222 = vector.load %arg22[%c512_178, %c0_179] : memref<576x64xbf16, #tpu.memory_space<vmem>>, vector<64x64xbf16>
    tpu.vector_store %arg22[%c512_178, %c0_179], %221 {strides = array<i32>} : memref<576x64xbf16, #tpu.memory_space<vmem>>, vector<64x64xbf16>,
    %c0_180 = arith.constant 0 : index
    %c0_181 = arith.constant 0 : index
    %223 = vector.load %arg12[%c0_180, %c0_181] : memref<16x576xbf16, #tpu.memory_space<vmem>>, vector<16x576xbf16>
    %c0_182 = arith.constant 0 : index
    %c0_183 = arith.constant 0 : index
    %224 = vector.load %arg22[%c0_182, %c0_183] : memref<576x64xbf16, #tpu.memory_space<vmem>>, vector<576x64xbf16>
    %cst_184 = arith.constant dense<0.000000e+00> : vector<16x64xf32>
    %225 = tpu.matmul %223, %224, %cst_184 {dimension_numbers = #tpu.dot_dimension_numbers<[1], [0], [0], [1], [0, 0, 1, 1], [], []>} : vector<16x576xbf16>, vector<576x64xbf16>, vector<16x64xf32> -> vector<16x64xf32>
    %c0_185 = arith.constant 0 : index
    %c0_186 = arith.constant 0 : index
    %226 = vector.load %arg13[%c0_185, %c0_186] : memref<16x1xf32, #tpu.memory_space<vmem>>, vector<16x1xf32>
    %227 = vector.broadcast %226 : vector<16x1xf32> to vector<16x64xf32>
    %228 = arith.addf %225, %227 : vector<16x64xf32>
    %cst_187 = arith.constant 0.000000e+00 : f32
    %229 = vector.broadcast %cst_187 : f32 to vector<16x64xf32>
    %230 = arith.maximumf %228, %229 : vector<16x64xf32>
    %231 = arith.truncf %230 : vector<16x64xf32> to vector<16x64xbf16>
    %cst_188 = arith.constant dense<0.000000e+00> : vector<16x16xf32>
    %232 = tpu.matmul %231, %231, %cst_188 {dimension_numbers = #tpu.dot_dimension_numbers<[1], [1], [0], [0], [0, 0, 1, 0], [], []>} : vector<16x64xbf16>, vector<16x64xbf16>, vector<16x16xf32> -> vector<16x16xf32>
    %cst_189 = arith.constant dense<0xFF800000> : vector<16xf32>
    %233 = vector.multi_reduction <maximumf>, %232, %cst_189 [1] : vector<16x16xf32> to vector<16xf32>
    %234 = vector.shape_cast %233 : vector<16xf32> to vector<16x1xf32>
    %235 = vector.broadcast %234 : vector<16x1xf32> to vector<16x16xf32>
    %236 = arith.subf %235, %232 : vector<16x16xf32>
    %cst_190 = arith.constant dense<0xFF800000> : vector<16xf32>
    %237 = vector.multi_reduction <maximumf>, %236, %cst_190 [1] : vector<16x16xf32> to vector<16xf32>
    %238 = vector.shape_cast %237 : vector<16xf32> to vector<16x1xf32>
    %239 = vector.broadcast %238 : vector<16x1xf32> to vector<16x16xf32>
    %240 = arith.subf %236, %239 : vector<16x16xf32>
    %241 = math.exp %240 : vector<16x16xf32>
    %cst_191 = arith.constant dense<0.000000e+00> : vector<16xf32>
    %242 = vector.multi_reduction <add>, %241, %cst_191 [1] : vector<16x16xf32> to vector<16xf32>
    %243 = vector.shape_cast %242 : vector<16xf32> to vector<16x1xf32>
    %244 = tpu.reciprocal %243 {approx = true} : vector<16x1xf32> -> vector<16x1xf32>
    %245 = vector.broadcast %244 : vector<16x1xf32> to vector<16x16xf32>
    %246 = arith.mulf %241, %245 : vector<16x16xf32>
    %247 = arith.truncf %246 : vector<16x16xf32> to vector<16x16xbf16>
    %cst_192 = arith.constant dense<0.000000e+00> : vector<16x64xf32>
    %248 = tpu.matmul %247, %231, %cst_192 {dimension_numbers = #tpu.dot_dimension_numbers<[1], [0], [0], [1], [0, 0, 1, 1], [], []>} : vector<16x16xbf16>, vector<16x64xbf16>, vector<16x64xf32> -> vector<16x64xf32>
    %c1_193 = arith.constant 1 : index
    %249 = memref.load %arg2[%c1_193] : memref<2xf32, #tpu.memory_space<smem>>
    %250 = vector.broadcast %249 : f32 to vector<16x64xf32>
    %251 = arith.mulf %250, %248 : vector<16x64xf32>
    %252 = arith.addf %251, %230 : vector<16x64xf32>
    %c0_194 = arith.constant 0 : index
    %c9_195 = arith.constant 9 : index
    %253 = vector.load %arg21[%c0_194, %c9_195] : memref<64x82xf32, #tpu.memory_space<vmem>>, vector<16x64xf32>
    tpu.vector_store %arg21[%c0_194, %c9_195], %252 {strides = array<i32>} : memref<64x82xf32, #tpu.memory_space<vmem>>, vector<16x64xf32>,
    %c0_196 = arith.constant 0 : index
    %c0_197 = arith.constant 0 : index
    %254 = vector.load %arg21[%c0_196, %c0_197] : memref<64x82xf32, #tpu.memory_space<vmem>>, vector<16x64xf32>
    %c0_198 = arith.constant 0 : index
    %c0_199 = arith.constant 0 : index
    %c0_200 = arith.constant 0 : index
    %255 = vector.load %arg5[%c0_198, %c0_199, %c0_200] : memref<6x1x64xf32, #tpu.memory_space<vmem>>, vector<1x1x64xf32>
    %256 = vector.shape_cast %255 : vector<1x1x64xf32> to vector<1x64xf32>
    %257 = vector.broadcast %256 : vector<1x64xf32> to vector<16x64xf32>
    %258 = arith.mulf %254, %257 : vector<16x64xf32>
    %259 = arith.truncf %258 : vector<16x64xf32> to vector<16x64xbf16>
    %c0_201 = arith.constant 0 : index
    %c0_202 = arith.constant 0 : index
    %260 = vector.load %arg22[%c0_201, %c0_202] : memref<576x64xbf16, #tpu.memory_space<vmem>>, vector<16x64xbf16>
    tpu.vector_store %arg22[%c0_201, %c0_202], %259 {strides = array<i32>} : memref<576x64xbf16, #tpu.memory_space<vmem>>, vector<16x64xbf16>,
    %c0_203 = arith.constant 0 : index
    %c1_204 = arith.constant 1 : index
    %261 = vector.load %arg21[%c0_203, %c1_204] : memref<64x82xf32, #tpu.memory_space<vmem>>, vector<16x64xf32>
    %262 = arith.truncf %261 : vector<16x64xf32> to vector<16x64xbf16>
    %c16_205 = arith.constant 16 : index
    %c0_206 = arith.constant 0 : index
    %263 = vector.load %arg22[%c16_205, %c0_206] : memref<576x64xbf16, #tpu.memory_space<vmem>>, vector<16x64xbf16>
    tpu.vector_store %arg22[%c16_205, %c0_206], %262 {strides = array<i32>} : memref<576x64xbf16, #tpu.memory_space<vmem>>, vector<16x64xbf16>,
    %c0_207 = arith.constant 0 : index
    %c2_208 = arith.constant 2 : index
    %264 = vector.load %arg21[%c0_207, %c2_208] : memref<64x82xf32, #tpu.memory_space<vmem>>, vector<16x64xf32>
    %c1_209 = arith.constant 1 : index
    %c0_210 = arith.constant 0 : index
    %c0_211 = arith.constant 0 : index
    %265 = vector.load %arg5[%c1_209, %c0_210, %c0_211] : memref<6x1x64xf32, #tpu.memory_space<vmem>>, vector<1x1x64xf32>
    %266 = vector.shape_cast %265 : vector<1x1x64xf32> to vector<1x64xf32>
    %267 = vector.broadcast %266 : vector<1x64xf32> to vector<16x64xf32>
    %268 = arith.mulf %264, %267 : vector<16x64xf32>
    %269 = arith.truncf %268 : vector<16x64xf32> to vector<16x64xbf16>
    %c32_212 = arith.constant 32 : index
    %c0_213 = arith.constant 0 : index
    %270 = vector.load %arg22[%c32_212, %c0_213] : memref<576x64xbf16, #tpu.memory_space<vmem>>, vector<16x64xbf16>
    tpu.vector_store %arg22[%c32_212, %c0_213], %269 {strides = array<i32>} : memref<576x64xbf16, #tpu.memory_space<vmem>>, vector<16x64xbf16>,
    %c0_214 = arith.constant 0 : index
    %c8_215 = arith.constant 8 : index
    %271 = vector.load %arg21[%c0_214, %c8_215] : memref<64x82xf32, #tpu.memory_space<vmem>>, vector<16x64xf32>
    %c2_216 = arith.constant 2 : index
    %c0_217 = arith.constant 0 : index
    %c0_218 = arith.constant 0 : index
    %272 = vector.load %arg5[%c2_216, %c0_217, %c0_218] : memref<6x1x64xf32, #tpu.memory_space<vmem>>, vector<1x1x64xf32>
    %273 = vector.shape_cast %272 : vector<1x1x64xf32> to vector<1x64xf32>
    %274 = vector.broadcast %273 : vector<1x64xf32> to vector<16x64xf32>
    %275 = arith.mulf %271, %274 : vector<16x64xf32>
    %276 = arith.truncf %275 : vector<16x64xf32> to vector<16x64xbf16>
    %c48_219 = arith.constant 48 : index
    %c0_220 = arith.constant 0 : index
    %277 = vector.load %arg22[%c48_219, %c0_220] : memref<576x64xbf16, #tpu.memory_space<vmem>>, vector<16x64xbf16>
    tpu.vector_store %arg22[%c48_219, %c0_220], %276 {strides = array<i32>} : memref<576x64xbf16, #tpu.memory_space<vmem>>, vector<16x64xbf16>,
    %c0_221 = arith.constant 0 : index
    %c9_222 = arith.constant 9 : index
    %278 = vector.load %arg21[%c0_221, %c9_222] : memref<64x82xf32, #tpu.memory_space<vmem>>, vector<16x64xf32>
    %279 = arith.truncf %278 : vector<16x64xf32> to vector<16x64xbf16>
    %c64_223 = arith.constant 64 : index
    %c0_224 = arith.constant 0 : index
    %280 = vector.load %arg22[%c64_223, %c0_224] : memref<576x64xbf16, #tpu.memory_space<vmem>>, vector<16x64xbf16>
    tpu.vector_store %arg22[%c64_223, %c0_224], %279 {strides = array<i32>} : memref<576x64xbf16, #tpu.memory_space<vmem>>, vector<16x64xbf16>,
    %c0_225 = arith.constant 0 : index
    %c10_226 = arith.constant 10 : index
    %281 = vector.load %arg21[%c0_225, %c10_226] : memref<64x82xf32, #tpu.memory_space<vmem>>, vector<16x64xf32>
    %c3_227 = arith.constant 3 : index
    %c0_228 = arith.constant 0 : index
    %c0_229 = arith.constant 0 : index
    %282 = vector.load %arg5[%c3_227, %c0_228, %c0_229] : memref<6x1x64xf32, #tpu.memory_space<vmem>>, vector<1x1x64xf32>
    %283 = vector.shape_cast %282 : vector<1x1x64xf32> to vector<1x64xf32>
    %284 = vector.broadcast %283 : vector<1x64xf32> to vector<16x64xf32>
    %285 = arith.mulf %281, %284 : vector<16x64xf32>
    %286 = arith.truncf %285 : vector<16x64xf32> to vector<16x64xbf16>
    %c80_230 = arith.constant 80 : index
    %c0_231 = arith.constant 0 : index
    %287 = vector.load %arg22[%c80_230, %c0_231] : memref<576x64xbf16, #tpu.memory_space<vmem>>, vector<16x64xbf16>
    tpu.vector_store %arg22[%c80_230, %c0_231], %286 {strides = array<i32>} : memref<576x64xbf16, #tpu.memory_space<vmem>>, vector<16x64xbf16>,
    %c0_232 = arith.constant 0 : index
    %c16_233 = arith.constant 16 : index
    %288 = vector.load %arg21[%c0_232, %c16_233] : memref<64x82xf32, #tpu.memory_space<vmem>>, vector<16x64xf32>
    %c4_234 = arith.constant 4 : index
    %c0_235 = arith.constant 0 : index
    %c0_236 = arith.constant 0 : index
    %289 = vector.load %arg5[%c4_234, %c0_235, %c0_236] : memref<6x1x64xf32, #tpu.memory_space<vmem>>, vector<1x1x64xf32>
    %290 = vector.shape_cast %289 : vector<1x1x64xf32> to vector<1x64xf32>
    %291 = vector.broadcast %290 : vector<1x64xf32> to vector<16x64xf32>
    %292 = arith.mulf %288, %291 : vector<16x64xf32>
    %293 = arith.truncf %292 : vector<16x64xf32> to vector<16x64xbf16>
    %c96_237 = arith.constant 96 : index
    %c0_238 = arith.constant 0 : index
    %294 = vector.load %arg22[%c96_237, %c0_238] : memref<576x64xbf16, #tpu.memory_space<vmem>>, vector<16x64xbf16>
    tpu.vector_store %arg22[%c96_237, %c0_238], %293 {strides = array<i32>} : memref<576x64xbf16, #tpu.memory_space<vmem>>, vector<16x64xbf16>,
    %c0_239 = arith.constant 0 : index
    %c17_240 = arith.constant 17 : index
    %295 = vector.load %arg21[%c0_239, %c17_240] : memref<64x82xf32, #tpu.memory_space<vmem>>, vector<16x64xf32>
    %296 = arith.truncf %295 : vector<16x64xf32> to vector<16x64xbf16>
    %c112_241 = arith.constant 112 : index
    %c0_242 = arith.constant 0 : index
    %297 = vector.load %arg22[%c112_241, %c0_242] : memref<576x64xbf16, #tpu.memory_space<vmem>>, vector<16x64xbf16>
    tpu.vector_store %arg22[%c112_241, %c0_242], %296 {strides = array<i32>} : memref<576x64xbf16, #tpu.memory_space<vmem>>, vector<16x64xbf16>,
    %c0_243 = arith.constant 0 : index
    %c18_244 = arith.constant 18 : index
    %298 = vector.load %arg21[%c0_243, %c18_244] : memref<64x82xf32, #tpu.memory_space<vmem>>, vector<16x64xf32>
    %c5_245 = arith.constant 5 : index
    %c0_246 = arith.constant 0 : index
    %c0_247 = arith.constant 0 : index
    %299 = vector.load %arg5[%c5_245, %c0_246, %c0_247] : memref<6x1x64xf32, #tpu.memory_space<vmem>>, vector<1x1x64xf32>
    %300 = vector.shape_cast %299 : vector<1x1x64xf32> to vector<1x64xf32>
    %301 = vector.broadcast %300 : vector<1x64xf32> to vector<16x64xf32>
    %302 = arith.mulf %298, %301 : vector<16x64xf32>
    %303 = arith.truncf %302 : vector<16x64xf32> to vector<16x64xbf16>
    %c128_248 = arith.constant 128 : index
    %c0_249 = arith.constant 0 : index
    %304 = vector.load %arg22[%c128_248, %c0_249] : memref<576x64xbf16, #tpu.memory_space<vmem>>, vector<16x64xbf16>
    tpu.vector_store %arg22[%c128_248, %c0_249], %303 {strides = array<i32>} : memref<576x64xbf16, #tpu.memory_space<vmem>>, vector<16x64xbf16>,
    %c0_250 = arith.constant 0 : index
    %c0_251 = arith.constant 0 : index
    %305 = vector.load %arg14[%c0_250, %c0_251] : memref<16x144xbf16, #tpu.memory_space<vmem>>, vector<16x144xbf16>
    %c0_252 = arith.constant 0 : index
    %c0_253 = arith.constant 0 : index
    %306 = vector.load %arg22[%c0_252, %c0_253] : memref<576x64xbf16, #tpu.memory_space<vmem>>, vector<144x64xbf16>
    %cst_254 = arith.constant dense<0.000000e+00> : vector<16x64xf32>
    %307 = tpu.matmul %305, %306, %cst_254 {dimension_numbers = #tpu.dot_dimension_numbers<[1], [0], [0], [1], [0, 0, 1, 1], [], []>} : vector<16x144xbf16>, vector<144x64xbf16>, vector<16x64xf32> -> vector<16x64xf32>
    %c0_255 = arith.constant 0 : index
    %c0_256 = arith.constant 0 : index
    %308 = vector.load %arg15[%c0_255, %c0_256] : memref<16x1xf32, #tpu.memory_space<vmem>>, vector<16x1xf32>
    %309 = vector.broadcast %308 : vector<16x1xf32> to vector<16x64xf32>
    %310 = arith.addf %307, %309 : vector<16x64xf32>
    %cst_257 = arith.constant 0.000000e+00 : f32
    %311 = vector.broadcast %cst_257 : f32 to vector<16x64xf32>
    %312 = arith.maximumf %310, %311 : vector<16x64xf32>
    %c0_258 = arith.constant 0 : index
    %c0_259 = arith.constant 0 : index
    %313 = vector.load %arg16[%c0_258, %c0_259] : memref<4x16xbf16, #tpu.memory_space<vmem>>, vector<4x16xbf16>
    %314 = arith.addf %170, %312 : vector<16x64xf32>
    %315 = arith.truncf %314 : vector<16x64xf32> to vector<16x64xbf16>
    %cst_260 = arith.constant dense<0.000000e+00> : vector<4x64xf32>
    %316 = tpu.matmul %313, %315, %cst_260 {dimension_numbers = #tpu.dot_dimension_numbers<[1], [0], [0], [1], [0, 0, 1, 1], [], []>} : vector<4x16xbf16>, vector<16x64xbf16>, vector<4x64xf32> -> vector<4x64xf32>
    %c0_261 = arith.constant 0 : index
    %c0_262 = arith.constant 0 : index
    %317 = vector.load %arg17[%c0_261, %c0_262] : memref<4x1xf32, #tpu.memory_space<vmem>>, vector<4x1xf32>
    %318 = vector.broadcast %317 : vector<4x1xf32> to vector<4x64xf32>
    %319 = arith.addf %316, %318 : vector<4x64xf32>
    %320 = arith.truncf %319 : vector<4x64xf32> to vector<4x64xbf16>
    %c0_263 = arith.constant 0 : index
    %c0_264 = arith.constant 0 : index
    %321 = vector.load %arg18[%c0_263, %c0_264] : memref<64x256xbf16, #tpu.memory_space<vmem>>, vector<64x256xbf16>
    %cst_265 = arith.constant dense<0.000000e+00> : vector<4x256xf32>
    %322 = tpu.matmul %320, %321, %cst_265 {dimension_numbers = #tpu.dot_dimension_numbers<[1], [0], [0], [1], [0, 0, 1, 1], [], []>} : vector<4x64xbf16>, vector<64x256xbf16>, vector<4x256xf32> -> vector<4x256xf32>
    %323 = arith.truncf %322 : vector<4x256xf32> to vector<4x256xbf16>
    %c0_266 = arith.constant 0 : index
    %c0_267 = arith.constant 0 : index
    %324 = vector.load %arg19[%c0_266, %c0_267] : memref<256x1024xbf16, #tpu.memory_space<vmem>>, vector<256x1024xbf16>
    %cst_268 = arith.constant dense<0.000000e+00> : vector<4x1024xf32>
    %325 = tpu.matmul %323, %324, %cst_268 {dimension_numbers = #tpu.dot_dimension_numbers<[1], [0], [0], [1], [0, 0, 1, 1], [], []>} : vector<4x256xbf16>, vector<256x1024xbf16>, vector<4x1024xf32> -> vector<4x1024xf32>
    %c0_269 = arith.constant 0 : index
    %c0_270 = arith.constant 0 : index
    %c0_271 = arith.constant 0 : index
    %326 = vector.load %arg20[%c0_269, %c0_270, %c0_271] : memref<1x4x1024xf32, #tpu.memory_space<vmem>>, vector<1x4x1024xf32>
    %327 = vector.shape_cast %326 : vector<1x4x1024xf32> to vector<4x1024xf32>
    %328 = vector.shape_cast %325 : vector<4x1024xf32> to vector<1x4x1024xf32>
    tpu.vector_store %arg20[%c0_269, %c0_270, %c0_271], %328 {strides = array<i32>} : memref<1x4x1024xf32, #tpu.memory_space<vmem>>, vector<1x4x1024xf32>,
    return
  }
  func.func @transform_0(%arg0: i32) -> (i32, i32, i32) {
    %c0_i32 = arith.constant 0 : i32
    %c0_i32_0 = arith.constant 0 : i32
    %c0_i32_1 = arith.constant 0 : i32
    return %arg0, %c0_i32, %c0_i32_0 : i32, i32, i32
  }
  func.func @transform_1(%arg0: i32) -> i32 {
    %c0_i32 = arith.constant 0 : i32
    %c0_i32_0 = arith.constant 0 : i32
    return %c0_i32 : i32
  }
  func.func @transform_2(%arg0: i32) -> (i32, i32) {
    %c0_i32 = arith.constant 0 : i32
    %c0_i32_0 = arith.constant 0 : i32
    %c0_i32_1 = arith.constant 0 : i32
    return %c0_i32, %c0_i32_0 : i32, i32
  }
  func.func @transform_3(%arg0: i32) -> (i32, i32) {
    %c0_i32 = arith.constant 0 : i32
    %c0_i32_0 = arith.constant 0 : i32
    %c0_i32_1 = arith.constant 0 : i32
    return %c0_i32, %c0_i32_0 : i32, i32
  }
  func.func @transform_4(%arg0: i32) -> (i32, i32, i32) {
    %c0_i32 = arith.constant 0 : i32
    %c0_i32_0 = arith.constant 0 : i32
    %c0_i32_1 = arith.constant 0 : i32
    %c0_i32_2 = arith.constant 0 : i32
    return %c0_i32, %c0_i32_0, %c0_i32_1 : i32, i32, i32
  }
  func.func @transform_5(%arg0: i32) -> (i32, i32) {
    %c0_i32 = arith.constant 0 : i32
    %c0_i32_0 = arith.constant 0 : i32
    %c0_i32_1 = arith.constant 0 : i32
    return %c0_i32, %c0_i32_0 : i32, i32
  }
  func.func @transform_6(%arg0: i32) -> (i32, i32) {
    %c0_i32 = arith.constant 0 : i32
    %c0_i32_0 = arith.constant 0 : i32
    %c0_i32_1 = arith.constant 0 : i32
    return %c0_i32, %c0_i32_0 : i32, i32
  }
  func.func @transform_7(%arg0: i32) -> (i32, i32) {
    %c0_i32 = arith.constant 0 : i32
    %c0_i32_0 = arith.constant 0 : i32
    %c0_i32_1 = arith.constant 0 : i32
    return %c0_i32, %c0_i32_0 : i32, i32
  }
  func.func @transform_8(%arg0: i32) -> (i32, i32) {
    %c0_i32 = arith.constant 0 : i32
    %c0_i32_0 = arith.constant 0 : i32
    %c0_i32_1 = arith.constant 0 : i32
    return %c0_i32, %c0_i32_0 : i32, i32
  }
  func.func @transform_9(%arg0: i32) -> (i32, i32) {
    %c0_i32 = arith.constant 0 : i32
    %c0_i32_0 = arith.constant 0 : i32
    %c0_i32_1 = arith.constant 0 : i32
    return %c0_i32, %c0_i32_0 : i32, i32
  }
  func.func @transform_10(%arg0: i32) -> (i32, i32) {
    %c0_i32 = arith.constant 0 : i32
    %c0_i32_0 = arith.constant 0 : i32
    %c0_i32_1 = arith.constant 0 : i32
    return %c0_i32, %c0_i32_0 : i32, i32
  }
  func.func @transform_11(%arg0: i32) -> (i32, i32) {
    %c0_i32 = arith.constant 0 : i32
    %c0_i32_0 = arith.constant 0 : i32
    %c0_i32_1 = arith.constant 0 : i32
    return %c0_i32, %c0_i32_0 : i32, i32
  }
  func.func @transform_12(%arg0: i32) -> (i32, i32) {
    %c0_i32 = arith.constant 0 : i32
    %c0_i32_0 = arith.constant 0 : i32
    %c0_i32_1 = arith.constant 0 : i32
    return %c0_i32, %c0_i32_0 : i32, i32
  }
  func.func @transform_13(%arg0: i32) -> (i32, i32) {
    %c0_i32 = arith.constant 0 : i32
    %c0_i32_0 = arith.constant 0 : i32
    %c0_i32_1 = arith.constant 0 : i32
    return %c0_i32, %c0_i32_0 : i32, i32
  }
  func.func @transform_14(%arg0: i32) -> (i32, i32) {
    %c0_i32 = arith.constant 0 : i32
    %c0_i32_0 = arith.constant 0 : i32
    %c0_i32_1 = arith.constant 0 : i32
    return %c0_i32, %c0_i32_0 : i32, i32
  }
  func.func @transform_15(%arg0: i32) -> (i32, i32) {
    %c0_i32 = arith.constant 0 : i32
    %c0_i32_0 = arith.constant 0 : i32
    %c0_i32_1 = arith.constant 0 : i32
    return %c0_i32, %c0_i32_0 : i32, i32
  }
  func.func @transform_16(%arg0: i32) -> (i32, i32) {
    %c0_i32 = arith.constant 0 : i32
    %c0_i32_0 = arith.constant 0 : i32
    %c0_i32_1 = arith.constant 0 : i32
    return %c0_i32, %c0_i32_0 : i32, i32
  }
  func.func @transform_17(%arg0: i32) -> (i32, i32) {
    %c0_i32 = arith.constant 0 : i32
    %c0_i32_0 = arith.constant 0 : i32
    %c0_i32_1 = arith.constant 0 : i32
    return %c0_i32, %c0_i32_0 : i32, i32
  }
  func.func @transform_18(%arg0: i32) -> (i32, i32) {
    %c0_i32 = arith.constant 0 : i32
    %c0_i32_0 = arith.constant 0 : i32
    %c0_i32_1 = arith.constant 0 : i32
    return %c0_i32, %c0_i32_0 : i32, i32
  }
  func.func @transform_19(%arg0: i32) -> (i32, i32, i32) {
    %c0_i32 = arith.constant 0 : i32
    %c0_i32_0 = arith.constant 0 : i32
    %c0_i32_1 = arith.constant 0 : i32
    return %arg0, %c0_i32, %c0_i32_0 : i32, i32, i32
  }
}

</mosaic_0001>

<bundles_post_ra>
// kernel: tpu_custom_call.1
= control target key start
LH: loop header
LB: loop body
LE: loop exit
PB: predicated region body
PF: predicated region fallthrough
CT: control target
= control target key end

     0   :  { %s7877_s0 = inlined_call_operand.vmem [shape: f32[2,3,64], index: 0, kind: input, shape index: {}]   ;;  %s7878_s1 = inlined_call_operand.vmem [shape: f32[2], index: 1, kind: input, shape index: {}]   ;;  %s7879_s2 = inlined_call_operand.vmem [shape: bf16[64,3], index: 2, kind: input, shape index: {}]   ;;  %s7880_s3 = inlined_call_operand.vmem [shape: f32[64,1], index: 3, kind: input, shape index: {}]   ;;  %s7881_s4 = inlined_call_operand.vmem [shape: f32[6,1,64], index: 4, kind: input, shape index: {}]   ;;  %s7882_s5 = inlined_call_operand.vmem [shape: bf16[16,576], index: 5, kind: input, shape index: {}]   ;;  %s7883_s6 = inlined_call_operand.vmem [shape: f32[16,1], index: 6, kind: input, shape index: {}]   ;;  %s7884_s7 = inlined_call_operand.vmem [shape: bf16[32,16], index: 7, kind: input, shape index: {}]   ;;  %s7885_s8 = inlined_call_operand.vmem [shape: f32[32,1], index: 8, kind: input, shape index: {}]   ;;  %s7886_s9 = inlined_call_operand.vmem [shape: bf16[16,144], index: 9, kind: input, shape index: {}]   ;;  %s7887_s10 = inlined_call_operand.vmem [shape: f32[16,1], index: 10, kind: input, shape index: {}]   ;;  %s7888_s11 = inlined_call_operand.hbm [shape: bf16[16,576], index: 11, kind: input, shape index: {}]   ;;  %s7889_s12 = inlined_call_operand.vmem [shape: f32[16,1], index: 12, kind: input, shape index: {}]   ;;  %s7890_s13 = inlined_call_operand.vmem [shape: bf16[16,144], index: 13, kind: input, shape index: {}]   ;;  %s7891_s14 = inlined_call_operand.vmem [shape: f32[16,1], index: 14, kind: input, shape index: {}]   ;;  %s7892_s15 = inlined_call_operand.vmem [shape: bf16[4,16], index: 15, kind: input, shape index: {}]   ;;  %s7893_s16 = inlined_call_operand.vmem [shape: f32[4,1], index: 16, kind: input, shape index: {}]   ;;  %s7894_s17 = inlined_call_operand.vmem [shape: bf16[64,256], index: 17, kind: input, shape index: {}]   ;;  %s7895_s18 = inlined_call_operand.hbm [shape: bf16[256,1024], index: 18, kind: input, shape index: {}]   ;;  %s7896_s19 = inlined_call_operand.hbm [shape: f32[2,4,1024], index: 19, kind: output, shape index: {}]  }
   0x1   :  { %7932 = sst [smem:[#allocation23_spill]] %s7877_s0 }
   0x2   :  { %7933 = sst [smem:[#allocation24_spill]] %s7878_s1 }
   0x3   :  { %7934 = sst [smem:[#allocation25_spill]] %s7879_s2 }
   0x4   :  { %7935 = sst [smem:[#allocation26_spill]] %s7880_s3 }
   0x5   :  { %7936 = sst [smem:[#allocation27_spill]] %s7882_s5 }
   0x6   :  { %7937 = sst [smem:[#allocation28_spill]] %s7883_s6 }
   0x7   :  { %7938 = sst [smem:[#allocation29_spill]] %s7884_s7 }
   0x8   :  { %7939 = sst [smem:[#allocation30_spill]] %s7888_s11 }
   0x9   :  { %7940 = sst [smem:[#allocation31_spill]] %s7892_s15 }
   0xa   :  { %7941 = sst [smem:[#allocation32_spill]] %s7896_s19 }
   0xb   :  { %24 = vsyncpa [#allocation7], 0 }
   0xc   :  { %25 = vsyncpa [#allocation5], 0 }
   0xd   :  { %26 = vsyncpa [#allocation10], 0 }
   0xe   :  { %27 = vsyncpa [#allocation6], 0 }
   0xf   :  { %29 = vsyncpa [#allocation6 + $0x1], 0  ;;  %s6600_s0 = smov 0   ;;  %s6602_s30 = smov 0  }
  0x10   :  { %s6604_s20 = smov 0   ;;  %s6606_s21 = smov 0  }
  0x11 LB: > { %7942 = sst [smem:[#allocation16_spill]] %s6462_s0  ;;  %s6621_s1 = sadd.s32 4294967295, %s6474_s21   ;;  %s6474_s21 = sphi %s6606_s21, %s7982_s21   ;;  %s6470_s20 = sphi %s6604_s20, %s7984_s20   ;;  %s6466_s30 = sphi %s6602_s30, %s7986_s30   ;;  %s6462_s0 = sphi %s6600_s0, %s7985_s0  }
  0x12   : > { %7943 = sst [smem:[#allocation17_spill]] %s6470_s20  ;;  %s4889_s22 = sadd.s32 4294967294, %s6474_s21  }
  0x13   : > { %7944 = sst [smem:[#allocation18_spill]] %s6474_s21  ;;  %s6625_s2 = sadd.s32 1, %s6474_s21  }
  0x14   : > { %7945 = sst [smem:[#allocation19_spill]] %s6625_s2  ;;  %s446_s23 = sadd.s32 1, %s6470_s20 }
  0x15   : > { %s443_s24 = ssub.s32 %s6474_s21, %s6625_s2  ;;  %p456_p0 = scmp.ne.s32.totalorder %s6470_s20, %s6466_s30 }
  0x16   : > { %p444_p1 = scmp.eq.s32.totalorder %s443_s24, 0  ;;  %p457_p2 = scmp.eq.s32.totalorder %s6621_s1, 1 }
  0x17   : > { %p462_p3 = scmp.ne.s32.totalorder %s6466_s30, %s6462_s0  ;;  %p463_p4 = scmp.eq.s32.totalorder %s4889_s22, 1 }
  0x18   : > { %s6636_s25 = scalar_select %p444_p1, %s6470_s20, %s446_s23  }
  0x19   : > { %p6638_p5 = por %p457_p2, %p456_p0  ;;  %p6642_p6 = por %p463_p4, %p462_p3 }
  0x1a   : > { %7946 = sst [smem:[#allocation20_spill]] %s6636_s25  ;;  %p4890_p7 = scmp.ge.s32.totalorder %s6474_s21, 1 }
  0x1b   : > { %s7947_s3 = scalar_select %p6638_p5, 1, 0 }
  0x1c   : > { %s7949_s26 = scalar_select %p6642_p6, 1, 0 }
  0x1d   : > { %7948 = sst [smem:[#allocation21_spill]] %s7947_s3  ;;  %p470_p8 = scmp.lt.s32.totalorder %s6474_s21, 3 }
  0x1e   : > { %7950 = sst [smem:[#allocation22_spill]] %s7949_s26  ;;  %p4891_p9 = scmp.ne.s32.totalorder %s6621_s1, 0 }
  0x1f   : > { %p6207_p10 = scmp.eq.s32.totalorder %s6621_s1, 0  ;;  %p6650_p11 = pnand %p4890_p7, %p470_p8 }
  0x20   : > { %s7952_s22 = sld [smem:[#allocation24_spill]]  ;;  %s6476_s26 = smov [#allocation8]  }
  0x21   : > { %p6193_p12 = pneg %p6650_p11  ;;  %s7953_s11 = sld [smem:[#allocation30_spill]] }
  0x22   : > { %s520_s28 = sshll.u32 %s6476_s26, 4  ;;  %s6477_s29 = smov [#allocation4]   ;;  %s521_s28 = int_to_ptr.vmem [resolvable:$true] %s520_s28 }
  0x23   : > { %p6664_p13 = pnand %p6207_p10, %p6193_p12  ;;  %s6479_s0 = smov 20  }
  0x24   : > { %s6480_s21 = smov [#allocation9]   ;;  %s6481_s19 = smov 512  }
  0x25   : > { %s552_s3 = sshll.u32 %s6480_s21, 4  ;;  %s6482_s15 = smov 32   ;;  %s553_s3 = int_to_ptr.vmem [resolvable:$true] %s552_s3 }
  0x26   : > { %s482_s23 = sshll.u32 %s7952_s22, 4  ;;  %s6478_s22 = smov 320   ;;  %s483_s23 = int_to_ptr.vmem [resolvable:$true] %s482_s23 }
  0x27   : > { %s518_s20 = sshll.u32 %s7953_s11, 4  ;;  %s550_s11 = sshll.u32 %s7895_s18, 4  ;;  %s519_s20 = int_to_ptr.hbm [resolvable:$true] %s518_s20  ;;  %s551_s11 = int_to_ptr.hbm [resolvable:$true] %s550_s11 }
  0x28   : > { %6196 = dma.vmem_to_smem (!%p6664_p13), %s483_s23, 16, %s6477_s29, [#allocation7]  }
  0x29   : > { %6199 = dma.hbm_to_vmem [thread:$0]  (!%p6664_p13), %s519_s20, 640, %s521_s28, [#allocation5], %s6478_s22, %s6478_s22, %s6479_s0  }
  0x2a   : > { %6202 = dma.hbm_to_vmem [thread:$0]  (!%p6664_p13), %s551_s11, 16384, %s553_s3, [#allocation10], %s6481_s19, %s6481_s19, %s6482_s15  }
  0x2b   : > { %575 = sbr.rel (%p6650_p11) target bundleno = 3537 (0xdd1), region = 96 }
  0x30   : > { %6445 = dma.done.wait (%p6207_p10), [#allocation7], 16  }
  0x31   : > { %6447 = vsyncadd (%p6207_p10), [#allocation7], 4294967280 }
  0x32   : > { %6449 = dma.done.wait (%p6207_p10), [#allocation5], 640  }
  0x33   : > { %6451 = vsyncadd (%p6207_p10), [#allocation5], 4294966656 }
  0x34   : > { %6453 = dma.done.wait (%p6207_p10), [#allocation10], 16384  }
  0x35   : > { %6455 = vsyncadd (%p6207_p10), [#allocation10], 4294950912 }
  0x36   : > { %592 = sfence }
  0x37   : > { %s7908_s11 = sand.u32 1, %s6466_s30   ;;  %p642_p0 = scmp.lt.s32.totalorder %s6621_s1, 1 }
  0x38   : > { %s4899_s15 = sshll.u32 %s7908_s11, 5  ;;  %s7955_s2 = sld [smem:[#allocation23_spill]] }
  0x39   : > { %s643_s19 = scalar_select %p642_p0, %s6621_s1, 1 }
  0x3a   : > { %s6699_s26 = scalar_lea.vmem [#allocation11], %s4899_s15  ;;  %650 = sbr.rel (%p4891_p9) target bundleno = 72 (0x48), region = 112 }
  0x3b   : > { %s4900_s0 = sshll.u32 %s643_s19, 2 }
  0x3e   : > { %s645_s3 = scalar_lea.vmem %s7955_s2, %s4900_s0 }
  0x3f   : > { %vm651_vm0 = vcmask 670720   ;;  %v6483_v0 = vmov 0.0  }
  0x40   : > { %652 = vst.msk [vmem:[#allocation2] sm:$0xff] %vm651_vm0, %v6483_v0 }
  0x41   : > { %653 = vst.msk [vmem:[#allocation2 + $0x8] sm:$0xff] %vm651_vm0, %v6483_v0 }
  0x42   : > { %654 = vst.msk [vmem:[#allocation2 + $0x10] sm:$0xff] %vm651_vm0, %v6483_v0 }
  0x43   : > { %655 = vst.msk [vmem:[#allocation2 + $0x18] sm:$0xff] %vm651_vm0, %v6483_v0 }
  0x44   : > { %656 = vst.msk [vmem:[#allocation2 + $0x20] sm:$0xff] %vm651_vm0, %v6483_v0 }
  0x45   : > { %657 = vst.msk [vmem:[#allocation2 + $0x28] sm:$0xff] %vm651_vm0, %v6483_v0 }
  0x46   : > { %658 = vst.msk [vmem:[#allocation2 + $0x30] sm:$0xff] %vm651_vm0, %v6483_v0 }
  0x47   : > { %659 = vst.msk [vmem:[#allocation2 + $0x38] sm:$0xff] %vm651_vm0, %v6483_v0 }
  0x48 PF: > { %s7956_s28 = sld [smem:[#allocation26_spill]]  ;;  %v668_v2 = vld [vmem:[%s645_s3] sm:$0x7]  ;;  %vm751_vm1 = vcmask 1040384   ;;  %vm752_vm2 = vcmask 1041408   ;;  %v6484_v3 = vmov 0  }
  0x49   : > { %6270 = vset.pattern.permute.xlu0 %v6484_v3  ;;  %v669_v4 = vpack.c.bf16 %v668_v2, %v668_v2  ;;  %6271 = vset.pattern.permute.xlu1 %v6484_v3  ;;  %v6485_v6 = vmov 65535   ;;  %s7957_s15 = sld [smem:[#allocation25_spill]]  ;;  %vm738_vm3 = vcmask 23552   ;;  %v6273_v20 = vld [vmem:[%s7881_s4 + $0x1] ss:$0 sm:$0xff]  ;;  %s7931_s29 = smov 2  }
  0x4a   : > { %v753_v7 = vsel %vm751_vm1, 4294967295, %v6485_v6  ;;  %6272 = vset.pattern.permute.xlu2 %v6484_v3  ;;  %v6274_v21 = vld [vmem:[%s7881_s4 + $0x5] ss:$0 sm:$0xff]  ;;  %s7925_s24 = smov 18   ;;  %v6275_v23 = vld [vmem:[%s7881_s4 + $0x2] ss:$0 sm:$0xff] }
  0x4b   : > { %v754_v8 = vsel %vm752_vm2, %v753_v7, 0  ;;  %s7923_s20 = smov 8   ;;  %v6276_v26 = vld [vmem:[%s7881_s4 + $0x3] ss:$0 sm:$0xff]  ;;  %s7924_s3 = smov 10   ;;  %vm819_vm4 = vcmask 597064  }
  0x4c   : > { %v756_v10 = vand.u32 %v754_v8, %v669_v4  ;;  %v6277_v31 = vld [vmem:[%s7881_s4 + $0x4] ss:$0 sm:$0xff]  ;;  %s7909_s22 = smov 9   ;;  %s7926_s25 = smov 16   ;;  %v6786_v54 = vld [vmem:[%s7881_s4] ss:$0 sm:$0xff] }
  0x4d   : > { %vm856_vm5 = vcmask 519168   ;;  %s7919_s21 = smov 111   ;;  %s7927_s2 = smov 127   ;;  %vm1719_vm6 = vcmask 523264   ;;  %vm1834_vm7 = vcmask 130048   ;;  %vm1892_vm8 = vcmask 1043456  }
  0x4e   : > { %v676_v1 = vld [vmem:[%s7956_s28 + $0x30] sm:$0xff]  ;;  %v674_v5 = vld [vmem:[%s7956_s28 + $0x20] sm:$0xff]  ;;  %v677_v11 = vld [vmem:[%s7956_s28 + $0x38] sm:$0xff]  ;;  %765 = vmatpush.bf16.msra.mxu0 %v756_v10  ;;  %s7917_s27 = smov 120   ;;  %s7911_s23 = smov 126   ;;  %vm1879_vm9 = vcmask 64512  }
  0x4f   : > { %710 = vperm.xlu0 %6270, %v676_v1   ;;  %700 = vperm.xlu1 %6271, %v674_v5   ;;  %v5932_v9 = vld [vmem:[%s7957_s15] sm:$0xff]  ;;  %v675_v12 = vld [vmem:[%s7956_s28 + $0x28] sm:$0xff]  ;;  %v672_v16 = vld [vmem:[%s7956_s28 + $0x10] sm:$0xff]  ;;  %s7929_s19 = smov 118   ;;  %s7913_s0 = smov 119  }
  0x50   : > { %v670_v13 = vld [vmem:[%s7956_s28] sm:$0xff]  ;;  %v671_v14 = vld [vmem:[%s7956_s28 + $0x8] sm:$0xff]  ;;  %690 = vperm.xlu2 %6272, %v672_v16   ;;  %v673_v17 = vld [vmem:[%s7956_s28 + $0x18] sm:$0xff]  ;;  %s7915_s11 = smov 110   ;;  %s7958_s6 = sld [smem:[#allocation28_spill]] }
  0x51   : > { %4918 = vmatmul.msk.bf16.vlgmr.msra.gmra.mxu0 %vm738_vm3, %v5932_v9  ;;  %v5933_v15 = vld [vmem:[%s7957_s15 + $0x8] sm:$0xff]  ;;  %v5934_v18 = vld [vmem:[%s7957_s15 + $0x10] sm:$0xff]  ;;  %v5935_v19 = vld [vmem:[%s7957_s15 + $0x18] sm:$0xff]  ;;  %s7959_s5 = sld [smem:[#allocation27_spill]] }
  0x52   : > { %s7966_s7 = sld [smem:[#allocation29_spill]] }
  0x57   : > { %715 = vperm.xlu0 %6270, %v677_v11   ;;  %705 = vperm.xlu1 %6271, %v675_v12  }
  0x58   : > { %695 = vperm.xlu2 %6272, %v673_v17  }
  0x5f   : > { %680 = vperm.xlu0 %6270, %v670_v13   ;;  %685 = vperm.xlu1 %6271, %v671_v14  }
  0x60   : > { %1004 = vrot.lane.b32.xlu2 %v6275_v23, %s7923_s20 }
  0x61   : > { %4919 = vmatmul.msk.bf16.gmra.mxu0 %vm738_vm3, %v5933_v15 }
  0x67   : > { %933 = vrot.lane.b32.xlu0 %v6273_v20, %s7931_s29  ;;  %1329 = vrot.lane.b32.xlu1 %v6274_v21, %s7925_s24 }
  0x68   : > { %1131 = vrot.lane.b32.xlu2 %v6276_v26, %s7924_s3 }
  0x70   : > { %1202 = vrot.lane.b32.xlu2 %v6277_v31, %s7926_s25 }
  0x71   : > { %4920 = vmatmul.msk.bf16.gmra.mxu0 %vm738_vm3, %v5934_v18 }
  0x81   : > { %4921 = vmatmul.msk.bf16.gmra.mxu0 %vm738_vm3, %v5935_v19 }
  0xaa   : > { %v691_v35 = vpop.permute.xlu2 %690 }
  0xb2   : > { %v696_v38 = vpop.permute.xlu2 %695 }
  0xba   : > { %v6771_v49 = vpop.permute.xlu2 %1004 }
  0xc1   : > { %v711_v22 = vpop.permute.xlu0 %710  ;;  %v701_v24 = vpop.permute.xlu1 %700 }
  0xc2   : > { %v6775_v51 = vpop.permute.xlu2 %1131 }
  0xc9   : > { %v716_v25 = vpop.permute.xlu0 %715  ;;  %v706_v27 = vpop.permute.xlu1 %705 }
  0xca   : > { %v6788_v55 = vpop.permute.xlu2 %1202 }
  0xce   : > { %v767_v29 = vpop.f32.mrf.mxu0 }
  0xd1   : > { %v681_v28 = vpop.permute.xlu0 %680  ;;  %v686_v32 = vpop.permute.xlu1 %685 }
  0xd2   : > { %v768_v30 = vadd.f32 %v767_v29, %v681_v28 }
  0xd4   : > { %795 = vrot.lane.b32.xlu0 %v768_v30, %s7909_s22 }
  0xd6   : > { %v769_v33 = vpop.f32.mrf.mxu0 }
  0xd7   : > { %v770_v34 = vadd.f32 %v769_v33, %v686_v32 }
  0xd9   : > { %797 = vrot.lane.b32.xlu1 %v770_v34, %s7909_s22  ;;  %v6773_v50 = vpop.permute.xlu0 %933  ;;  %v6777_v52 = vpop.permute.xlu1 %1329 }
  0xde   : > { %v772_v36 = vpop.f32.mrf.mxu0 }
  0xdf   : > { %v773_v37 = vadd.f32 %v772_v36, %v691_v35 }
  0xe1   : > { %799 = vrot.lane.b32.xlu0 %v773_v37, %s7909_s22 }
  0xe6   : > { %v774_v39 = vpop.f32.mrf.mxu0 }
  0xe7   : > { %v775_v40 = vadd.f32 %v774_v39, %v696_v38 }
  0xe9   : > { %801 = vrot.lane.b32.xlu1 %v775_v40, %s7909_s22 }
  0xee   : > { %v777_v41 = vpop.f32.mrf.mxu0 }
  0xef   : > { %v778_v42 = vadd.f32 %v777_v41, %v701_v24 }
  0xf1   : > { %803 = vrot.lane.b32.xlu1 %v778_v42, %s7909_s22 }
  0xf6   : > { %v779_v43 = vpop.f32.mrf.mxu0 }
  0xf7   : > { %v780_v44 = vadd.f32 %v779_v43, %v706_v27 }
  0xf9   : > { %805 = vrot.lane.b32.xlu2 %v780_v44, %s7909_s22 }
  0xfe   : > { %v782_v45 = vpop.f32.mrf.mxu0 }
  0xff   : > { %v783_v46 = vadd.f32 %v782_v45, %v711_v22 }
 0x101   : > { %807 = vrot.lane.b32.xlu2 %v783_v46, %s7909_s22 }
 0x106   : > { %v784_v47 = vpop.f32.mrf.mxu0 }
 0x107   : > { %v785_v48 = vadd.f32 %v784_v47, %v716_v25 }
 0x109   : > { %809 = vrot.lane.b32.xlu0 %v785_v48, %s7909_s22  ;;  %s7921_s22 = smov 112  }
 0x146   : > { %v6779_v53 = vpop.permute.xlu0 %795 }
 0x147   : > { %820 = vst.msk [vmem:[#allocation2] sm:$0xff] %vm819_vm4, %v6779_v53 }
 0x14b   : > { %v6792_v57 = vpop.permute.xlu1 %797 }
 0x14c   : > { %821 = vst.msk [vmem:[#allocation2 + $0x8] sm:$0xff] %vm819_vm4, %v6792_v57 }
 0x14e   : > { %v6790_v56 = vld [vmem:[#allocation2] sm:$0xff] }
 0x14f   : > { %v840_v58 = vmul.f32 %v6786_v54, %v6790_v56  ;;  %v6800_v59 = vpack.c.bf16 %v6790_v56, %v6790_v56  ;;  %v1007_v61 = vmul.f32 %v6771_v49, %v6790_v56  ;;  %v936_v62 = vmul.f32 %v6773_v50, %v6790_v56 }
 0x150   : > { %v1134_v8 = vmul.f32 %v6775_v51, %v6790_v56 }
 0x151   : > { %v848_v60 = vpack.c.bf16 %v840_v58, %v840_v58  ;;  %1285 = vrot.lane.b32.xlu0 %v6800_v59, %s7919_s21  ;;  %889 = vrot.lane.b32.xlu1 %v6800_v59, %s7927_s2  ;;  %v1015_v4 = vpack.c.bf16 %v1007_v61, %v1007_v61  ;;  %v944_v5 = vpack.c.bf16 %v936_v62, %v936_v62 }
 0x152   : > { %v1142_v15 = vpack.c.bf16 %v1134_v8, %v1134_v8 }
 0x153   : > { %857 = vst.msk [vmem:[#allocation3] sm:$0xf] %vm856_vm5, %v848_v60  ;;  %v6811_v63 = vld [vmem:[#allocation2 + $0x8] sm:$0xff]  ;;  %v806_v0 = vpop.permute.xlu2 %805  ;;  %v800_v1 = vpop.permute.xlu0 %799 }
 0x154   : > { %v841_v2 = vmul.f32 %v6786_v54, %v6811_v63  ;;  %825 = vst.msk [vmem:[#allocation2 + $0x28] sm:$0xff] %vm819_vm4, %v806_v0  ;;  %v6818_v3 = vpack.c.bf16 %v6811_v63, %v6811_v63  ;;  %v937_v7 = vmul.f32 %v6773_v50, %v6811_v63  ;;  %v1008_v20 = vmul.f32 %v6771_v49, %v6811_v63 }
 0x155   : > { %822 = vst.msk [vmem:[#allocation2 + $0x10] sm:$0xff] %vm819_vm4, %v800_v1  ;;  %v1135_v32 = vmul.f32 %v6775_v51, %v6811_v63 }
 0x156   : > { %v849_v6 = vpack.c.bf16 %v841_v2, %v841_v2  ;;  %891 = vrot.lane.b32.xlu2 %v6818_v3, %s7927_s2  ;;  %v945_v14 = vpack.c.bf16 %v937_v7, %v937_v7  ;;  %v1016_v28 = vpack.c.bf16 %v1008_v20, %v1008_v20 }
 0x157   : > { %v1143_v37 = vpack.c.bf16 %v1135_v32, %v1135_v32 }
 0x158   : > { %858 = vst.msk [vmem:[#allocation3 + $0x4] sm:$0xf] %vm856_vm5, %v849_v6 }
 0x159   : > { %1031 = vrot.lane.b32.xlu0 %v1015_v4, %s7917_s27  ;;  %960 = vrot.lane.b32.xlu1 %v944_v5, %s7911_s23 }
 0x15b   : > { %v6830_v9 = vld [vmem:[#allocation2 + $0x28] sm:$0xff]  ;;  %v808_v10 = vpop.permute.xlu2 %807  ;;  %v802_v11 = vpop.permute.xlu1 %801 }
 0x15c   : > { %v845_v12 = vmul.f32 %v6786_v54, %v6830_v9  ;;  %v6834_v13 = vld [vmem:[#allocation2 + $0x10] sm:$0xff]  ;;  %826 = vst.msk [vmem:[#allocation2 + $0x30] sm:$0xff] %vm819_vm4, %v808_v10  ;;  %v1274_v47 = vpack.c.bf16 %v6830_v9, %v6830_v9  ;;  %v1139_v61 = vmul.f32 %v6775_v51, %v6830_v9 }
 0x15d   : > { %v842_v16 = vmul.f32 %v6786_v54, %v6834_v13  ;;  %823 = vst.msk [vmem:[#allocation2 + $0x18] sm:$0xff] %vm819_vm4, %v802_v11  ;;  %v1136_v19 = vmul.f32 %v6775_v51, %v6834_v13  ;;  %v1271_v25 = vpack.c.bf16 %v6834_v13, %v6834_v13  ;;  %v1009_v31 = vmul.f32 %v6771_v49, %v6834_v13 }
 0x15e   : > { %v853_v17 = vpack.c.bf16 %v845_v12, %v845_v12  ;;  %962 = vrot.lane.b32.xlu2 %v945_v14, %s7911_s23  ;;  %2336 = vst.msk [vmem:[#allocation2 + $0x28] sm:$0xff] %vm819_vm4, %v806_v0  ;;  %v938_v44 = vmul.f32 %v6773_v50, %v6834_v13  ;;  %v1147_v62 = vpack.c.bf16 %v1139_v61, %v1139_v61 }
 0x15f   : > { %v850_v18 = vpack.c.bf16 %v842_v16, %v842_v16  ;;  %2333 = vst.msk [vmem:[#allocation2 + $0x10] sm:$0xff] %vm819_vm4, %v800_v1  ;;  %v1144_v26 = vpack.c.bf16 %v1136_v19, %v1136_v19  ;;  %v1017_v36 = vpack.c.bf16 %v1009_v31, %v1009_v31  ;;  %v1337_v1 = vmul.f32 %v6777_v52, %v6830_v9 }
 0x160   : > { %862 = vst.msk [vmem:[#allocation3 + $0x14] sm:$0xf] %vm856_vm5, %v853_v17  ;;  %v946_v58 = vpack.c.bf16 %v938_v44, %v938_v44 }
 0x161   : > { %1158 = vrot.lane.b32.xlu0 %v1142_v15, %s7929_s19  ;;  %1287 = vrot.lane.b32.xlu1 %v6818_v3, %s7919_s21  ;;  %859 = vst.msk [vmem:[#allocation3 + $0x8] sm:$0xf] %vm856_vm5, %v850_v18  ;;  %v1345_v4 = vpack.c.bf16 %v1337_v1, %v1337_v1  ;;  %v1012_v18 = vmul.f32 %v6771_v49, %v6830_v9 }
 0x163   : > { %v6852_v21 = vld [vmem:[#allocation2 + $0x30] sm:$0xff]  ;;  %v804_v22 = vpop.permute.xlu1 %803  ;;  %v1020_v20 = vpack.c.bf16 %v1012_v18, %v1012_v18 }
 0x164   : > { %v846_v23 = vmul.f32 %v6786_v54, %v6852_v21  ;;  %v6856_v24 = vld [vmem:[#allocation2 + $0x18] sm:$0xff]  ;;  %824 = vst.msk [vmem:[#allocation2 + $0x20] sm:$0xff] %vm819_vm4, %v804_v22  ;;  %v1077_v8 = vpack.c.bf16 %v6852_v21, %v6852_v21  ;;  %v1013_v12 = vmul.f32 %v6771_v49, %v6852_v21  ;;  %v942_v17 = vmul.f32 %v6773_v50, %v6852_v21 }
 0x165   : > { %v843_v27 = vmul.f32 %v6786_v54, %v6856_v24  ;;  %2337 = vst.msk [vmem:[#allocation2 + $0x30] sm:$0xff] %vm819_vm4, %v808_v10  ;;  %v1272_v35 = vpack.c.bf16 %v6856_v24, %v6856_v24  ;;  %v1010_v39 = vmul.f32 %v6771_v49, %v6856_v24  ;;  %v939_v43 = vmul.f32 %v6773_v50, %v6856_v24 }
 0x166   : > { %v854_v29 = vpack.c.bf16 %v846_v23, %v846_v23  ;;  %1289 = vrot.lane.b32.xlu2 %v1271_v25, %s7919_s21  ;;  %2334 = vst.msk [vmem:[#allocation2 + $0x18] sm:$0xff] %vm819_vm4, %v802_v11  ;;  %v1021_v15 = vpack.c.bf16 %v1013_v12, %v1013_v12  ;;  %v950_v19 = vpack.c.bf16 %v942_v17, %v942_v17 }
 0x167   : > { %v851_v30 = vpack.c.bf16 %v843_v27, %v843_v27  ;;  %v1018_v40 = vpack.c.bf16 %v1010_v39, %v1010_v39  ;;  %v947_v48 = vpack.c.bf16 %v939_v43, %v939_v43  ;;  %v1211_v23 = vmul.f32 %v6788_v55, %v6852_v21 }
 0x168   : > { %863 = vst.msk [vmem:[#allocation3 + $0x18] sm:$0xf] %vm856_vm5, %v854_v29  ;;  %v1338_v43 = vmul.f32 %v6777_v52, %v6852_v21 }
 0x169   : > { %1162 = vrot.lane.b32.xlu0 %v1144_v26, %s7929_s19  ;;  %1033 = vrot.lane.b32.xlu1 %v1016_v28, %s7917_s27  ;;  %860 = vst.msk [vmem:[#allocation3 + $0xc] sm:$0xf] %vm856_vm5, %v851_v30  ;;  %v1219_v26 = vpack.c.bf16 %v1211_v23, %v1211_v23 }
 0x16b   : > { %v6874_v33 = vld [vmem:[#allocation2 + $0x20] sm:$0xff] }
 0x16c   : > { %v844_v34 = vmul.f32 %v6786_v54, %v6874_v33  ;;  %2335 = vst.msk [vmem:[#allocation2 + $0x20] sm:$0xff] %vm819_vm4, %v804_v22  ;;  %v877_v42 = vpack.c.bf16 %v6874_v33, %v6874_v33  ;;  %v1138_v2 = vmul.f32 %v6775_v51, %v6874_v33  ;;  %v1336_v6 = vmul.f32 %v6777_v52, %v6874_v33 }
 0x16d   : > { %v1011_v7 = vmul.f32 %v6771_v49, %v6874_v33  ;;  %v940_v14 = vmul.f32 %v6773_v50, %v6874_v33 }
 0x16e   : > { %v852_v38 = vpack.c.bf16 %v844_v34, %v844_v34  ;;  %1035 = vrot.lane.b32.xlu2 %v1017_v36, %s7917_s27  ;;  %v1146_v5 = vpack.c.bf16 %v1138_v2, %v1138_v2  ;;  %v1344_v10 = vpack.c.bf16 %v1336_v6, %v1336_v6  ;;  %v1140_v36 = vmul.f32 %v6775_v51, %v6852_v21 }
 0x16f   : > { %v1019_v11 = vpack.c.bf16 %v1011_v7, %v1011_v7  ;;  %v948_v16 = vpack.c.bf16 %v940_v14, %v940_v14  ;;  %v1334_v2 = vmul.f32 %v6777_v52, %v6834_v13 }
 0x170   : > { %861 = vst.msk [vmem:[#allocation3 + $0x10] sm:$0xf] %vm856_vm5, %v852_v38 }
 0x171   : > { %1291 = vrot.lane.b32.xlu0 %v1272_v35, %s7919_s21  ;;  %1160 = vrot.lane.b32.xlu1 %v1143_v37, %s7929_s19 }
 0x176   : > { %895 = vrot.lane.b32.xlu2 %v1272_v35, %s7927_s2 }
 0x179   : > { %1037 = vrot.lane.b32.xlu0 %v1018_v40, %s7917_s27  ;;  %893 = vrot.lane.b32.xlu1 %v1271_v25, %s7927_s2 }
 0x17b   : > { %v810_v41 = vpop.permute.xlu0 %809 }
 0x17c   : > { %827 = vst.msk [vmem:[#allocation2 + $0x38] sm:$0xff] %vm819_vm4, %v810_v41 }
 0x17e   : > { %1093 = vrot.lane.b32.xlu2 %v1272_v35, %s7913_s0 }
 0x181   : > { %897 = vrot.lane.b32.xlu0 %v877_v42, %s7927_s2  ;;  %1091 = vrot.lane.b32.xlu1 %v1271_v25, %s7913_s0  ;;  %v941_v25 = vmul.f32 %v6773_v50, %v6830_v9 }
 0x183   : > { %v6900_v45 = vld [vmem:[#allocation2 + $0x38] sm:$0xff]  ;;  %v949_v27 = vpack.c.bf16 %v941_v25, %v941_v25  ;;  %v1466_v25 = vld [vmem:[%s7958_s6] sm:$0xff] }
 0x184   : > { %v847_v46 = vmul.f32 %v6786_v54, %v6900_v45  ;;  %2338 = vst.msk [vmem:[#allocation2 + $0x38] sm:$0xff] %vm819_vm4, %v810_v41  ;;  %v1137_v54 = vmul.f32 %v6775_v51, %v6856_v24  ;;  %v1078_v28 = vpack.c.bf16 %v6900_v45, %v6900_v45  ;;  %v1014_v30 = vmul.f32 %v6771_v49, %v6900_v45 }
 0x185   : > { %v1141_v37 = vmul.f32 %v6775_v51, %v6900_v45  ;;  %v943_v40 = vmul.f32 %v6773_v50, %v6900_v45  ;;  %v1148_v41 = vpack.c.bf16 %v1140_v36, %v1140_v36  ;;  %v1209_v50 = vmul.f32 %v6788_v55, %v6874_v33 }
 0x186   : > { %v855_v60 = vpack.c.bf16 %v847_v46, %v847_v46  ;;  %966 = vrot.lane.b32.xlu2 %v947_v48, %s7911_s23  ;;  %v1145_v0 = vpack.c.bf16 %v1137_v54, %v1137_v54  ;;  %v1022_v31 = vpack.c.bf16 %v1014_v30, %v1014_v30  ;;  %v1346_v48 = vpack.c.bf16 %v1338_v43, %v1338_v43 }
 0x187   : > { %v1335_v33 = vmul.f32 %v6777_v52, %v6856_v24  ;;  %v1207_v54 = vmul.f32 %v6788_v55, %v6834_v13  ;;  %v1212_v7 = vmul.f32 %v6788_v55, %v6900_v45 }
 0x188   : > { %864 = vst.msk [vmem:[#allocation3 + $0x1c] sm:$0xf] %vm856_vm5, %v855_v60 }
 0x189   : > { %1295 = vrot.lane.b32.xlu0 %v1274_v47, %s7919_s21  ;;  %964 = vrot.lane.b32.xlu1 %v946_v58, %s7911_s23  ;;  %v1217_v58 = vpack.c.bf16 %v1209_v50, %v1209_v50 }
 0x18e   : > { %1293 = vrot.lane.b32.xlu2 %v877_v42, %s7919_s21 }
 0x191   : > { %1168 = vrot.lane.b32.xlu0 %v1147_v62, %s7929_s19  ;;  %1164 = vrot.lane.b32.xlu1 %v1145_v0, %s7929_s19  ;;  %v1343_v62 = vpack.c.bf16 %v1335_v33, %v1335_v33  ;;  %v1215_v0 = vpack.c.bf16 %v1207_v54, %v1207_v54  ;;  %v6285_v33 = vld [vmem:[%s7881_s4 + $0x1] ss:$0 sm:$0xff] }
 0x196   : > { %1166 = vrot.lane.b32.xlu2 %v1146_v5, %s7929_s19 }
 0x199   : > { %1366 = vrot.lane.b32.xlu0 %v1345_v4, %s7915_s11  ;;  %1095 = vrot.lane.b32.xlu1 %v877_v42, %s7913_s0  ;;  %v951_v42 = vpack.c.bf16 %v943_v40, %v943_v40  ;;  %v1339_v4 = vmul.f32 %v6777_v52, %v6900_v45  ;;  %v1332_v45 = vmul.f32 %v6777_v52, %v6790_v56 }
 0x19b   : > { %v1340_v17 = vpack.c.bf16 %v1332_v45, %v1332_v45 }
 0x19e   : > { %1364 = vrot.lane.b32.xlu2 %v1344_v10, %s7915_s11  ;;  %v1220_v10 = vpack.c.bf16 %v1212_v7, %v1212_v7  ;;  %v7126_v7 = vld [vmem:[#allocation2 + $0x20] sm:$0xff] }
 0x1a1   : > { %1099 = vrot.lane.b32.xlu0 %v1077_v8, %s7913_s0  ;;  %1039 = vrot.lane.b32.xlu1 %v1019_v11, %s7917_s27  ;;  %v1208_v11 = vmul.f32 %v6788_v55, %v6856_v24 }
 0x1a6   : > { %1097 = vrot.lane.b32.xlu2 %v1274_v47, %s7913_s0 }
 0x1a9   : > { %1043 = vrot.lane.b32.xlu0 %v1021_v15, %s7917_s27  ;;  %968 = vrot.lane.b32.xlu1 %v948_v16, %s7911_s23  ;;  %v1333_v15 = vmul.f32 %v6777_v52, %v6811_v63  ;;  %v1216_v16 = vpack.c.bf16 %v1208_v11, %v1208_v11  ;;  %v1206_v52 = vmul.f32 %v6788_v55, %v6811_v63 }
 0x1ab   : > { %v1341_v18 = vpack.c.bf16 %v1333_v15, %v1333_v15 }
 0x1ae   : > { %1041 = vrot.lane.b32.xlu2 %v1020_v20, %s7917_s27 }
 0x1b0   : > { %v892_v22 = vpop.permute.xlu2 %891 }
 0x1b1   : > { %972 = vrot.lane.b32.xlu0 %v950_v19, %s7911_s23  ;;  %899 = vrot.lane.b32.xlu1 %v1274_v47, %s7927_s2  ;;  %914 = vst.msk [vmem:[#allocation3 + $0x24] sm:$0xf] %vm856_vm5, %v892_v22  ;;  %v1210_v47 = vmul.f32 %v6788_v55, %v6830_v9  ;;  %v1205_v19 = vmul.f32 %v6788_v55, %v6790_v56 }
 0x1b3   : > { %v1218_v60 = vpack.c.bf16 %v1210_v47, %v1210_v47  ;;  %v1213_v23 = vpack.c.bf16 %v1205_v19, %v1205_v19  ;;  %v6283_v47 = vld [vmem:[%s7881_s4 + $0x5] ss:$0 sm:$0xff] }
 0x1b6   : > { %970 = vrot.lane.b32.xlu2 %v949_v27, %s7911_s23  ;;  %v1467_v27 = vld [vmem:[%s7958_s6 + $0x8] sm:$0xff]  ;;  %s7970_s6 = smov 10  }
 0x1b8   : > { %v963_v29 = vpop.permute.xlu2 %962 }
 0x1b9   : > { %1241 = vrot.lane.b32.xlu0 %v1219_v26, %s7921_s22  ;;  %1101 = vrot.lane.b32.xlu1 %v1078_v28, %s7913_s0  ;;  %985 = vst.msk [vmem:[#allocation3 + $0x44] sm:$0xf] %vm856_vm5, %v963_v29  ;;  %v1214_v26 = vpack.c.bf16 %v1206_v52, %v1206_v52  ;;  %v1800_v29 = vld [vmem:[%s7885_s8] sm:$0xff] }
 0x1be   : > { %901 = vrot.lane.b32.xlu2 %v1077_v8, %s7927_s2 }
 0x1c0   : > { %v1290_v34 = vpop.permute.xlu2 %1289 }
 0x1c1   : > { %903 = vrot.lane.b32.xlu0 %v1078_v28, %s7927_s2  ;;  %1045 = vrot.lane.b32.xlu1 %v1022_v31, %s7917_s27  ;;  %1311 = vst.msk [vmem:[#allocation3 + $0xe8] sm:$0xf] %vm856_vm5, %v1290_v34  ;;  %v1802_v34 = vld [vmem:[%s7885_s8 + $0x10] sm:$0xff]  ;;  %s7961_s27 = smov 120  }
 0x1c3   : > { %v890_v32 = vpop.permute.xlu1 %889  ;;  %v1286_v35 = vpop.permute.xlu0 %1285 }
 0x1c4   : > { %913 = vst.msk [vmem:[#allocation3 + $0x20] sm:$0xf] %vm856_vm5, %v890_v32 }
 0x1c5   : > { %1309 = vst.msk [vmem:[#allocation3 + $0xe0] sm:$0xf] %vm856_vm5, %v1286_v35  ;;  %v1803_v35 = vld [vmem:[%s7885_s8 + $0x18] sm:$0xff] }
 0x1c6   : > { %1297 = vrot.lane.b32.xlu2 %v1077_v8, %s7919_s21  ;;  %v1347_v8 = vpack.c.bf16 %v1339_v4, %v1339_v4 }
 0x1c8   : > { %v1036_v49 = vpop.permute.xlu2 %1035 }
 0x1c9   : > { %1299 = vrot.lane.b32.xlu0 %v1078_v28, %s7919_s21  ;;  %1087 = vrot.lane.b32.xlu1 %v6800_v59, %s7913_s0  ;;  %1057 = vst.msk [vmem:[#allocation3 + $0x68] sm:$0xf] %vm856_vm5, %v1036_v49  ;;  %v1149_v59 = vpack.c.bf16 %v1141_v37, %v1141_v37  ;;  %v1801_v28 = vld [vmem:[%s7885_s8 + $0x8] sm:$0xff]  ;;  %s7967_s21 = smov 9  }
 0x1cb   : > { %v961_v38 = vpop.permute.xlu1 %960  ;;  %v1032_v39 = vpop.permute.xlu0 %1031 }
 0x1cc   : > { %984 = vst.msk [vmem:[#allocation3 + $0x40] sm:$0xf] %vm856_vm5, %v961_v38  ;;  %v6280_v38 = vld [vmem:[%s7881_s4 + $0x4] ss:$0 sm:$0xff] }
 0x1cd   : > { %1055 = vst.msk [vmem:[#allocation3 + $0x60] sm:$0xf] %vm856_vm5, %v1032_v39  ;;  %v6279_v39 = vld [vmem:[%s7881_s4 + $0x3] ss:$0 sm:$0xff] }
 0x1ce   : > { %1170 = vrot.lane.b32.xlu2 %v1148_v41, %s7929_s19 }
 0x1d0   : > { %v896_v51 = vpop.permute.xlu2 %895 }
 0x1d1   : > { %1172 = vrot.lane.b32.xlu0 %v1149_v59, %s7929_s19  ;;  %974 = vrot.lane.b32.xlu1 %v951_v42, %s7911_s23  ;;  %916 = vst.msk [vmem:[#allocation3 + $0x2c] sm:$0xf] %vm856_vm5, %v896_v51  ;;  %v6282_v42 = vld [vmem:[%s7881_s4 + $0x2] ss:$0 sm:$0xff]  ;;  %v6281_v51 = vld [vmem:[%s7881_s4 + $0x3] ss:$0 sm:$0xff] }
 0x1d2   : > { %s7962_s23 = smov 119  }
 0x1d3   : > { %v1288_v44 = vpop.permute.xlu1 %1287  ;;  %v1159_v46 = vpop.permute.xlu0 %1158 }
 0x1d4   : > { %1310 = vst.msk [vmem:[#allocation3 + $0xe4] sm:$0xf] %vm856_vm5, %v1288_v44 }
 0x1d5   : > { %1182 = vst.msk [vmem:[#allocation3 + $0xa0] sm:$0xf] %vm856_vm5, %v1159_v46  ;;  %v6284_v46 = vld [vmem:[%s7881_s4 + $0x2] ss:$0 sm:$0xff] }
 0x1d6   : > { %1368 = vrot.lane.b32.xlu2 %v1346_v48, %s7915_s11 }
 0x1d8   : > { %v1094_v21 = vpop.permute.xlu2 %1093 }
 0x1d9   : > { %1237 = vrot.lane.b32.xlu0 %v1217_v58, %s7921_s22  ;;  %1239 = vrot.lane.b32.xlu1 %v1218_v60, %s7921_s22  ;;  %1114 = vst.msk [vmem:[#allocation3 + $0x8c] sm:$0xf] %vm856_vm5, %v1094_v21  ;;  %v6286_v21 = vld [vmem:[%s7881_s4 + $0x4] ss:$0 sm:$0xff] }
 0x1db   : > { %v1034_v61 = vpop.permute.xlu1 %1033  ;;  %v1163_v9 = vpop.permute.xlu0 %1162 }
 0x1dc   : > { %1056 = vst.msk [vmem:[#allocation3 + $0x64] sm:$0xf] %vm856_vm5, %v1034_v61 }
 0x1dd   : > { %1184 = vst.msk [vmem:[#allocation3 + $0xa8] sm:$0xf] %vm856_vm5, %v1163_v9 }
 0x1de   : > { %1089 = vrot.lane.b32.xlu2 %v6818_v3, %s7913_s0  ;;  %v1342_v3 = vpack.c.bf16 %v1334_v2, %v1334_v2  ;;  %s7963_s0 = smov 126  }
 0x1e0   : > { %v967_v1 = vpop.permute.xlu2 %966 }
 0x1e1   : > { %1362 = vrot.lane.b32.xlu0 %v1343_v62, %s7915_s11  ;;  %1233 = vrot.lane.b32.xlu1 %v1215_v0, %s7921_s22  ;;  %987 = vst.msk [vmem:[#allocation3 + $0x4c] sm:$0xf] %vm856_vm5, %v967_v1  ;;  %v7109_v62 = vld [vmem:[#allocation2 + $0x30] sm:$0xff]  ;;  %v6287_v0 = vld [vmem:[%s7881_s4 + $0x5] ss:$0 sm:$0xff] }
 0x1e2   : > { %v7117_v1 = vpack.c.bf16 %v7109_v62, %v7109_v62 }
 0x1e3   : > { %v1161_v5 = vpop.permute.xlu1 %1160  ;;  %v1292_v6 = vpop.permute.xlu0 %1291 }
 0x1e4   : > { %1183 = vst.msk [vmem:[#allocation3 + $0xa4] sm:$0xf] %vm856_vm5, %v1161_v5 }
 0x1e5   : > { %1312 = vst.msk [vmem:[#allocation3 + $0xec] sm:$0xf] %vm856_vm5, %v1292_v6  ;;  %v7123_v6 = vld [vmem:[#allocation2 + $0x38] sm:$0xff] }
 0x1e6   : > { %1360 = vrot.lane.b32.xlu2 %v1342_v3, %s7915_s11  ;;  %v7131_v3 = vpack.c.bf16 %v7123_v6, %v7123_v6 }
 0x1e8   : > { %v1294_v13 = vpop.permute.xlu2 %1293 }
 0x1e9   : > { %1370 = vrot.lane.b32.xlu0 %v1347_v8, %s7915_s11  ;;  %1243 = vrot.lane.b32.xlu1 %v1220_v10, %s7921_s22  ;;  %1313 = vst.msk [vmem:[#allocation3 + $0xf0] sm:$0xf] %vm856_vm5, %v1294_v13  ;;  %v7135_v8 = vpack.c.bf16 %v7126_v7, %v7126_v7 }
 0x1eb   : > { %v894_v12 = vpop.permute.xlu1 %893  ;;  %v1038_v14 = vpop.permute.xlu0 %1037 }
 0x1ec   : > { %915 = vst.msk [vmem:[#allocation3 + $0x28] sm:$0xf] %vm856_vm5, %v894_v12  ;;  %v7142_v12 = vld [vmem:[#allocation2 + $0x28] sm:$0xff] }
 0x1ed   : > { %1058 = vst.msk [vmem:[#allocation3 + $0x6c] sm:$0xf] %vm856_vm5, %v1038_v14  ;;  %v7148_v15 = vpack.c.bf16 %v7142_v12, %v7142_v12 }
 0x1ee   : > { %1235 = vrot.lane.b32.xlu2 %v1216_v16, %s7921_s22 }
 0x1f0   : > { %v1167_v24 = vpop.permute.xlu2 %1166 }
 0x1f1   : > { %1356 = vrot.lane.b32.xlu0 %v1340_v17, %s7915_s11  ;;  %1358 = vrot.lane.b32.xlu1 %v1341_v18, %s7915_s11  ;;  %1186 = vst.msk [vmem:[#allocation3 + $0xb0] sm:$0xf] %vm856_vm5, %v1167_v24  ;;  %s7960_s11 = smov 111  }
 0x1f3   : > { %v1092_v20 = vpop.permute.xlu1 %1091  ;;  %v898_v22 = vpop.permute.xlu0 %897 }
 0x1f4   : > { %1113 = vst.msk [vmem:[#allocation3 + $0x88] sm:$0xf] %vm856_vm5, %v1092_v20  ;;  %v5954_v52 = vld [vmem:[#allocation3 + $0x68] sm:$0xff] }
 0x1f5   : > { %917 = vst.msk [vmem:[#allocation3 + $0x30] sm:$0xf] %vm856_vm5, %v898_v22  ;;  %v5946_v20 = vld [vmem:[#allocation3 + $0x28] sm:$0xff]  ;;  %v5953_v22 = vld [vmem:[#allocation3 + $0x60] sm:$0xff] }
 0x1f6   : > { %1229 = vrot.lane.b32.xlu2 %v1213_v23, %s7921_s22  ;;  %v5945_v23 = vld [vmem:[#allocation3 + $0x20] sm:$0xff] }
 0x1f8   : > { %v1365_v55 = vpop.permute.xlu2 %1364 }
 0x1f9   : > { %1231 = vrot.lane.b32.xlu0 %v1214_v26, %s7921_s22  ;;  %1470 = vperm.xlu1 %6271, %v1466_v25   ;;  %1384 = vst.msk [vmem:[#allocation3 + $0x110] sm:$0xf] %vm856_vm5, %v1365_v55  ;;  %s2023_s22 = sld [smem:[#allocation4]] }
 0x1fb   : > { %v965_v56 = vpop.permute.xlu1 %964  ;;  %v1296_v63 = vpop.permute.xlu0 %1295 }
 0x1fc   : > { %986 = vst.msk [vmem:[#allocation3 + $0x48] sm:$0xf] %vm856_vm5, %v965_v56 }
 0x1fd   : > { %1314 = vst.msk [vmem:[#allocation3 + $0xf4] sm:$0xf] %vm856_vm5, %v1296_v63  ;;  %v5944_v63 = vld [vmem:[#allocation3 + $0x18] sm:$0xff] }
 0x1fe   : > { %1475 = vperm.xlu2 %6272, %v1467_v27  }
 0x200   : > { %v1098_v30 = vpop.permute.xlu2 %1097 }
 0x201   : > { %1811 = vperm.xlu0 %6270, %v1801_v28   ;;  %1806 = vperm.xlu1 %6271, %v1800_v29   ;;  %1116 = vst.msk [vmem:[#allocation3 + $0x94] sm:$0xf] %vm856_vm5, %v1098_v30  ;;  %v5943_v29 = vld [vmem:[#allocation3 + $0x10] sm:$0xff] }
 0x203   : > { %v1165_v31 = vpop.permute.xlu1 %1164  ;;  %v1169_v32 = vpop.permute.xlu0 %1168 }
 0x204   : > { %1185 = vst.msk [vmem:[#allocation3 + $0xac] sm:$0xf] %vm856_vm5, %v1165_v31 }
 0x205   : > { %1187 = vst.msk [vmem:[#allocation3 + $0xb4] sm:$0xf] %vm856_vm5, %v1169_v32 }
 0x208   : > { %v1042_v49 = vpop.permute.xlu2 %1041 }
 0x209   : > { %1816 = vperm.xlu0 %6270, %v1802_v34   ;;  %1821 = vperm.xlu1 %6271, %v1803_v35   ;;  %1060 = vst.msk [vmem:[#allocation3 + $0x74] sm:$0xf] %vm856_vm5, %v1042_v49  ;;  %v5950_v35 = vld [vmem:[#allocation3 + $0x48] sm:$0xff] }
 0x20a   : > { %v5942_v49 = vld [vmem:[#allocation3 + $0x8] sm:$0xff] }
 0x20b   : > { %v1096_v36 = vpop.permute.xlu1 %1095  ;;  %v1367_v37 = vpop.permute.xlu0 %1366 }
 0x20c   : > { %1115 = vst.msk [vmem:[#allocation3 + $0x90] sm:$0xf] %vm856_vm5, %v1096_v36  ;;  %v5963_v30 = vld [vmem:[#allocation3 + $0xb0] sm:$0xff]  ;;  %v5962_v36 = vld [vmem:[#allocation3 + $0xa8] sm:$0xff] }
 0x20d   : > { %1385 = vst.msk [vmem:[#allocation3 + $0x114] sm:$0xf] %vm856_vm5, %v1367_v37  ;;  %v5936_v37 = vld [vmem:[%s7959_s5 + $0x4] sm:$0xf] }
 0x210   : > { %v971_v40 = vpop.permute.xlu2 %970 }
 0x211   : > { %2150 = vrot.lane.b32.xlu0 %v6280_v38, %s7926_s25  ;;  %2128 = vrot.lane.b32.xlu1 %v6279_v39, %s7924_s3  ;;  %989 = vst.msk [vmem:[#allocation3 + $0x54] sm:$0xf] %vm856_vm5, %v971_v40  ;;  %v4931_v38 = vld [vmem:[%s7959_s5 + $0x14] sm:$0xf0]  ;;  %v4929_v39 = vld [vmem:[%s7959_s5] sm:$0xf] }
 0x212   : > { %v5938_v40 = vld [vmem:[%s7959_s5 + $0x10] sm:$0xf0] }
 0x213   : > { %v1040_v41 = vpop.permute.xlu1 %1039  ;;  %v1100_v59 = vpop.permute.xlu0 %1099 }
 0x214   : > { %1059 = vst.msk [vmem:[#allocation3 + $0x70] sm:$0xf] %vm856_vm5, %v1040_v41  ;;  %v5949_v41 = vld [vmem:[#allocation3 + $0x40] sm:$0xff] }
 0x215   : > { %1117 = vst.msk [vmem:[#allocation3 + $0x98] sm:$0xf] %vm856_vm5, %v1100_v59  ;;  %v5941_v59 = vld [vmem:[#allocation3] sm:$0xff] }
 0x218   : > { %v902_v43 = vpop.permute.xlu2 %901 }
 0x219   : > { %2092 = vrot.lane.b32.xlu0 %v6282_v42, %s7923_s20  ;;  %2638 = vrot.lane.b32.xlu1 %v6281_v51, %s7924_s3  ;;  %919 = vst.msk [vmem:[#allocation3 + $0x38] sm:$0xf] %vm856_vm5, %v902_v43  ;;  %v5961_v42 = vld [vmem:[#allocation3 + $0xa0] sm:$0xff]  ;;  %v4934_v51 = vor.u32 %v5936_v37, %v4931_v38  ;;  %s7965_s3 = smov 110  }
 0x21b   : > { %v969_v50 = vpop.permute.xlu1 %968  ;;  %v1044_v44 = vpop.permute.xlu0 %1043  ;;  %v5955_v16 = vld [vmem:[#allocation3 + $0x70] sm:$0xff] }
 0x21c   : > { %988 = vst.msk [vmem:[#allocation3 + $0x50] sm:$0xf] %vm856_vm5, %v969_v50  ;;  %v4930_v50 = vor.u32 %v5938_v40, %v4929_v39 }
 0x21d   : > { %1061 = vst.msk [vmem:[#allocation3 + $0x78] sm:$0xf] %vm856_vm5, %v1044_v44 }
 0x220   : > { %v1298_v48 = vpop.permute.xlu2 %1297 }
 0x221   : > { %2512 = vrot.lane.b32.xlu0 %v6284_v46, %s7923_s20  ;;  %2186 = vrot.lane.b32.xlu1 %v6283_v47, %s7925_s24  ;;  %1315 = vst.msk [vmem:[#allocation3 + $0xf8] sm:$0xf] %vm856_vm5, %v1298_v48  ;;  %v5971_v48 = vld [vmem:[#allocation3 + $0xf0] sm:$0xff]  ;;  %s7964_s20 = smov 112  }
 0x223   : > { %v900_v58 = vpop.permute.xlu1 %899  ;;  %v973_v60 = vpop.permute.xlu0 %972  ;;  %v5951_v28 = vld [vmem:[#allocation3 + $0x50] sm:$0xff] }
 0x224   : > { %918 = vst.msk [vmem:[#allocation3 + $0x34] sm:$0xf] %vm856_vm5, %v900_v58  ;;  %v5959_v58 = vld [vmem:[#allocation3 + $0x90] sm:$0xff] }
 0x225   : > { %990 = vst.msk [vmem:[#allocation3 + $0x58] sm:$0xf] %vm856_vm5, %v973_v60  ;;  %v5970_v60 = vld [vmem:[#allocation3 + $0xe8] sm:$0xff] }
 0x228   : > { %v1171_v61 = vpop.permute.xlu2 %1170 }
 0x229   : > { %2708 = vrot.lane.b32.xlu0 %v6286_v21, %s7926_s25  ;;  %2442 = vrot.lane.b32.xlu1 %v6285_v33, %s7931_s29  ;;  %1188 = vst.msk [vmem:[#allocation3 + $0xb8] sm:$0xf] %vm856_vm5, %v1171_v61  ;;  %v5958_v61 = vld [vmem:[#allocation3 + $0x88] sm:$0xff]  ;;  %s7975_s25 = sld [smem:[#allocation31_spill]] }
 0x22b   : > { %v1102_v9 = vpop.permute.xlu1 %1101  ;;  %v1242_v54 = vpop.permute.xlu0 %1241  ;;  %v5947_v17 = vld [vmem:[#allocation3 + $0x30] sm:$0xff] }
 0x22c   : > { %1118 = vst.msk [vmem:[#allocation3 + $0x9c] sm:$0xf] %vm856_vm5, %v1102_v9 }
 0x22d   : > { %1259 = vst.msk [vmem:[#allocation3 + $0xd8] sm:$0xf] %vm856_vm5, %v1242_v54  ;;  %v5969_v54 = vld [vmem:[#allocation3 + $0xe0] sm:$0xff] }
 0x230   : > { %v1369_v2 = vpop.permute.xlu2 %1368 }
 0x231   : > { %2834 = vrot.lane.b32.xlu0 %v6287_v0, %s7925_s24  ;;  %2411 = vrot.lane.b32.xlu1 %v7117_v1, %s7927_s2  ;;  %1386 = vst.msk [vmem:[#allocation3 + $0x118] sm:$0xf] %vm856_vm5, %v1369_v2  ;;  %v4937_v0 = vld [vmem:[%s7959_s5 + $0x8] sm:$0xf]  ;;  %v5939_v2 = vld [vmem:[%s7959_s5 + $0x18] sm:$0xf0] }
 0x232   : > { %s7969_s24 = smov 18  }
 0x233   : > { %v1046_v4 = vpop.permute.xlu1 %1045  ;;  %v904_v5 = vpop.permute.xlu0 %903  ;;  %v5960_v47 = vld [vmem:[#allocation3 + $0x98] sm:$0xff] }
 0x234   : > { %1062 = vst.msk [vmem:[#allocation3 + $0x7c] sm:$0xf] %vm856_vm5, %v1046_v4 }
 0x235   : > { %920 = vst.msk [vmem:[#allocation3 + $0x3c] sm:$0xf] %vm856_vm5, %v904_v5  ;;  %v5975_v5 = vld [vmem:[#allocation3 + $0x110] sm:$0xff] }
 0x238   : > { %v1090_v10 = vpop.permute.xlu2 %1089 }
 0x239   : > { %2413 = vrot.lane.b32.xlu0 %v7131_v3, %s7927_s2  ;;  %2407 = vrot.lane.b32.xlu1 %v7135_v8, %s7927_s2  ;;  %1112 = vst.msk [vmem:[#allocation3 + $0x84] sm:$0xf] %vm856_vm5, %v1090_v10 }
 0x23b   : > { %v1088_v13 = vpop.permute.xlu1 %1087  ;;  %v1300_v11 = vpop.permute.xlu0 %1299  ;;  %v5956_v45 = vld [vmem:[#allocation3 + $0x78] sm:$0xff] }
 0x23c   : > { %1111 = vst.msk [vmem:[#allocation3 + $0x80] sm:$0xf] %vm856_vm5, %v1088_v13  ;;  %v5948_v14 = vld [vmem:[#allocation3 + $0x38] sm:$0xff]  ;;  %1737 = vmatpush.bf16.msra.mxu2 %v5956_v45  ;;  %v4938_v13 = vor.u32 %v5939_v2, %v4937_v0 }
 0x23d   : > { %1316 = vst.msk [vmem:[#allocation3 + $0xfc] sm:$0xf] %vm856_vm5, %v1300_v11  ;;  %1723 = vmatpush.bf16.msra.mxu1 %v5948_v14 }
 0x240   : > { %1738 = vmatpush.bf16.msra.mxu2 %v5955_v16  ;;  %v1361_v18 = vpop.permute.xlu2 %1360 }
 0x241   : > { %2409 = vrot.lane.b32.xlu0 %v7148_v15, %s7927_s2  ;;  %1724 = vmatpush.bf16.msra.mxu1 %v5947_v17  ;;  %1382 = vst.msk [vmem:[#allocation3 + $0x108] sm:$0xf] %vm856_vm5, %v1361_v18  ;;  %v4945_v17 = vld [vmem:[%s7959_s5 + $0x10] sm:$0xf]  ;;  %v5940_v18 = vld [vmem:[%s7959_s5 + $0x20] sm:$0xf0] }
 0x243   : > { %v975_v24 = vpop.permute.xlu1 %974  ;;  %v1173_v19 = vpop.permute.xlu0 %1172  ;;  %v5957_v4 = vld [vmem:[#allocation3 + $0x80] sm:$0xff] }
 0x244   : > { %991 = vst.msk [vmem:[#allocation3 + $0x5c] sm:$0xf] %vm856_vm5, %v975_v24  ;;  %1739 = vmatpush.bf16.msra.mxu2 %v5954_v52  ;;  %v5972_v43 = vld [vmem:[#allocation3 + $0xf8] sm:$0xff]  ;;  %v4946_v52 = vor.u32 %v5940_v18, %v4945_v17 }
 0x245   : > { %1189 = vst.msk [vmem:[#allocation3 + $0xbc] sm:$0xf] %vm856_vm5, %v1173_v19  ;;  %1725 = vmatpush.bf16.msra.mxu1 %v5946_v20 }
 0x248   : > { %1740 = vmatpush.bf16.msra.mxu2 %v5953_v22  ;;  %v1236_v25 = vpop.permute.xlu2 %1235 }
 0x249   : > { %1726 = vmatpush.bf16.msra.mxu1 %v5945_v23  ;;  %1256 = vst.msk [vmem:[#allocation3 + $0xcc] sm:$0xf] %vm856_vm5, %v1236_v25  ;;  %v5937_v23 = vld [vmem:[%s7959_s5 + $0xc] sm:$0xf]  ;;  %v4939_v25 = vld [vmem:[%s7959_s5 + $0x1c] sm:$0xf0] }
 0x24b   : > { %v1240_v26 = vpop.permute.xlu1 %1239  ;;  %v1238_v55 = vpop.permute.xlu0 %1237  ;;  %v5952_v56 = vld [vmem:[#allocation3 + $0x58] sm:$0xff] }
 0x24c   : > { %1258 = vst.msk [vmem:[#allocation3 + $0xd4] sm:$0xf] %vm856_vm5, %v1240_v26  ;;  %v5964_v27 = vld [vmem:[#allocation3 + $0xb8] sm:$0xff]  ;;  %1741 = vmatpush.bf16.msra.mxu2 %v5952_v56  ;;  %v4942_v26 = vor.u32 %v5937_v23, %v4939_v25 }
 0x24d   : > { %1257 = vst.msk [vmem:[#allocation3 + $0xd0] sm:$0xf] %vm856_vm5, %v1238_v55  ;;  %1727 = vmatpush.bf16.msra.mxu1 %v5944_v63  ;;  %1751 = vmatpush.bf16.msra.mxu3 %v5964_v27 }
 0x250   : > { %1742 = vmatpush.bf16.msra.mxu2 %v5951_v28  ;;  %v1230_v31 = vpop.permute.xlu2 %1229 }
 0x251   : > { %1728 = vmatpush.bf16.msra.mxu1 %v5943_v29  ;;  %1752 = vmatpush.bf16.msra.mxu3 %v5963_v30  ;;  %1253 = vst.msk [vmem:[#allocation3 + $0xc0] sm:$0xf] %vm856_vm5, %v1230_v31 }
 0x253   : > { %v1234_v32 = vpop.permute.xlu1 %1233  ;;  %v1363_v34 = vpop.permute.xlu0 %1362 }
 0x254   : > { %1255 = vst.msk [vmem:[#allocation3 + $0xc8] sm:$0xf] %vm856_vm5, %v1234_v32  ;;  %1743 = vmatpush.bf16.msra.mxu2 %v5950_v35  ;;  %v5967_v16 = vld [vmem:[#allocation3 + $0xd0] sm:$0xff] }
 0x255   : > { %1383 = vst.msk [vmem:[#allocation3 + $0x10c] sm:$0xf] %vm856_vm5, %v1363_v34  ;;  %1729 = vmatpush.bf16.msra.mxu1 %v5942_v49  ;;  %1753 = vmatpush.bf16.msra.mxu3 %v5962_v36  ;;  %v7219_v35 = vld [vmem:[#allocation2 + $0x10] sm:$0xff]  ;;  %v7221_v49 = vld [vmem:[#allocation2 + $0x18] sm:$0xff] }
 0x256   : > { %v7227_v37 = vpack.c.bf16 %v7219_v35, %v7219_v35  ;;  %v2386_v38 = vpack.c.bf16 %v7221_v49, %v7221_v49 }
 0x258   : > { %1744 = vmatpush.bf16.msra.mxu2 %v5949_v41 }
 0x259   : > { %1730 = vmatpush.bf16.msra.mxu1 %v5941_v59  ;;  %1754 = vmatpush.bf16.msra.mxu3 %v5961_v42 }
 0x25b   : > { %v1244_v44 = vpop.permute.xlu1 %1243  ;;  %v1371_v46 = vpop.permute.xlu0 %1370  ;;  %1745 = vmatmul.bf16.vlgmr.msra.gmra.mxu2 %v4934_v51  ;;  %v5966_v19 = vld [vmem:[#allocation3 + $0xc8] sm:$0xff] }
 0x25c   : > { %1260 = vst.msk [vmem:[#allocation3 + $0xdc] sm:$0xf] %vm856_vm5, %v1244_v44  ;;  %1731 = vmatmul.bf16.vlgmr.msra.gmra.mxu1 %v4930_v50  ;;  %v5974_v14 = vld [vmem:[#allocation3 + $0x108] sm:$0xff] }
 0x25d   : > { %1765 = vmatpush.bf16.msrb.mxu1 %v5972_v43  ;;  %1387 = vst.msk [vmem:[#allocation3 + $0x11c] sm:$0xf] %vm856_vm5, %v1371_v46  ;;  %1755 = vmatpush.bf16.msra.mxu3 %v5960_v47 }
 0x261   : > { %1766 = vmatpush.bf16.msrb.mxu1 %v5971_v48  ;;  %1756 = vmatpush.bf16.msra.mxu3 %v5959_v58 }
 0x263   : > { %v1359_v21 = vpop.permute.xlu1 %1358  ;;  %v1357_v33 = vpop.permute.xlu0 %1356  ;;  %v5968_v10 = vld [vmem:[#allocation3 + $0xd8] sm:$0xff] }
 0x264   : > { %1381 = vst.msk [vmem:[#allocation3 + $0x104] sm:$0xf] %vm856_vm5, %v1359_v21  ;;  %v5976_v9 = vld [vmem:[#allocation3 + $0x118] sm:$0xff] }
 0x265   : > { %1767 = vmatpush.bf16.msrb.mxu1 %v5970_v60  ;;  %1380 = vst.msk [vmem:[#allocation3 + $0x100] sm:$0xf] %vm856_vm5, %v1357_v33  ;;  %1757 = vmatpush.bf16.msra.mxu3 %v5958_v61 }
 0x266   : > { %1783 = vmatpush.bf16.msrb.mxu2 %v5976_v9 }
 0x269   : > { %1768 = vmatpush.bf16.msrb.mxu1 %v5969_v54  ;;  %1758 = vmatpush.bf16.msra.mxu3 %v5957_v4 }
 0x26a   : > { %1784 = vmatpush.bf16.msrb.mxu2 %v5975_v5 }
 0x26b   : > { %v7183_v11 = vpop.permute.xlu1 %1470  ;;  %v1232_v45 = vpop.permute.xlu0 %1231 }
 0x26c   : > { %1254 = vst.msk [vmem:[#allocation3 + $0xc4] sm:$0xf] %vm856_vm5, %v1232_v45  ;;  %1759 = vmatmul.bf16.vlgmr.msra.gmra.mxu3 %v4938_v13  ;;  %v5973_v24 = vld [vmem:[#allocation3 + $0x100] sm:$0xff] }
 0x26d   : > { %1769 = vmatpush.bf16.msrb.mxu1 %v5968_v10 }
 0x26e   : > { %1785 = vmatpush.bf16.msrb.mxu2 %v5974_v14 }
 0x271   : > { %1770 = vmatpush.bf16.msrb.mxu1 %v5967_v16 }
 0x272   : > { %1786 = vmatpush.bf16.msrb.mxu2 %v5973_v24 }
 0x273   : > { %v7192_v20 = vpop.permute.xlu1 %1806  ;;  %v5965_v22 = vld [vmem:[#allocation3 + $0xc0] sm:$0xff]  ;;  %v7201_v55 = vpop.permute.xlu0 %1811 }
 0x275   : > { %1771 = vmatpush.bf16.msrb.mxu1 %v5966_v19  ;;  %5091 = vmatmul.msk.bf16.vlgmr.msrb.gmra.mxu2 %vm1719_vm6, %v4946_v52 }
 0x279   : > { %1772 = vmatpush.bf16.msrb.mxu1 %v5965_v22 }
 0x27b   : > { %v7203_v56 = vpop.permute.xlu1 %1821  ;;  %v7205_v63 = vpop.permute.xlu0 %1816 }
 0x27c   : > { %1773 = vmatmul.bf16.vlgmr.msrb.gmra.mxu1 %v4942_v26 }
 0x283   : > { %v7207_v27 = vpop.permute.xlu1 %2128  ;;  %v7209_v28 = vpop.permute.xlu0 %2150 }
 0x28b   : > { %v7211_v29 = vpop.permute.xlu1 %2638  ;;  %v7223_v36 = vpop.permute.xlu0 %2092 }
 0x28c   : > { %v2647_v30 = vmul.f32 %v7211_v29, %v7109_v62  ;;  %v2648_v31 = vmul.f32 %v7211_v29, %v7123_v6  ;;  %v2646_v51 = vmul.f32 %v7211_v29, %v7142_v12  ;;  %v2645_v43 = vmul.f32 %v7211_v29, %v7126_v7 }
 0x28d   : > { %v2643_v46 = vmul.f32 %v7211_v29, %v7219_v35  ;;  %v2644_v60 = vmul.f32 %v7211_v29, %v7221_v49 }
 0x28e   : > { %v2655_v32 = vpack.c.bf16 %v2647_v30, %v2647_v30  ;;  %v2656_v34 = vpack.c.bf16 %v2648_v31, %v2648_v31  ;;  %v2654_v50 = vpack.c.bf16 %v2646_v51, %v2646_v51  ;;  %v2653_v44 = vpack.c.bf16 %v2645_v43, %v2645_v43 }
 0x28f   : > { %v2651_v48 = vpack.c.bf16 %v2643_v46, %v2643_v46  ;;  %v2652_v33 = vpack.c.bf16 %v2644_v60, %v2644_v60 }
 0x290   : > { %2677 = vrot.lane.b32.xlu1 %v2655_v32, %s7929_s19  ;;  %2679 = vrot.lane.b32.xlu0 %v2656_v34, %s7929_s19 }
 0x293   : > { %v7234_v39 = vpop.permute.xlu0 %2512  ;;  %v7264_v21 = vpop.permute.xlu1 %2186 }
 0x294   : > { %v2522_v40 = vmul.f32 %v7234_v39, %v7123_v6  ;;  %v2521_v41 = vmul.f32 %v7234_v39, %v7109_v62  ;;  %v2519_v47 = vmul.f32 %v7234_v39, %v7126_v7  ;;  %v2517_v61 = vmul.f32 %v7234_v39, %v7219_v35 }
 0x296   : > { %v2530_v59 = vpack.c.bf16 %v2522_v40, %v2522_v40  ;;  %v2529_v42 = vpack.c.bf16 %v2521_v41, %v2521_v41  ;;  %v2527_v58 = vpack.c.bf16 %v2519_v47, %v2519_v47  ;;  %v2525_v9 = vpack.c.bf16 %v2517_v61, %v2517_v61 }
 0x298   : > { %2403 = vrot.lane.b32.xlu1 %v7227_v37, %s7927_s2  ;;  %2405 = vrot.lane.b32.xlu0 %v2386_v38, %s7927_s2 }
 0x29b   : > { %v7270_v54 = vpop.permute.xlu1 %2442  ;;  %v7272_v0 = vpop.permute.xlu0 %2708 }
 0x29c   : > { %v2451_v2 = vmul.f32 %v7270_v54, %v7109_v62  ;;  %v2717_v4 = vmul.f32 %v7272_v0, %v7109_v62  ;;  %v2452_v13 = vmul.f32 %v7270_v54, %v7123_v6  ;;  %v2715_v14 = vmul.f32 %v7272_v0, %v7126_v7 }
 0x29d   : > { %v2713_v31 = vmul.f32 %v7272_v0, %v7219_v35 }
 0x29e   : > { %v2459_v5 = vpack.c.bf16 %v2451_v2, %v2451_v2  ;;  %v2725_v10 = vpack.c.bf16 %v2717_v4, %v2717_v4  ;;  %v2460_v45 = vpack.c.bf16 %v2452_v13, %v2452_v13  ;;  %v2723_v19 = vpack.c.bf16 %v2715_v14, %v2715_v14 }
 0x29f   : > { %v2721_v40 = vpack.c.bf16 %v2713_v31, %v2713_v31 }
 0x2a0   : > { %2803 = vrot.lane.b32.xlu1 %v7117_v1, %s7960_s11  ;;  %2805 = vrot.lane.b32.xlu0 %v7131_v3, %s7960_s11 }
 0x2a3   : > { %v7292_v17 = vpop.permute.xlu0 %2834  ;;  %v7298_v22 = vpop.permute.xlu1 %2411 }
 0x2a4   : > { %v2843_v32 = vmul.f32 %v7292_v17, %v7109_v62  ;;  %v2844_v62 = vmul.f32 %v7292_v17, %v7123_v6 }
 0x2a6   : > { %v2851_v41 = vpack.c.bf16 %v2843_v32, %v2843_v32 }
 0x2a8   : > { %2553 = vrot.lane.b32.xlu0 %v2530_v59, %s7961_s27  ;;  %2551 = vrot.lane.b32.xlu1 %v2529_v42, %s7961_s27 }
 0x2ab   : > { %v7300_v25 = vpop.permute.xlu0 %2413  ;;  %v7311_v43 = vpop.permute.xlu1 %2407 }
 0x2b0   : > { %2675 = vrot.lane.b32.xlu0 %v2654_v50, %s7929_s19  ;;  %2673 = vrot.lane.b32.xlu1 %v2653_v44, %s7929_s19 }
 0x2b3   : > { %v7313_v50 = vpop.permute.xlu0 %2409 }
 0x2b8   : > { %2801 = vrot.lane.b32.xlu0 %v7148_v15, %s7960_s11  ;;  %2799 = vrot.lane.b32.xlu1 %v7135_v8, %s7960_s11 }
 0x2c0   : > { %2669 = vrot.lane.b32.xlu0 %v2651_v48, %s7929_s19  ;;  %2547 = vrot.lane.b32.xlu1 %v2527_v58, %s7961_s27 }
 0x2c8   : > { %2797 = vrot.lane.b32.xlu0 %v2386_v38, %s7960_s11  ;;  %2671 = vrot.lane.b32.xlu1 %v2652_v33, %s7929_s19  ;;  %v2852_v33 = vpack.c.bf16 %v2844_v62, %v2844_v62 }
 0x2d0   : > { %2609 = vrot.lane.b32.xlu0 %v7131_v3, %s7962_s23  ;;  %2543 = vrot.lane.b32.xlu1 %v2525_v9, %s7961_s27  ;;  %v2449_v3 = vmul.f32 %v7270_v54, %v7126_v7 }
 0x2d2   : > { %v2457_v24 = vpack.c.bf16 %v2449_v3, %v2449_v3 }
 0x2d8   : > { %2481 = vrot.lane.b32.xlu0 %v2459_v5, %s7963_s0  ;;  %2747 = vrot.lane.b32.xlu1 %v2725_v10, %s7964_s20 }
 0x2d9   : > { %v1732_v16 = vpop.f32.mrf.mxu1 }
 0x2da   : > { %v1733_v34 = vadd.f32 %v1732_v16, %v7183_v11  ;;  %v2448_v11 = vmul.f32 %v7270_v54, %v7221_v49 }
 0x2dc   : > { %v2456_v61 = vpack.c.bf16 %v2448_v11, %v2448_v11 }
 0x2de   : > { %v1746_v18 = vpop.f32.mrf.mxu2 }
 0x2df   : > { %v1747_v42 = vadd.f32 %v1746_v18, %v1733_v34  ;;  %v5977_v18 = vld [vmem:[%s7966_s7] sm:$0xff] }
 0x2e0   : > { %2605 = vrot.lane.b32.xlu0 %v7148_v15, %s7962_s23  ;;  %2483 = vrot.lane.b32.xlu1 %v2460_v45, %s7963_s0  ;;  %v2450_v15 = vmul.f32 %v7270_v54, %v7142_v12 }
 0x2e1   : > { %v1734_v23 = vpop.f32.mrf.mxu1 }
 0x2e2   : > { %v2458_v52 = vpack.c.bf16 %v2450_v15, %v2450_v15 }
 0x2e6   : > { %v1748_v26 = vpop.f32.mrf.mxu2 }
 0x2e8   : > { %2477 = vrot.lane.b32.xlu0 %v2457_v24, %s7963_s0  ;;  %2743 = vrot.lane.b32.xlu1 %v2723_v19, %s7964_s20 }
 0x2ef   : > { %v1760_v30 = vpop.f32.mrf.mxu3 }
 0x2f0   : > { %2601 = vrot.lane.b32.xlu0 %v2386_v38, %s7962_s23  ;;  %2479 = vrot.lane.b32.xlu1 %v2458_v52, %s7963_s0  ;;  %v1476_v38 = vpop.permute.xlu2 %1475  ;;  %v1761_v46 = vadd.f32 %v1760_v30, %v1747_v42 }
 0x2f1   : > { %v1735_v44 = vadd.f32 %v1734_v23, %v1476_v38  ;;  %v5978_v23 = vld [vmem:[%s7966_s7 + $0x8] sm:$0xff]  ;;  %s7972_s7 = smov 8  }
 0x2f3   : > { %v1749_v48 = vadd.f32 %v1748_v26, %v1735_v44 }
 0x2f7   : > { %v1762_v47 = vpop.f32.mrf.mxu3 }
 0x2f8   : > { %v1788_v51 = vpop.f32.mrf.mxu2  ;;  %2739 = vrot.lane.b32.xlu1 %v2721_v40, %s7964_s20  ;;  %2873 = vrot.lane.b32.xlu0 %v2851_v41, %s7965_s3  ;;  %v1763_v60 = vadd.f32 %v1762_v47, %v1749_v48 }
 0x2f9   : > { %v1774_v59 = vpop.f32.mrf.mxu1 }
 0x2fa   : > { %v1775_v58 = vadd.f32 %v1774_v59, %v1761_v46 }
 0x2fc   : > { %v7319_v2 = vadd.f32 %v1788_v51, %v1775_v58 }
 0x2fe   : > { %v1793_v3 = vmax.f32 %v7319_v2, 0.0 }
 0x300   : > { %v1790_v5 = vpop.f32.mrf.mxu2  ;;  %2875 = vrot.lane.b32.xlu1 %v2852_v33, %s7965_s3  ;;  %2475 = vrot.lane.b32.xlu0 %v2456_v61, %s7963_s0 }
 0x301   : > { %v1776_v9 = vpop.f32.mrf.mxu1 }
 0x302   : > { %v1777_v4 = vadd.f32 %v1776_v9, %v1763_v60  ;;  %v2678_v13 = vpop.permute.xlu1 %2677  ;;  %v2680_v45 = vpop.permute.xlu0 %2679 }
 0x303   : > { %2695 = vst.msk [vmem:[#allocation3 + $0xb8] sm:$0xf] %vm856_vm5, %v2678_v13 }
 0x304   : > { %v7323_v10 = vadd.f32 %v1790_v5, %v1777_v4  ;;  %2696 = vst.msk [vmem:[#allocation3 + $0xbc] sm:$0xf] %vm856_vm5, %v2680_v45 }
 0x306   : > { %v1794_v14 = vmax.f32 %v7323_v10, 0.0 }
 0x308   : > { %v1799_v16 = vpack.c.bf16 %v1794_v14, %v1793_v3 }
 0x30a   : > { %1848 = vmatpush.bf16.msrb.mxu3 %v1799_v16  ;;  %v7336_v24 = vpop.permute.xlu1 %2403  ;;  %v7338_v19 = vpop.permute.xlu0 %2405 }
 0x30d   : > { %5100 = vmatmul.msk.bf16.vlgmr.msrb.gmra.mxu3 %vm1834_vm7, %v5977_v18 }
 0x312   : > { %v2804_v15 = vpop.permute.xlu1 %2803  ;;  %v2806_v52 = vpop.permute.xlu0 %2805 }
 0x313   : > { %2821 = vst.msk [vmem:[#allocation3 + $0xf8] sm:$0xf] %vm856_vm5, %v2804_v15 }
 0x314   : > { %2822 = vst.msk [vmem:[#allocation3 + $0xfc] sm:$0xf] %vm856_vm5, %v2806_v52 }
 0x31a   : > { %v2552_v26 = vpop.permute.xlu1 %2551  ;;  %v2554_v30 = vpop.permute.xlu0 %2553 }
 0x31b   : > { %2569 = vst.msk [vmem:[#allocation3 + $0x78] sm:$0xf] %vm856_vm5, %v2552_v26  ;;  %v6026_v15 = vld [vmem:[#allocation3 + $0xf8] sm:$0xff] }
 0x31c   : > { %2570 = vst.msk [vmem:[#allocation3 + $0x7c] sm:$0xf] %vm856_vm5, %v2554_v30 }
 0x31d   : > { %5101 = vmatmul.msk.bf16.gmra.mxu3 %vm1834_vm7, %v5978_v23 }
 0x322   : > { %v2674_v31 = vpop.permute.xlu1 %2673  ;;  %v2676_v32 = vpop.permute.xlu0 %2675 }
 0x323   : > { %2693 = vst.msk [vmem:[#allocation3 + $0xb0] sm:$0xf] %vm856_vm5, %v2674_v31  ;;  %v6288_v31 = vld [vmem:[%s7881_s4 + $0x1] ss:$0 sm:$0xff] }
 0x324   : > { %2694 = vst.msk [vmem:[#allocation3 + $0xb4] sm:$0xf] %vm856_vm5, %v2676_v32 }
 0x32a   : > { %v2800_v34 = vpop.permute.xlu1 %2799  ;;  %v2802_v40 = vpop.permute.xlu0 %2801 }
 0x32b   : > { %2819 = vst.msk [vmem:[#allocation3 + $0xf0] sm:$0xf] %vm856_vm5, %v2800_v34 }
 0x32c   : > { %2820 = vst.msk [vmem:[#allocation3 + $0xf4] sm:$0xf] %vm856_vm5, %v2802_v40 }
 0x332   : > { %v2548_v41 = vpop.permute.xlu1 %2547  ;;  %v2670_v59 = vpop.permute.xlu0 %2669 }
 0x333   : > { %2567 = vst.msk [vmem:[#allocation3 + $0x70] sm:$0xf] %vm856_vm5, %v2548_v41  ;;  %v6025_v26 = vld [vmem:[#allocation3 + $0xf0] sm:$0xff] }
 0x334   : > { %2691 = vst.msk [vmem:[#allocation3 + $0xa8] sm:$0xf] %vm856_vm5, %v2670_v59  ;;  %v2718_v59 = vmul.f32 %v7272_v0, %v7123_v6 }
 0x33a   : > { %v2672_v42 = vpop.permute.xlu1 %2671  ;;  %v2798_v51 = vpop.permute.xlu0 %2797 }
 0x33b   : > { %2692 = vst.msk [vmem:[#allocation3 + $0xac] sm:$0xf] %vm856_vm5, %v2672_v42  ;;  %v2726_v42 = vpack.c.bf16 %v2718_v59, %v2718_v59 }
 0x33c   : > { %2818 = vst.msk [vmem:[#allocation3 + $0xec] sm:$0xf] %vm856_vm5, %v2798_v51 }
 0x342   : > { %v2544_v38 = vpop.permute.xlu1 %2543  ;;  %v2610_v44 = vpop.permute.xlu0 %2609 }
 0x343   : > { %2565 = vst.msk [vmem:[#allocation3 + $0x68] sm:$0xf] %vm856_vm5, %v2544_v38  ;;  %v2716_v38 = vmul.f32 %v7272_v0, %v7142_v12 }
 0x344   : > { %2626 = vst.msk [vmem:[#allocation3 + $0x9c] sm:$0xf] %vm856_vm5, %v2610_v44 }
 0x345   : > { %v2724_v44 = vpack.c.bf16 %v2716_v38, %v2716_v38 }
 0x34a   : > { %v2748_v46 = vpop.permute.xlu1 %2747  ;;  %v2482_v62 = vpop.permute.xlu0 %2481 }
 0x34b   : > { %2765 = vst.msk [vmem:[#allocation3 + $0xd8] sm:$0xf] %vm856_vm5, %v2748_v46 }
 0x34c   : > { %2499 = vst.msk [vmem:[#allocation3 + $0x58] sm:$0xf] %vm856_vm5, %v2482_v62 }
 0x352   : > { %v2484_v11 = vpop.permute.xlu1 %2483  ;;  %v2606_v47 = vpop.permute.xlu0 %2605 }
 0x353   : > { %2500 = vst.msk [vmem:[#allocation3 + $0x5c] sm:$0xf] %vm856_vm5, %v2484_v11 }
 0x354   : > { %2624 = vst.msk [vmem:[#allocation3 + $0x94] sm:$0xf] %vm856_vm5, %v2606_v47 }
 0x35a   : > { %v2744_v48 = vpop.permute.xlu1 %2743  ;;  %v2478_v58 = vpop.permute.xlu0 %2477 }
 0x35b   : > { %2763 = vst.msk [vmem:[#allocation3 + $0xd0] sm:$0xf] %vm856_vm5, %v2744_v48 }
 0x35c   : > { %2497 = vst.msk [vmem:[#allocation3 + $0x50] sm:$0xf] %vm856_vm5, %v2478_v58 }
 0x362   : > { %v2480_v60 = vpop.permute.xlu1 %2479  ;;  %v2602_v33 = vpop.permute.xlu0 %2601 }
 0x363   : > { %2498 = vst.msk [vmem:[#allocation3 + $0x54] sm:$0xf] %vm856_vm5, %v2480_v60 }
 0x364   : > { %2622 = vst.msk [vmem:[#allocation3 + $0x8c] sm:$0xf] %vm856_vm5, %v2602_v33 }
 0x36a   : > { %v2740_v61 = vpop.permute.xlu1 %2739  ;;  %v2874_v9 = vpop.permute.xlu0 %2873 }
 0x36b   : > { %2761 = vst.msk [vmem:[#allocation3 + $0xc8] sm:$0xf] %vm856_vm5, %v2740_v61 }
 0x36c   : > { %2891 = vst.msk [vmem:[#allocation3 + $0x118] sm:$0xf] %vm856_vm5, %v2874_v9 }
 0x372   : > { %v2876_v4 = vpop.permute.xlu1 %2875  ;;  %v2476_v5 = vpop.permute.xlu0 %2475 }
 0x373   : > { %2892 = vst.msk [vmem:[#allocation3 + $0x11c] sm:$0xf] %vm856_vm5, %v2876_v4 }
 0x374   : > { %2496 = vst.msk [vmem:[#allocation3 + $0x4c] sm:$0xf] %vm856_vm5, %v2476_v5 }
 0x390   : > { %v1850_v13 = vpop.f32.mrf.mxu3 }
 0x391   : > { %v1851_v45 = vadd.f32 %v1850_v13, %v7192_v20  ;;  %v2520_v20 = vmul.f32 %v7234_v39, %v7142_v12  ;;  %v2841_v12 = vmul.f32 %v7292_v17, %v7126_v7 }
 0x393   : > { %v1860_v16 = vpack.c.bf16 %v1851_v45, %v1851_v45  ;;  %v2528_v32 = vpack.c.bf16 %v2520_v20, %v2520_v20  ;;  %v2849_v11 = vpack.c.bf16 %v2841_v12, %v2841_v12 }
 0x395   : > { %v1894_v18 = vsel %vm1892_vm8, %v1860_v16, 0 }
 0x396   : > { %1903 = vmatpush.bf16.msra.mxu2 %v1894_v18 }
 0x398   : > { %v1852_v52 = vpop.f32.mrf.mxu3 }
 0x399   : > { %v1853_v23 = vadd.f32 %v1852_v52, %v7201_v55  ;;  %v2518_v55 = vmul.f32 %v7234_v39, %v7221_v49 }
 0x39a   : > { %3269 = vmatpush.bf16.msrb.mxu2 %v6026_v15 }
 0x39b   : > { %v1861_v30 = vpack.c.bf16 %v1853_v23, %v1853_v23  ;;  %v2526_v40 = vpack.c.bf16 %v2518_v55, %v2518_v55 }
 0x39d   : > { %1863 = vxpose.xlu2.c.b16.start.end [1/1] (short) (narrow) %v1861_v30, 64 }
 0x39e   : > { %3270 = vmatpush.bf16.msrb.mxu2 %v6025_v26 }
 0x436   : > { %2070 = vrot.lane.b32.xlu2 %v6288_v31, %s7931_s29  ;;  %s5329_s29 = sld [smem:[#allocation4 + $0x1]] }
 0x43e   : > { %v1871_v34 = vpop.trf.xlu2  ;;  %2549 = vrot.lane.b32.xlu2 %v2528_v32, %s7961_s27 }
 0x43f   : > { %5102 = vmatmul.msk.bf16.vlgmr.msra.gmra.mxu2 %vm1879_vm9, %v1871_v34 }
 0x446   : > { %2795 = vrot.lane.b32.xlu2 %v7227_v37, %s7960_s11 }
 0x44e   : > { %v1872_v41 = vpop.trf.xlu2  ;;  %2545 = vrot.lane.b32.xlu2 %v2526_v40, %s7961_s27 }
 0x44f   : > { %5103 = vmatmul.msk.bf16.gmra.mxu2 %vm1879_vm9, %v1872_v41 }
 0x456   : > { %2607 = vrot.lane.b32.xlu2 %v7117_v1, %s7962_s23  ;;  %v2714_v1 = vmul.f32 %v7272_v0, %v7221_v49 }
 0x458   : > { %v2722_v6 = vpack.c.bf16 %v2714_v1, %v2714_v1 }
 0x45e   : > { %v1873_v51 = vpop.trf.xlu2  ;;  %2749 = vrot.lane.b32.xlu2 %v2726_v42, %s7964_s20 }
 0x45f   : > { %5104 = vmatmul.msk.bf16.gmra.mxu2 %vm1879_vm9, %v1873_v51 }
 0x466   : > { %2603 = vrot.lane.b32.xlu2 %v7135_v8, %s7962_s23  ;;  %v2447_v8 = vmul.f32 %v7270_v54, %v7219_v35 }
 0x468   : > { %v2455_v62 = vpack.c.bf16 %v2447_v8, %v2447_v8 }
 0x46e   : > { %v1874_v46 = vpop.trf.xlu2  ;;  %2745 = vrot.lane.b32.xlu2 %v2724_v44, %s7964_s20 }
 0x46f   : > { %5105 = vmatmul.msk.bf16.gmra.mxu2 %vm1879_vm9, %v1874_v46 }
 0x476   : > { %2599 = vrot.lane.b32.xlu2 %v7227_v37, %s7962_s23 }
 0x47e   : > { %2741 = vrot.lane.b32.xlu2 %v2722_v6, %s7964_s20 }
 0x486   : > { %2473 = vrot.lane.b32.xlu2 %v2455_v62, %s7963_s0 }
 0x48e   : > { %2869 = vrot.lane.b32.xlu2 %v2849_v11, %s7965_s3 }
 0x490   : > { %v7411_v47 = vpop.permute.xlu2 %2070 }
 0x498   : > { %v2550_v37 = vpop.permute.xlu2 %2549 }
 0x499   : > { %2568 = vst.msk [vmem:[#allocation3 + $0x74] sm:$0xf] %vm856_vm5, %v2550_v37 }
 0x4a0   : > { %v2796_v49 = vpop.permute.xlu2 %2795 }
 0x4a1   : > { %2817 = vst.msk [vmem:[#allocation3 + $0xe8] sm:$0xf] %vm856_vm5, %v2796_v49 }
 0x4a8   : > { %v2546_v48 = vpop.permute.xlu2 %2545  ;;  %v6024_v58 = vld [vmem:[#allocation3 + $0xe8] sm:$0xff] }
 0x4a9   : > { %2566 = vst.msk [vmem:[#allocation3 + $0x6c] sm:$0xf] %vm856_vm5, %v2546_v48  ;;  %3271 = vmatpush.bf16.msrb.mxu2 %v6024_v58 }
 0x4b0   : > { %v2608_v35 = vpop.permute.xlu2 %2607 }
 0x4b1   : > { %2625 = vst.msk [vmem:[#allocation3 + $0x98] sm:$0xf] %vm856_vm5, %v2608_v35 }
 0x4b8   : > { %v2750_v7 = vpop.permute.xlu2 %2749 }
 0x4b9   : > { %2766 = vst.msk [vmem:[#allocation3 + $0xdc] sm:$0xf] %vm856_vm5, %v2750_v7 }
 0x4c0   : > { %v2604_v60 = vpop.permute.xlu2 %2603 }
 0x4c1   : > { %2623 = vst.msk [vmem:[#allocation3 + $0x90] sm:$0xf] %vm856_vm5, %v2604_v60 }
 0x4c2   : > { %v1905_v33 = vpop.f32.mrf.mxu2 }
 0x4c3   : > { %v1925_v55 = vsel %vm1719_vm6, %v1905_v33, -inf }
 0x4c8   : > { %v2746_v61 = vpop.permute.xlu2 %2745 }
 0x4c9   : > { %2764 = vst.msk [vmem:[#allocation3 + $0xd4] sm:$0xf] %vm856_vm5, %v2746_v61 }
 0x4ca   : > { %v1907_v9 = vpop.f32.mrf.mxu2 }
 0x4cb   : > { %v1926_v30 = vsel %vm1719_vm6, %v1907_v9, -inf }
 0x4d0   : > { %v2600_v4 = vpop.permute.xlu2 %2599 }
 0x4d1   : > { %2621 = vst.msk [vmem:[#allocation3 + $0x88] sm:$0xf] %vm856_vm5, %v2600_v4 }
 0x4d2   : > { %v1910_v5 = vpop.f32.mrf.mxu2 }
 0x4d3   : > { %v1927_v40 = vsel %vm1719_vm6, %v1910_v5, -inf }
 0x4d8   : > { %v2742_v13 = vpop.permute.xlu2 %2741 }
 0x4d9   : > { %2762 = vst.msk [vmem:[#allocation3 + $0xcc] sm:$0xf] %vm856_vm5, %v2742_v13 }
 0x4da   : > { %v1912_v45 = vpop.f32.mrf.mxu2 }
 0x4db   : > { %v1928_v41 = vsel %vm1719_vm6, %v1912_v45, -inf }
 0x4e0   : > { %v2474_v16 = vpop.permute.xlu2 %2473 }
 0x4e1   : > { %2495 = vst.msk [vmem:[#allocation3 + $0x48] sm:$0xf] %vm856_vm5, %v2474_v16 }
 0x4e2   : > { %v1915_v18 = vpop.f32.mrf.mxu2 }
 0x4e3   : > { %v1929_v31 = vsel %vm1719_vm6, %v1915_v18, -inf }
 0x4e4   : > { %v1930_v42 = vmax.f32 %v1925_v55, %v1929_v31 }
 0x4e8   : > { %v2870_v15 = vpop.permute.xlu2 %2869 }
 0x4e9   : > { %2889 = vst.msk [vmem:[#allocation3 + $0x110] sm:$0xf] %vm856_vm5, %v2870_v15 }
 0x4ea   : > { %v1917_v52 = vpop.f32.mrf.mxu2 }
 0x4eb   : > { %v1931_v26 = vsel %vm1719_vm6, %v1917_v52, -inf }
 0x4ec   : > { %v1932_v32 = vmax.f32 %v1926_v30, %v1931_v26 }
 0x4ee   : > { %v1937_v44 = vmax.f32 %v1930_v42, %v1932_v32 }
 0x4f2   : > { %v1920_v23 = vpop.f32.mrf.mxu2 }
 0x4f3   : > { %v1933_v20 = vsel %vm1719_vm6, %v1920_v23, -inf }
 0x4f4   : > { %v1934_v51 = vmax.f32 %v1927_v40, %v1933_v20 }
 0x4fa   : > { %v1922_v34 = vpop.f32.mrf.mxu2 }
 0x4fb   : > { %v1935_v59 = vsel %vm1719_vm6, %v1922_v34, -inf }
 0x4fc   : > { %v1936_v38 = vmax.f32 %v1928_v41, %v1935_v59 }
 0x4fe   : > { %v1938_v46 = vmax.f32 %v1934_v51, %v1936_v38 }
 0x500   : > { %v1939_v1 = vmax.f32 %v1937_v44, %v1938_v46 }
 0x502   : > { %v1940_v6 = vrot.slane %v1939_v1, 4 }
 0x504   : > { %v1941_v8 = vmax.f32 %v1939_v1, %v1940_v6 }
 0x506   : > { %v1942_v62 = vrot.slane %v1941_v8, 2 }
 0x508   : > { %v1943_v12 = vmax.f32 %v1941_v8, %v1942_v62 }
 0x50a   : > { %v1944_v11 = vrot.slane %v1943_v12, 1 }
 0x50c   : > { %v1945_v37 = vmax.f32 %v1943_v12, %v1944_v11 }
 0x50e   : > { %v1946_v49 = vmax.f32 %v1945_v37, -1e+30 }
 0x510   : > { %v1957_v48 = vsub.f32 %v1922_v34, %v1946_v49  ;;  %v1956_v58 = vsub.f32 %v1920_v23, %v1946_v49  ;;  %v1954_v35 = vsub.f32 %v1915_v18, %v1946_v49  ;;  %v1955_v7 = vsub.f32 %v1917_v52, %v1946_v49  ;;  %v1855_v52 = vpop.f32.mrf.mxu3 }
 0x511   : > { %v1952_v60 = vsub.f32 %v1910_v5, %v1946_v49  ;;  %v1953_v61 = vsub.f32 %v1912_v45, %v1946_v49  ;;  %v1950_v15 = vsub.f32 %v1905_v33, %v1946_v49  ;;  %v1951_v30 = vsub.f32 %v1907_v9, %v1946_v49 }
 0x512   : > { %v1972_v4 = vmul.f32 1.442695, %v1957_v48  ;;  %v1970_v13 = vmul.f32 1.442695, %v1956_v58  ;;  %v1966_v16 = vmul.f32 1.442695, %v1954_v35  ;;  %v1856_v48 = vadd.f32 %v1855_v52, %v7205_v63 }
 0x513   : > { %v1968_v26 = vmul.f32 1.442695, %v1955_v7  ;;  %v1962_v31 = vmul.f32 1.442695, %v1952_v60  ;;  %v1964_v20 = vmul.f32 1.442695, %v1953_v61 }
 0x514   : > { %6297 = vpow2.f32 %v1972_v4  ;;  %v1958_v32 = vmul.f32 1.442695, %v1950_v15  ;;  %v1960_v55 = vmul.f32 1.442695, %v1951_v30  ;;  %v1947_v7 = vsub.f32 -1e+30, %v1946_v49 }
 0x515   : > { %6299 = vpow2.f32 %v1970_v13 }
 0x516   : > { %6301 = vpow2.f32 %v1966_v16  ;;  %v1948_v16 = vmul.f32 1.442695, %v1947_v7 }
 0x517   : > { %6303 = vpow2.f32 %v1968_v26 }
 0x518   : > { %6305 = vpow2.f32 %v1962_v31  ;;  %v1857_v44 = vpop.f32.mrf.mxu3 }
 0x519   : > { %6307 = vpow2.f32 %v1964_v20  ;;  %v1858_v62 = vadd.f32 %v1857_v44, %v7203_v56  ;;  %v6290_v44 = vld [vmem:[%s7881_s4] ss:$0 sm:$0xff] }
 0x51a   : > { %v6298_v18 = vpop.eup %6297  ;;  %6309 = vpow2.f32 %v1958_v32 }
 0x51b   : > { %v6300_v5 = vpop.eup %6299  ;;  %6311 = vpow2.f32 %v1960_v55  ;;  %v1862_v60 = vpack.c.bf16 %v1858_v62, %v1856_v48  ;;  %v1988_v56 = vsel %vm1719_vm6, %v6298_v18, 0.0 }
 0x51c   : > { %v6302_v45 = vpop.eup %6301  ;;  %v2000_v23 = vpack.c.bf16 %v6298_v18, %v6300_v5  ;;  %v1986_v4 = vsel %vm1719_vm6, %v6300_v5, 0.0  ;;  %6313 = vpow2.f32 %v1948_v16 }
 0x51d   : > { %v6304_v33 = vpop.eup %6303  ;;  %v1982_v11 = vsel %vm1719_vm6, %v6302_v45, 0.0 }
 0x51e   : > { %v6306_v34 = vpop.eup %6305  ;;  %2008 = vmatpush.bf16.msrb.mxu0 %v2000_v23  ;;  %v1999_v41 = vpack.c.bf16 %v6304_v33, %v6302_v45  ;;  %v1984_v35 = vsel %vm1719_vm6, %v6304_v33, 0.0  ;;  %v2024_v33 = vstv %s2023_s22 }
 0x51f   : > { %v6308_v9 = vpop.eup %6307  ;;  %v1978_v46 = vsel %vm1719_vm6, %v6306_v34, 0.0 }
 0x520   : > { %v6310_v40 = vpop.eup %6309  ;;  %v1998_v1 = vpack.c.bf16 %v6308_v9, %v6306_v34  ;;  %v1980_v8 = vsel %vm1719_vm6, %v6308_v9, 0.0 }
 0x521   : > { %v6312_v59 = vpop.eup %6311  ;;  %v1975_v42 = vsel %vm1719_vm6, %v6310_v40, 0.0 }
 0x522   : > { %2009 = vmatpush.bf16.msrb.mxu0 %v1999_v41  ;;  %v1976_v51 = vsel %vm1719_vm6, %v6312_v59, 0.0  ;;  %v1997_v37 = vpack.c.bf16 %v6312_v59, %v6310_v40  ;;  %v6314_v20 = vpop.eup %6313 }
 0x523   : > { %v1977_v38 = vadd.f32 %v1976_v51, %v1975_v42  ;;  %v1974_v55 = vmul.f32 0.0, %v6314_v20 }
 0x525   : > { %v1979_v6 = vadd.f32 %v1978_v46, %v1977_v38 }
 0x526   : > { %2010 = vmatpush.bf16.msrb.mxu0 %v1998_v1 }
 0x527   : > { %v1981_v12 = vadd.f32 %v1980_v8, %v1979_v6 }
 0x529   : > { %v1983_v58 = vadd.f32 %v1982_v11, %v1981_v12 }
 0x52a   : > { %2011 = vmatpush.bf16.msrb.mxu0 %v1997_v37 }
 0x52b   : > { %v1985_v61 = vadd.f32 %v1984_v35, %v1983_v58 }
 0x52d   : > { %5106 = vmatmul.msk.bf16.vlgmr.msrb.gmra.mxu0 %vm1719_vm6, %v1862_v60  ;;  %v1987_v13 = vadd.f32 %v1986_v4, %v1985_v61 }
 0x52f   : > { %v1989_v15 = vadd.f32 %v1988_v56, %v1987_v13 }
 0x531   : > { %v1990_v26 = vrot.slane %v1989_v15, 4 }
 0x533   : > { %v1991_v30 = vadd.f32 %v1990_v26, %v1989_v15 }
 0x535   : > { %v1992_v63 = vrot.slane %v1991_v30, 2 }
 0x537   : > { %v1993_v31 = vadd.f32 %v1992_v63, %v1991_v30 }
 0x539   : > { %v1994_v32 = vrot.slane %v1993_v31, 1 }
 0x53b   : > { %v1995_v49 = vadd.f32 %v1994_v32, %v1993_v31 }
 0x53d   : > { %v1996_v52 = vadd.f32 %v1995_v49, %v1974_v55 }
 0x53f   : > { %6315 = vrcp.f32 %v1996_v52 }
 0x545   : > { %v6316_v23 = vpop.eup %6315 }
 0x5aa   : > { %v2013_v5 = vpop.f32.mrf.mxu0 }
 0x5ab   : > { %v2018_v45 = vadd.f32 %v2013_v5, %v1974_v55 }
 0x5ad   : > { %v2021_v34 = vmul.f32 %v6316_v23, %v2018_v45 }
 0x5af   : > { %v2025_v18 = vmul.f32 %v2024_v33, %v2021_v34 }
 0x5b1   : > { %v2027_v9 = vadd.f32 %v2025_v18, %v1793_v3 }
 0x5b2   : > { %v2015_v40 = vpop.f32.mrf.mxu0 }
 0x5b3   : > { %v2019_v41 = vadd.f32 %v2015_v40, %v1974_v55  ;;  %2031 = vrot.lane.b32.xlu0 %v2027_v9, %s7967_s21 }
 0x5b5   : > { %v2022_v59 = vmul.f32 %v6316_v23, %v2019_v41 }
 0x5b7   : > { %v2026_v42 = vmul.f32 %v2024_v33, %v2022_v59  ;;  %v2972_v33 = vld [vmem:[%s7889_s12 + $0x8] sm:$0xff] }
 0x5b9   : > { %v2028_v51 = vadd.f32 %v2026_v42, %v1794_v14 }
 0x5bb   : > { %2033 = vrot.lane.b32.xlu1 %v2028_v51, %s7967_s21 }
 0x625   : > { %v2032_v38 = vpop.permute.xlu0 %2031 }
 0x626   : > { %2037 = vst.msk [vmem:[#allocation2] sm:$0xff] %vm819_vm4, %v2032_v38 }
 0x62d   : > { %v7453_v2 = vld [vmem:[#allocation2] sm:$0xff]  ;;  %v2034_v3 = vpop.permute.xlu1 %2033 }
 0x62e   : > { %2038 = vst.msk [vmem:[#allocation2 + $0x8] sm:$0xff] %vm819_vm4, %v2034_v3  ;;  %v2169_v46 = vpack.c.bf16 %v7453_v2, %v7453_v2  ;;  %v2045_v10 = vmul.f32 %v6290_v44, %v7453_v2  ;;  %v2153_v60 = vmul.f32 %v7209_v28, %v7453_v2  ;;  %v2131_v15 = vmul.f32 %v7207_v27, %v7453_v2 }
 0x62f   : > { %2331 = vst.msk [vmem:[#allocation2] sm:$0xff] %vm819_vm4, %v6779_v53  ;;  %v7478_v53 = vld [vmem:[%s7881_s4] ss:$0 sm:$0xff]  ;;  %v2189_v18 = vmul.f32 %v7264_v21, %v7453_v2 }
 0x630   : > { %2173 = vrot.lane.b32.xlu1 %v2169_v46, %s7960_s11  ;;  %v2047_v14 = vpack.c.bf16 %v2045_v10, %v2045_v10  ;;  %v2155_v13 = vpack.c.bf16 %v2153_v60, %v2153_v60  ;;  %v2133_v63 = vpack.c.bf16 %v2131_v15, %v2131_v15 }
 0x631   : > { %v2191_v9 = vpack.c.bf16 %v2189_v18, %v2189_v18  ;;  %v2343_v18 = vld [vmem:[#allocation2 + $0x20] sm:$0xff] }
 0x632   : > { %2049 = vst.msk [vmem:[#allocation3] sm:$0xf] %vm856_vm5, %v2047_v14 }
 0x635   : > { %v2040_v1 = vld [vmem:[#allocation2 + $0x8] sm:$0xff] }
 0x636   : > { %v2170_v6 = vpack.c.bf16 %v2040_v1, %v2040_v1  ;;  %v7463_v8 = vld [vmem:[#allocation2] sm:$0xff]  ;;  %2332 = vst.msk [vmem:[#allocation2 + $0x8] sm:$0xff] %vm819_vm4, %v6792_v57  ;;  %v2046_v12 = vmul.f32 %v6290_v44, %v2040_v1  ;;  %v2190_v11 = vmul.f32 %v7264_v21, %v2040_v1  ;;  %v2154_v16 = vmul.f32 %v7209_v28, %v2040_v1 }
 0x637   : > { %v7469_v62 = vpack.c.bf16 %v7463_v8, %v7463_v8  ;;  %v2351_v57 = vmul.f32 %v7478_v53, %v7463_v8  ;;  %v2132_v20 = vmul.f32 %v7207_v27, %v2040_v1  ;;  %v2095_v28 = vmul.f32 %v7223_v36, %v7453_v2 }
 0x638   : > { %2175 = vrot.lane.b32.xlu0 %v2170_v6, %s7960_s11  ;;  %2115 = vrot.lane.b32.xlu1 %v2169_v46, %s7962_s23  ;;  %v2048_v37 = vpack.c.bf16 %v2046_v12, %v2046_v12  ;;  %v2192_v35 = vpack.c.bf16 %v2190_v11, %v2190_v11  ;;  %v2156_v30 = vpack.c.bf16 %v2154_v16, %v2154_v16 }
 0x639   : > { %2791 = vrot.lane.b32.xlu2 %v7469_v62, %s7960_s11  ;;  %v2359_v58 = vpack.c.bf16 %v2351_v57, %v2351_v57  ;;  %v2837_v32 = vmul.f32 %v7292_v17, %v7463_v8  ;;  %v2134_v55 = vpack.c.bf16 %v2132_v20, %v2132_v20  ;;  %v2097_v49 = vpack.c.bf16 %v2095_v28, %v2095_v28 }
 0x63a   : > { %2050 = vst.msk [vmem:[#allocation3 + $0x4] sm:$0xf] %vm856_vm5, %v2048_v37  ;;  %v2096_v5 = vmul.f32 %v7223_v36, %v2040_v1  ;;  %v2073_v27 = vmul.f32 %v7411_v47, %v7453_v2  ;;  %v2074_v34 = vmul.f32 %v7411_v47, %v2040_v1  ;;  %v2641_v40 = vmul.f32 %v7463_v8, %v7211_v29 }
 0x63b   : > { %2367 = vst.msk [vmem:[#allocation3] sm:$0xf] %vm856_vm5, %v2359_v58  ;;  %v2845_v52 = vpack.c.bf16 %v2837_v32, %v2837_v32  ;;  %v2515_v47 = vmul.f32 %v7463_v8, %v7234_v39  ;;  %v2711_v21 = vmul.f32 %v7463_v8, %v7272_v0  ;;  %v2445_v3 = vmul.f32 %v7463_v8, %v7270_v54  ;;  %v2826_v8 = vld [vmem:[#allocation2 + $0x18] sm:$0xff] }
 0x63c   : > { %v2098_v45 = vpack.c.bf16 %v2096_v5, %v2096_v5  ;;  %v2075_v23 = vpack.c.bf16 %v2073_v27, %v2073_v27  ;;  %v2076_v36 = vpack.c.bf16 %v2074_v34, %v2074_v34  ;;  %v2649_v41 = vpack.c.bf16 %v2641_v40, %v2641_v40  ;;  %v2345_v27 = vld [vmem:[#allocation2 + $0x30] sm:$0xff] }
 0x63d   : > { %v7483_v48 = vld [vmem:[#allocation2 + $0x8] sm:$0xff]  ;;  %v2523_v59 = vpack.c.bf16 %v2515_v47, %v2515_v47  ;;  %v2719_v51 = vpack.c.bf16 %v2711_v21, %v2711_v21  ;;  %v2840_v12 = vmul.f32 %v7292_v17, %v2826_v8  ;;  %v2346_v47 = vld [vmem:[#allocation2 + $0x38] sm:$0xff] }
 0x63e   : > { %v2352_v7 = vmul.f32 %v7478_v53, %v7483_v48  ;;  %v2580_v56 = vpack.c.bf16 %v7483_v48, %v7483_v48  ;;  %v2446_v26 = vmul.f32 %v7483_v48, %v7270_v54  ;;  %v2642_v42 = vmul.f32 %v7211_v29, %v7483_v48  ;;  %v7555_v29 = vld [vmem:[#allocation2 + $0x28] sm:$0xff]  ;;  %v2825_v54 = vld [vmem:[#allocation2 + $0x10] sm:$0xff] }
 0x63f   : > { %v2516_v44 = vmul.f32 %v7483_v48, %v7234_v39  ;;  %v2842_v10 = vmul.f32 %v7292_v17, %v7555_v29  ;;  %v2712_v39 = vmul.f32 %v7272_v0, %v7483_v48  ;;  %v2848_v0 = vpack.c.bf16 %v2840_v12, %v2840_v12 }
 0x640   : > { %2117 = vrot.lane.b32.xlu0 %v2170_v6, %s7962_s23  ;;  %2057 = vrot.lane.b32.xlu1 %v2169_v46, %s7927_s2  ;;  %v2360_v61 = vpack.c.bf16 %v2352_v7, %v2352_v7  ;;  %v2454_v31 = vpack.c.bf16 %v2446_v26, %v2446_v26  ;;  %v2650_v38 = vpack.c.bf16 %v2642_v42, %v2642_v42  ;;  %v2971_v7 = vld [vmem:[%s7889_s12] sm:$0xff] }
 0x641   : > { %2197 = vrot.lane.b32.xlu2 %v2192_v35, %s7965_s3  ;;  %v2524_v2 = vpack.c.bf16 %v2516_v44, %v2516_v44  ;;  %v2453_v46 = vpack.c.bf16 %v2445_v3, %v2445_v3  ;;  %v2850_v1 = vpack.c.bf16 %v2842_v10, %v2842_v10  ;;  %v2838_v58 = vmul.f32 %v7292_v17, %v7483_v48 }
 0x642   : > { %v7494_v4 = vld [vmem:[#allocation3] sm:$0xff]  ;;  %v2353_v16 = vmul.f32 %v7478_v53, %v2825_v54  ;;  %v2358_v21 = vmul.f32 %v7478_v53, %v2346_v47  ;;  %v6021_v47 = vld [vmem:[#allocation3 + $0xd0] sm:$0xff] }
 0x643   : > { %2368 = vst.msk [vmem:[#allocation3 + $0x4] sm:$0xf] %vm856_vm5, %v2360_v61  ;;  %v2846_v60 = vpack.c.bf16 %v2838_v58, %v2838_v58 }
 0x644   : > { %v2366_v44 = vpack.c.bf16 %v2358_v21, %v2358_v21 }
 0x648   : > { %2059 = vrot.lane.b32.xlu0 %v2170_v6, %s7927_s2  ;;  %2159 = vrot.lane.b32.xlu1 %v2155_v13, %s7964_s20  ;;  %v2720_v6 = vpack.c.bf16 %v2712_v39, %v2712_v39 }
 0x649   : > { %2597 = vrot.lane.b32.xlu2 %v2580_v56, %s7962_s23 }
 0x650   : > { %2161 = vrot.lane.b32.xlu0 %v2156_v30, %s7964_s20  ;;  %2137 = vrot.lane.b32.xlu1 %v2133_v63, %s7929_s19 }
 0x651   : > { %2471 = vrot.lane.b32.xlu2 %v2454_v31, %s7963_s0 }
 0x658   : > { %2139 = vrot.lane.b32.xlu0 %v2134_v55, %s7929_s19  ;;  %2101 = vrot.lane.b32.xlu1 %v2097_v49, %s7961_s27  ;;  %v2354_v55 = vmul.f32 %v7478_v53, %v2826_v8  ;;  %v5979_v8 = vld [vmem:[%s7886_s9 + $0x4] sm:$0xf] }
 0x659   : > { %2861 = vrot.lane.b32.xlu2 %v2845_v52, %s7965_s3 }
 0x65a   : > { %v2362_v5 = vpack.c.bf16 %v2354_v55, %v2354_v55 }
 0x660   : > { %2103 = vrot.lane.b32.xlu0 %v2098_v45, %s7961_s27  ;;  %2079 = vrot.lane.b32.xlu1 %v2075_v23, %s7963_s0  ;;  %v2357_v45 = vmul.f32 %v7478_v53, %v2345_v27 }
 0x661   : > { %2980 = vperm.xlu2 %6272, %v2972_v33  }
 0x662   : > { %v2365_v34 = vpack.c.bf16 %v2357_v45, %v2357_v45  ;;  %v6004_v45 = vld [vmem:[#allocation3 + $0x48] sm:$0xff] }
 0x668   : > { %2081 = vrot.lane.b32.xlu0 %v2076_v36, %s7963_s0  ;;  %2195 = vrot.lane.b32.xlu1 %v2191_v9, %s7965_s3 }
 0x670   : > { %2665 = vrot.lane.b32.xlu0 %v2649_v41, %s7929_s19  ;;  %2399 = vrot.lane.b32.xlu1 %v7469_v62, %s7927_s2 }
 0x678   : > { %2539 = vrot.lane.b32.xlu0 %v2523_v59, %s7961_s27  ;;  %2595 = vrot.lane.b32.xlu1 %v7469_v62, %s7962_s23  ;;  %v2839_v62 = vmul.f32 %v7292_v17, %v2825_v54  ;;  %v6009_v54 = vld [vmem:[#allocation3 + $0x70] sm:$0xff] }
 0x67a   : > { %v2847_v57 = vpack.c.bf16 %v2839_v62, %v2839_v62  ;;  %v5116_v62 = vld [vmem:[%s7886_s9 + $0x8] sm:$0xf0] }
 0x680   : > { %2735 = vrot.lane.b32.xlu0 %v2719_v51, %s7964_s20  ;;  %2667 = vrot.lane.b32.xlu1 %v2650_v38, %s7929_s19  ;;  %s7976_s19 = sld [smem:[#allocation32_spill]] }
 0x688   : > { %2401 = vrot.lane.b32.xlu0 %v2580_v56, %s7927_s2  ;;  %2541 = vrot.lane.b32.xlu1 %v2524_v2, %s7961_s27  ;;  %s7968_s2 = smov 16  }
 0x690   : > { %2793 = vrot.lane.b32.xlu0 %v2580_v56, %s7960_s11  ;;  %2469 = vrot.lane.b32.xlu1 %v2453_v46, %s7963_s0 }
 0x693   : > { %v2792_v14 = vpop.permute.xlu2 %2791 }
 0x694   : > { %2815 = vst.msk [vmem:[#allocation3 + $0xe0] sm:$0xf] %vm856_vm5, %v2792_v14 }
 0x698   : > { %2871 = vrot.lane.b32.xlu0 %v2850_v1, %s7965_s3  ;;  %2737 = vrot.lane.b32.xlu1 %v2720_v6, %s7964_s20  ;;  %v6010_v6 = vld [vmem:[#allocation3 + $0x78] sm:$0xff] }
 0x69b   : > { %v2198_v11 = vpop.permute.xlu2 %2197 }
 0x69c   : > { %2202 = vst.msk [vmem:[#allocation3 + $0x44] sm:$0xf] %vm856_vm5, %v2198_v11 }
 0x6a0   : > { %2865 = vrot.lane.b32.xlu0 %v2847_v57, %s7965_s3  ;;  %2867 = vrot.lane.b32.xlu1 %v2848_v0, %s7965_s3  ;;  %v5119_v57 = vor.u32 %v5979_v8, %v5116_v62  ;;  %v6008_v0 = vld [vmem:[#allocation3 + $0x68] sm:$0xff] }
 0x6a2   : > { %v2174_v37 = vpop.permute.xlu1 %2173 }
 0x6a3   : > { %2179 = vst.msk [vmem:[#allocation3 + $0x38] sm:$0xf] %vm856_vm5, %v2174_v37  ;;  %v2598_v35 = vpop.permute.xlu2 %2597  ;;  %v7580_v48 = vld [vmem:[#allocation3 + $0x40] sm:$0xf0]  ;;  %v6018_v37 = vld [vmem:[#allocation3 + $0xb8] sm:$0xff] }
 0x6a4   : > { %2620 = vst.msk [vmem:[#allocation3 + $0x84] sm:$0xf] %vm856_vm5, %v2598_v35  ;;  %v6017_v35 = vld [vmem:[#allocation3 + $0xb0] sm:$0xff] }
 0x6a8   : > { %2863 = vrot.lane.b32.xlu0 %v2846_v60, %s7965_s3  ;;  %2975 = vperm.xlu1 %6271, %v2971_v7  }
 0x6aa   : > { %v5150_v61 = vld [vmem:[#allocation3 + $0x38] sm:$0xf]  ;;  %v2116_v13 = vpop.permute.xlu1 %2115  ;;  %v2176_v56 = vpop.permute.xlu0 %2175 }
 0x6ab   : > { %2429 = vst.msk [vmem:[#allocation3 + $0x38] sm:$0xf] %vm856_vm5, %v7298_v22  ;;  %v2472_v17 = vpop.permute.xlu2 %2471  ;;  %v2361_v22 = vpack.c.bf16 %v2353_v16, %v2353_v16 }
 0x6ac   : > { %2121 = vst.msk [vmem:[#allocation3 + $0x20] sm:$0xf] %vm856_vm5, %v2116_v13 }
 0x6ad   : > { %2494 = vst.msk [vmem:[#allocation3 + $0x44] sm:$0xf] %vm856_vm5, %v2472_v17 }
 0x6ae   : > { %2180 = vst.msk [vmem:[#allocation3 + $0x3c] sm:$0xf] %vm856_vm5, %v2176_v56 }
 0x6b2   : > { %v2058_v15 = vpop.permute.xlu1 %2057  ;;  %v2118_v26 = vpop.permute.xlu0 %2117 }
 0x6b3   : > { %2063 = vst.msk [vmem:[#allocation3 + $0x8] sm:$0xf] %vm856_vm5, %v2058_v15  ;;  %v2862_v30 = vpop.permute.xlu2 %2861 }
 0x6b4   : > { %2885 = vst.msk [vmem:[#allocation3 + $0x100] sm:$0xf] %vm856_vm5, %v2862_v30 }
 0x6b5   : > { %v5988_v63 = vld [vmem:[#allocation3 + $0x38] sm:$0xf0]  ;;  %2122 = vst.msk [vmem:[#allocation3 + $0x24] sm:$0xf] %vm856_vm5, %v2118_v26  ;;  %v6013_v26 = vld [vmem:[#allocation3 + $0x90] sm:$0xff] }
 0x6b6   : > { %2430 = vst.msk [vmem:[#allocation3 + $0x3c] sm:$0xf] %vm856_vm5, %v7300_v25  ;;  %v5151_v31 = vor.u32 %v5988_v63, %v5150_v61  ;;  %v6016_v61 = vld [vmem:[#allocation3 + $0xa8] sm:$0xff]  ;;  %v6006_v63 = vld [vmem:[#allocation3 + $0x58] sm:$0xff] }
 0x6b7   : > { %2369 = vst.msk [vmem:[#allocation3 + $0x8] sm:$0xf] %vm856_vm5, %v2361_v22  ;;  %v6012_v22 = vld [vmem:[#allocation3 + $0x88] sm:$0xff] }
 0x6b8   : > { %2301 = vmatpush.bf16.msra.mxu3 %v5151_v31 }
 0x6ba   : > { %v2160_v20 = vpop.permute.xlu1 %2159  ;;  %v2060_v28 = vpop.permute.xlu0 %2059 }
 0x6bb   : > { %2165 = vst.msk [vmem:[#allocation3 + $0x30] sm:$0xf] %vm856_vm5, %v2160_v20  ;;  %v5172_v20 = vld [vmem:[#allocation8 + $0x8] sm:$0xf] }
 0x6bc   : > { %2064 = vst.msk [vmem:[#allocation3 + $0xc] sm:$0xf] %vm856_vm5, %v2060_v28  ;;  %v5993_v28 = vld [vmem:[#allocation8 + $0x18] sm:$0xf0] }
 0x6bd   : > { %v6002_v32 = vld [vmem:[#allocation3 + $0x38] sm:$0xff]  ;;  %2427 = vst.msk [vmem:[#allocation3 + $0x30] sm:$0xf] %vm856_vm5, %v7311_v43  ;;  %v5173_v27 = vor.u32 %v5993_v28, %v5172_v20 }
 0x6be   : > { %3227 = vmatpush.bf16.msra.mxu0 %v6002_v32 }
 0x6c2   : > { %v2138_v49 = vpop.permute.xlu1 %2137  ;;  %v2162_v52 = vpop.permute.xlu0 %2161 }
 0x6c3   : > { %2143 = vst.msk [vmem:[#allocation3 + $0x28] sm:$0xf] %vm856_vm5, %v2138_v49  ;;  %v5982_v25 = vld [vmem:[#allocation3 + $0x8] sm:$0xff]  ;;  %v6005_v49 = vld [vmem:[#allocation3 + $0x50] sm:$0xff] }
 0x6c4   : > { %2166 = vst.msk [vmem:[#allocation3 + $0x34] sm:$0xf] %vm856_vm5, %v2162_v52 }
 0x6c5   : > { %2425 = vst.msk [vmem:[#allocation3 + $0x28] sm:$0xf] %vm856_vm5, %v7336_v24  ;;  %v2355_v24 = vmul.f32 %v7478_v53, %v2343_v18  ;;  %v5164_v18 = vld [vmem:[#allocation8] sm:$0xf] }
 0x6c6   : > { %2370 = vst.msk [vmem:[#allocation3 + $0xc] sm:$0xf] %vm856_vm5, %v2362_v5 }
 0x6c7   : > { %v2363_v59 = vpack.c.bf16 %v2355_v24, %v2355_v24  ;;  %v5992_v24 = vld [vmem:[#allocation8 + $0x10] sm:$0xf0] }
 0x6c8   : > { %v5165_v21 = vor.u32 %v5992_v24, %v5164_v18 }
 0x6ca   : > { %v2102_v43 = vpop.permute.xlu1 %2101  ;;  %v2140_v23 = vpop.permute.xlu0 %2139 }
 0x6cb   : > { %2107 = vst.msk [vmem:[#allocation3 + $0x18] sm:$0xf] %vm856_vm5, %v2102_v43  ;;  %v5987_v33 = vld [vmem:[#allocation3 + $0x30] sm:$0xff] }
 0x6cc   : > { %2144 = vst.msk [vmem:[#allocation3 + $0x2c] sm:$0xf] %vm856_vm5, %v2140_v23  ;;  %2302 = vmatpush.bf16.msra.mxu3 %v5987_v33  ;;  %v6022_v23 = vld [vmem:[#allocation3 + $0xd8] sm:$0xff]  ;;  %v5990_v33 = vld [vmem:[#allocation8 + $0x4] sm:$0xf] }
 0x6cd   : > { %2428 = vst.msk [vmem:[#allocation3 + $0x34] sm:$0xf] %vm856_vm5, %v7313_v50  ;;  %v5985_v50 = vld [vmem:[#allocation3 + $0x20] sm:$0xff]  ;;  %v5996_v43 = vld [vmem:[#allocation3 + $0x8] sm:$0xff] }
 0x6ce   : > { %2373 = vst.msk [vmem:[#allocation3 + $0x18] sm:$0xf] %vm856_vm5, %v2365_v34  ;;  %v5166_v34 = vld [vmem:[#allocation8 + $0x14] sm:$0xf0] }
 0x6d2   : > { %v2080_v36 = vpop.permute.xlu1 %2079  ;;  %v2104_v9 = vpop.permute.xlu0 %2103 }
 0x6d3   : > { %2085 = vst.msk [vmem:[#allocation3 + $0x10] sm:$0xf] %vm856_vm5, %v2080_v36  ;;  %v5986_v40 = vld [vmem:[#allocation3 + $0x28] sm:$0xff] }
 0x6d4   : > { %2108 = vst.msk [vmem:[#allocation3 + $0x1c] sm:$0xf] %vm856_vm5, %v2104_v9  ;;  %v6001_v41 = vld [vmem:[#allocation3 + $0x30] sm:$0xff]  ;;  %2303 = vmatpush.bf16.msra.mxu3 %v5986_v40 }
 0x6d5   : > { %2426 = vst.msk [vmem:[#allocation3 + $0x2c] sm:$0xf] %vm856_vm5, %v7338_v19  ;;  %3228 = vmatpush.bf16.msra.mxu0 %v6001_v41  ;;  %v2356_v19 = vmul.f32 %v7478_v53, %v7555_v29  ;;  %v5114_v53 = vld [vmem:[%s7886_s9] sm:$0xf]  ;;  %v5980_v29 = vld [vmem:[%s7886_s9 + $0x4] sm:$0xf0] }
 0x6d6   : > { %2371 = vst.msk [vmem:[#allocation3 + $0x10] sm:$0xf] %vm856_vm5, %v2363_v59  ;;  %v5115_v58 = vor.u32 %v5980_v29, %v5114_v53  ;;  %v5995_v41 = vld [vmem:[#allocation3] sm:$0xff]  ;;  %v5169_v59 = vor.u32 %v5990_v33, %v5166_v34 }
 0x6d7   : > { %v2364_v14 = vpack.c.bf16 %v2356_v19, %v2356_v19 }
 0x6d8   : > { %2304 = vmatpush.bf16.msra.mxu3 %v5985_v50  ;;  %v6030_v50 = vld [vmem:[#allocation3 + $0x118] sm:$0xff] }
 0x6da   : > { %v2196_v42 = vpop.permute.xlu1 %2195  ;;  %v2082_v51 = vpop.permute.xlu0 %2081 }
 0x6db   : > { %2201 = vst.msk [vmem:[#allocation3 + $0x40] sm:$0xf] %vm856_vm5, %v2196_v42  ;;  %v5984_v38 = vld [vmem:[#allocation3 + $0x18] sm:$0xff]  ;;  %v6020_v42 = vld [vmem:[#allocation3 + $0xc8] sm:$0xff] }
 0x6dc   : > { %2086 = vst.msk [vmem:[#allocation3 + $0x14] sm:$0xf] %vm856_vm5, %v2082_v51  ;;  %v6000_v2 = vld [vmem:[#allocation3 + $0x28] sm:$0xff]  ;;  %2305 = vmatpush.bf16.msra.mxu3 %v5984_v38 }
 0x6dd   : > { %2374 = vst.msk [vmem:[#allocation3 + $0x1c] sm:$0xf] %vm856_vm5, %v2366_v44  ;;  %3229 = vmatpush.bf16.msra.mxu0 %v6000_v2  ;;  %v5991_v38 = vld [vmem:[#allocation8 + $0xc] sm:$0xf]  ;;  %v5174_v44 = vld [vmem:[#allocation8 + $0x1c] sm:$0xf0] }
 0x6e2   : > { %v2400_v3 = vpop.permute.xlu1 %2399  ;;  %v2666_v46 = vpop.permute.xlu0 %2665  ;;  %v5154_v10 = vld [vmem:[#allocation3 + $0x40] sm:$0xf] }
 0x6e3   : > { %2423 = vst.msk [vmem:[#allocation3 + $0x20] sm:$0xf] %vm856_vm5, %v2400_v3  ;;  %v5983_v39 = vld [vmem:[#allocation3 + $0x10] sm:$0xff]  ;;  %v5155_v1 = vor.u32 %v7580_v48, %v5154_v10 }
 0x6e4   : > { %2689 = vst.msk [vmem:[#allocation3 + $0xa0] sm:$0xf] %vm856_vm5, %v2666_v46  ;;  %2306 = vmatpush.bf16.msra.mxu3 %v5983_v39  ;;  %v5998_v31 = vld [vmem:[#allocation3 + $0x18] sm:$0xff]  ;;  %v5177_v46 = vor.u32 %v5991_v38, %v5174_v44  ;;  %v5180_v10 = vld [vmem:[#allocation8 + $0x10] sm:$0xf] }
 0x6e5   : > { %2372 = vst.msk [vmem:[#allocation3 + $0x14] sm:$0xf] %vm856_vm5, %v2364_v14  ;;  %2322 = vmatpush.bf16.msra.mxu1 %v5155_v1  ;;  %v5994_v39 = vld [vmem:[#allocation8 + $0x20] sm:$0xf0] }
 0x6e6   : > { %v5181_v1 = vor.u32 %v5994_v39, %v5180_v10 }
 0x6e8   : > { %2307 = vmatpush.bf16.msra.mxu3 %v5982_v25  ;;  %5156 = vmatmul.msk.bf16.vlgmr.msra.gmra.mxu1 %vm1834_vm7, %v5119_v57 }
 0x6e9   : > { %3241 = vmatpush.bf16.msrb.mxu1 %v6010_v6 }
 0x6ea   : > { %v2596_v12 = vpop.permute.xlu1 %2595  ;;  %v2540_v11 = vpop.permute.xlu0 %2539 }
 0x6eb   : > { %2619 = vst.msk [vmem:[#allocation3 + $0x80] sm:$0xf] %vm856_vm5, %v2596_v12 }
 0x6ec   : > { %2563 = vst.msk [vmem:[#allocation3 + $0x60] sm:$0xf] %vm856_vm5, %v2540_v11  ;;  %2308 = vmatpush.bf16.msra.mxu3 %v7494_v4  ;;  %v6014_v4 = vld [vmem:[#allocation3 + $0x98] sm:$0xff]  ;;  %v5997_v25 = vld [vmem:[#allocation3 + $0x10] sm:$0xff] }
 0x6ed   : > { %3242 = vmatpush.bf16.msrb.mxu1 %v6009_v54 }
 0x6ef   : > { %2309 = vmatmul.bf16.vlgmr.msra.gmra.mxu3 %v5115_v58 }
 0x6f0   : > { %3255 = vmatpush.bf16.msrb.mxu3 %v6018_v37  ;;  %v2981_v37 = vpop.permute.xlu2 %2980 }
 0x6f1   : > { %3243 = vmatpush.bf16.msrb.mxu1 %v6008_v0 }
 0x6f2   : > { %v2668_v7 = vpop.permute.xlu1 %2667  ;;  %v2736_v60 = vpop.permute.xlu0 %2735  ;;  %v6011_v52 = vld [vmem:[#allocation3 + $0x80] sm:$0xff] }
 0x6f3   : > { %2690 = vst.msk [vmem:[#allocation3 + $0xa4] sm:$0xf] %vm856_vm5, %v2668_v7 }
 0x6f4   : > { %3256 = vmatpush.bf16.msrb.mxu3 %v6017_v35  ;;  %2759 = vst.msk [vmem:[#allocation3 + $0xc0] sm:$0xf] %vm856_vm5, %v2736_v60 }
 0x6f8   : > { %3257 = vmatpush.bf16.msrb.mxu3 %v6016_v61 }
 0x6fa   : > { %v2542_v13 = vpop.permute.xlu1 %2541  ;;  %v2402_v56 = vpop.permute.xlu0 %2401  ;;  %v6015_v17 = vld [vmem:[#allocation3 + $0xa0] sm:$0xff] }
 0x6fb   : > { %2564 = vst.msk [vmem:[#allocation3 + $0x64] sm:$0xf] %vm856_vm5, %v2542_v13 }
 0x6fc   : > { %2424 = vst.msk [vmem:[#allocation3 + $0x24] sm:$0xf] %vm856_vm5, %v2402_v56  ;;  %3258 = vmatpush.bf16.msrb.mxu3 %v6015_v17 }
 0x700   : > { %3259 = vmatpush.bf16.msrb.mxu3 %v6014_v4 }
 0x702   : > { %v2470_v48 = vpop.permute.xlu1 %2469  ;;  %v2794_v16 = vpop.permute.xlu0 %2793  ;;  %v6007_v15 = vld [vmem:[#allocation3 + $0x60] sm:$0xff] }
 0x703   : > { %2493 = vst.msk [vmem:[#allocation3 + $0x40] sm:$0xf] %vm856_vm5, %v2470_v48  ;;  %v5999_v30 = vld [vmem:[#allocation3 + $0x20] sm:$0xff]  ;;  %3244 = vmatpush.bf16.msrb.mxu1 %v6007_v15 }
 0x704   : > { %2816 = vst.msk [vmem:[#allocation3 + $0xe4] sm:$0xf] %vm856_vm5, %v2794_v16  ;;  %3260 = vmatpush.bf16.msrb.mxu3 %v6013_v26  ;;  %3230 = vmatpush.bf16.msra.mxu0 %v5999_v30 }
 0x707   : > { %3245 = vmatpush.bf16.msrb.mxu1 %v6006_v63 }
 0x708   : > { %3261 = vmatpush.bf16.msrb.mxu3 %v6012_v22  ;;  %3231 = vmatpush.bf16.msra.mxu0 %v5998_v31 }
 0x70a   : > { %v2738_v32 = vpop.permute.xlu1 %2737  ;;  %v2872_v55 = vpop.permute.xlu0 %2871  ;;  %v6003_v40 = vld [vmem:[#allocation3 + $0x40] sm:$0xff] }
 0x70b   : > { %2760 = vst.msk [vmem:[#allocation3 + $0xc4] sm:$0xf] %vm856_vm5, %v2738_v32  ;;  %v6023_v5 = vld [vmem:[#allocation3 + $0xe0] sm:$0xff]  ;;  %3246 = vmatpush.bf16.msrb.mxu1 %v6005_v49 }
 0x70c   : > { %2890 = vst.msk [vmem:[#allocation3 + $0x114] sm:$0xf] %vm856_vm5, %v2872_v55  ;;  %3262 = vmatpush.bf16.msrb.mxu3 %v6011_v52  ;;  %3232 = vmatpush.bf16.msra.mxu0 %v5997_v25 }
 0x70d   : > { %3272 = vmatpush.bf16.msrb.mxu2 %v6023_v5 }
 0x70f   : > { %3263 = vmatmul.bf16.vlgmr.msrb.gmra.mxu3 %v5173_v27  ;;  %3247 = vmatpush.bf16.msrb.mxu1 %v6004_v45 }
 0x710   : > { %3233 = vmatpush.bf16.msra.mxu0 %v5996_v43 }
 0x711   : > { %3273 = vmatpush.bf16.msrb.mxu2 %v6022_v23 }
 0x712   : > { %v2868_v36 = vpop.permute.xlu1 %2867  ;;  %v2866_v9 = vpop.permute.xlu0 %2865  ;;  %v6019_v19 = vld [vmem:[#allocation3 + $0xc0] sm:$0xff] }
 0x713   : > { %2888 = vst.msk [vmem:[#allocation3 + $0x10c] sm:$0xf] %vm856_vm5, %v2868_v36  ;;  %3248 = vmatpush.bf16.msrb.mxu1 %v6003_v40  ;;  %v6029_v51 = vld [vmem:[#allocation3 + $0x110] sm:$0xff] }
 0x714   : > { %2887 = vst.msk [vmem:[#allocation3 + $0x108] sm:$0xf] %vm856_vm5, %v2866_v9  ;;  %3234 = vmatpush.bf16.msra.mxu0 %v5995_v41 }
 0x715   : > { %3274 = vmatpush.bf16.msrb.mxu2 %v6021_v47 }
 0x716   : > { %3249 = vmatmul.bf16.vlgmr.msrb.gmra.mxu1 %v5169_v59 }
 0x717   : > { %3235 = vmatmul.bf16.vlgmr.msra.gmra.mxu0 %v5165_v21 }
 0x718   : > { %3287 = vmatpush.bf16.msrb.mxu0 %v6030_v50 }
 0x719   : > { %3275 = vmatpush.bf16.msrb.mxu2 %v6020_v42 }
 0x71a   : > { %v2864_v2 = vpop.permute.xlu0 %2863  ;;  %v2976_v12 = vpop.permute.xlu1 %2975 }
 0x71b   : > { %2886 = vst.msk [vmem:[#allocation3 + $0x104] sm:$0xf] %vm856_vm5, %v2864_v2  ;;  %v6028_v3 = vld [vmem:[#allocation3 + $0x108] sm:$0xff] }
 0x71c   : > { %3288 = vmatpush.bf16.msrb.mxu0 %v6029_v51 }
 0x71d   : > { %3276 = vmatpush.bf16.msrb.mxu2 %v6019_v19  ;;  %v6294_v19 = vld [vmem:[%s7881_s4 + $0x4] ss:$0 sm:$0xff] }
 0x720   : > { %3289 = vmatpush.bf16.msrb.mxu0 %v6028_v3  ;;  %3277 = vmatmul.bf16.vlgmr.msrb.gmra.mxu2 %v5177_v46  ;;  %v6295_v3 = vld [vmem:[%s7881_s4 + $0x5] ss:$0 sm:$0xff]  ;;  %v3366_v46 = vstv %s5329_s29 }
 0x722   : > { %v6027_v14 = vld [vmem:[#allocation3 + $0x100] sm:$0xff] }
 0x724   : > { %3290 = vmatpush.bf16.msrb.mxu0 %v6027_v14 }
 0x727   : > { %5326 = vmatmul.msk.bf16.vlgmr.msrb.gmra.mxu0 %vm1719_vm6, %v5181_v1 }
 0x765   : > { %v7651_v6 = vpop.f32.mrf.mxu1 }
 0x76d   : > { %v7655_v53 = vpop.f32.mrf.mxu1 }
 0x772   : > { %v7653_v54 = vpop.f32.mrf.mxu3 }
 0x77a   : > { %v7657_v29 = vpop.f32.mrf.mxu3 }
 0x792   : > { %v3264_v11 = vpop.f32.mrf.mxu3 }
 0x793   : > { %v3250_v62 = vpop.f32.mrf.mxu1 }
 0x794   : > { %v3236_v8 = vpop.f32.mrf.mxu0 }
 0x795   : > { %v3237_v0 = vadd.f32 %v3236_v8, %v2976_v12 }
 0x797   : > { %v3251_v58 = vadd.f32 %v3250_v62, %v3237_v0  ;;  %v6291_v62 = vld [vmem:[%s7881_s4 + $0x3] ss:$0 sm:$0xff] }
 0x799   : > { %v3265_v13 = vadd.f32 %v3264_v11, %v3251_v58  ;;  %v6292_v11 = vld [vmem:[%s7881_s4 + $0x1] ss:$0 sm:$0xff] }
 0x79a   : > { %v3266_v17 = vpop.f32.mrf.mxu3 }
 0x79b   : > { %v3252_v7 = vpop.f32.mrf.mxu1 }
 0x79c   : > { %v3238_v57 = vpop.f32.mrf.mxu0 }
 0x79d   : > { %v3239_v35 = vadd.f32 %v3238_v57, %v2981_v37  ;;  %v6293_v57 = vld [vmem:[%s7881_s4 + $0x2] ss:$0 sm:$0xff]  ;;  %v6296_v37 = vld [vmem:[%s7881_s4] ss:$0 sm:$0xff] }
 0x79f   : > { %v3253_v56 = vadd.f32 %v3252_v7, %v3239_v35 }
 0x7a1   : > { %v3267_v48 = vadd.f32 %v3266_v17, %v3253_v56 }
 0x7a3   : > { %v3278_v60 = vpop.f32.mrf.mxu2 }
 0x7a4   : > { %v3292_v61 = vpop.f32.mrf.mxu0  ;;  %v3279_v4 = vadd.f32 %v3278_v60, %v3265_v13 }
 0x7a6   : > { %v3293_v15 = vadd.f32 %v3292_v61, %v3279_v4 }
 0x7a8   : > { %v3297_v22 = vmax.f32 %v3293_v15, 0.0 }
 0x7ab   : > { %v3280_v16 = vpop.f32.mrf.mxu2 }
 0x7ac   : > { %v3281_v26 = vadd.f32 %v3280_v16, %v3267_v48  ;;  %v3294_v30 = vpop.f32.mrf.mxu0 }
 0x7ae   : > { %v3295_v63 = vadd.f32 %v3294_v30, %v3281_v26 }
 0x7b0   : > { %v3298_v31 = vmax.f32 %v3295_v63, 0.0 }
 0x7b2   : > { %v3299_v20 = vpack.c.bf16 %v3298_v31, %v3297_v22 }
 0x7b4   : > { %3358 = vmatpush.bf16.msra.mxu3 %v3299_v20  ;;  %v3301_v28 = vsel %vm1719_vm6, %v3299_v20, 0 }
 0x7b5   : > { %3310 = vmatpush.bf16.xpose.msra.mxu1 %v3301_v28 }
 0x7bc   : > { %5327 = vmatmul.msk.bf16.vlgmr.msra.gmra.mxu1 %vm1719_vm6, %v3299_v20 }
 0x839   : > { %v3312_v32 = vpop.f32.mrf.mxu1 }
 0x83a   : > { %v3317_v55 = vsel %vm1834_vm7, %v3312_v32, -inf }
 0x83b   : > { %3318 = vmax.xlane.f32.xlu0 %v3317_v55 }
 0x841   : > { %v3314_v49 = vpop.f32.mrf.mxu1 }
 0x842   : > { %v3320_v52 = vsel %vm1834_vm7, %v3314_v49, -inf }
 0x843   : > { %3321 = vmax.xlane.f32.xlu1 %v3320_v52 }
 0x8ae   : > { %v3319_v25 = vpop.xlane.xlu0 %3318 }
 0x8af   : > { %v3323_v5 = vsub.f32 %v3319_v25, %v3312_v32 }
 0x8b1   : > { %v3325_v27 = vsel %vm1834_vm7, %v3323_v5, -inf }
 0x8b2   : > { %3326 = vmax.xlane.f32.xlu2 %v3325_v27 }
 0x8b6   : > { %v3322_v45 = vpop.xlane.xlu1 %3321 }
 0x8b7   : > { %v3324_v43 = vsub.f32 %v3322_v45, %v3314_v49 }
 0x8b9   : > { %v3328_v23 = vsel %vm1834_vm7, %v3324_v43, -inf }
 0x8ba   : > { %3329 = vmax.xlane.f32.xlu0 %v3328_v23 }
 0x925   : > { %v3327_v33 = vpop.xlane.xlu2 %3326 }
 0x926   : > { %v3331_v34 = vsub.f32 %v3323_v5, %v3327_v33 }
 0x928   : > { %v3333_v18 = vmul.f32 1.442695, %v3331_v34 }
 0x92a   : > { %6317 = vpow2.f32 %v3333_v18 }
 0x92d   : > { %v3330_v24 = vpop.xlane.xlu0 %3329 }
 0x92e   : > { %v3332_v36 = vsub.f32 %v3324_v43, %v3330_v24 }
 0x930   : > { %v6318_v9 = vpop.eup %6317  ;;  %v3335_v40 = vmul.f32 1.442695, %v3332_v36  ;;  %v2223_v36 = vld [vmem:[%s7887_s10] sm:$0xff] }
 0x931   : > { %v3337_v41 = vsel %vm1834_vm7, %v6318_v9, 0.0 }
 0x932   : > { %6319 = vpow2.f32 %v3335_v40  ;;  %3338 = vadd.xlane.f32.xlu1 %v3337_v41  ;;  %v3566_v41 = vld [vmem:[%s7891_s14 + $0x8] sm:$0xff] }
 0x938   : > { %v6320_v47 = vpop.eup %6319 }
 0x939   : > { %v3340_v59 = vsel %vm1834_vm7, %v6320_v47, 0.0 }
 0x93a   : > { %3341 = vadd.xlane.f32.xlu2 %v3340_v59  ;;  %v3677_v59 = vld [vmem:[%s7893_s16] sm:$0xf] }
 0x952   : > { %3492 = vrot.lane.b32.xlu2 %v6294_v19, %s7968_s2 }
 0x95a   : > { %3528 = vrot.lane.b32.xlu2 %v6295_v3, %s7969_s24  ;;  %s7971_s24 = smov 2  }
 0x9a5   : > { %v3339_v50 = vpop.xlane.xlu1 %3338 }
 0x9a6   : > { %6321 = vrcp.f32 %v3339_v50 }
 0x9ac   : > { %v6322_v42 = vpop.eup %6321 }
 0x9ad   : > { %v3342_v21 = vpop.xlane.xlu2 %3341  ;;  %v3345_v38 = vmul.f32 %v6322_v42, %v6318_v9  ;;  %v2224_v9 = vld [vmem:[%s7887_s10 + $0x8] sm:$0xff] }
 0x9ae   : > { %6323 = vrcp.f32 %v3342_v21 }
 0x9b4   : > { %v6324_v51 = vpop.eup %6323 }
 0x9b5   : > { %v3346_v44 = vmul.f32 %v6324_v51, %v6320_v47  ;;  %v3493_v58 = vpop.permute.xlu2 %3492  ;;  %v3565_v47 = vld [vmem:[%s7891_s14] sm:$0xff] }
 0x9b7   : > { %v3347_v2 = vpack.c.bf16 %v3346_v44, %v3345_v38 }
 0x9b9   : > { %5328 = vmatmul.msk.bf16.vlgmr.msra.gmra.mxu3 %vm1834_vm7, %v3347_v2 }
 0x9bd   : > { %v3529_v33 = vpop.permute.xlu2 %3528 }
 0xa3c   : > { %v3360_v10 = vpop.f32.mrf.mxu3 }
 0xa3d   : > { %v3367_v39 = vmul.f32 %v3366_v46, %v3360_v10 }
 0xa3f   : > { %v3369_v14 = vadd.f32 %v3367_v39, %v3297_v22 }
 0xa41   : > { %3373 = vrot.lane.b32.xlu0 %v3369_v14, %s7967_s21 }
 0xa44   : > { %v3362_v1 = vpop.f32.mrf.mxu3 }
 0xa45   : > { %v3368_v8 = vmul.f32 %v3366_v46, %v3362_v1 }
 0xa47   : > { %v3370_v12 = vadd.f32 %v3368_v8, %v3298_v31 }
 0xa49   : > { %3470 = vrot.lane.b32.xlu0 %v6291_v62, %s7970_s6  ;;  %3375 = vrot.lane.b32.xlu1 %v3370_v12, %s7967_s21  ;;  %s6420_s21 = scalar_lea.hbm %s7976_s19, 64 }
 0xa51   : > { %3412 = vrot.lane.b32.xlu0 %v6292_v11, %s7971_s24  ;;  %3434 = vrot.lane.b32.xlu1 %v6293_v57, %s7972_s7  ;;  %s7973_s7 = smov 118  }
 0xab3   : > { %v3374_v0 = vpop.permute.xlu0 %3373 }
 0xab4   : > { %3379 = vst.msk [vmem:[#allocation2] sm:$0xff] %vm819_vm4, %v3374_v0 }
 0xabb   : > { %v3523_v35 = vld [vmem:[#allocation2] sm:$0xff]  ;;  %v3471_v7 = vpop.permute.xlu0 %3470  ;;  %v3376_v60 = vpop.permute.xlu1 %3375 }
 0xabc   : > { %v3473_v61 = vmul.f32 %v3523_v35, %v3471_v7  ;;  %3380 = vst.msk [vmem:[#allocation2 + $0x8] sm:$0xff] %vm819_vm4, %v3376_v60  ;;  %v3511_v13 = vpack.c.bf16 %v3523_v35, %v3523_v35  ;;  %v3495_v56 = vmul.f32 %v3523_v35, %v3493_v58  ;;  %v3387_v17 = vmul.f32 %v6296_v37, %v3523_v35  ;;  %v6032_v60 = vld [vmem:[%s7890_s13 + $0x4] sm:$0xf0] }
 0xabd   : > { %v3531_v34 = vmul.f32 %v3529_v33, %v3523_v35 }
 0xabe   : > { %v3475_v4 = vpack.c.bf16 %v3473_v61, %v3473_v61  ;;  %3515 = vrot.lane.b32.xlu1 %v3511_v13, %s7960_s11  ;;  %v3497_v48 = vpack.c.bf16 %v3495_v56, %v3495_v56  ;;  %v3389_v16 = vpack.c.bf16 %v3387_v17, %v3387_v17  ;;  %v6031_v56 = vld [vmem:[%s7890_s13 + $0x4] sm:$0xf]  ;;  %v5339_v17 = vld [vmem:[%s7890_s13 + $0x8] sm:$0xf0] }
 0xabf   : > { %v3533_v18 = vpack.c.bf16 %v3531_v34, %v3531_v34 }
 0xac0   : > { %3501 = vrot.lane.b32.xlu2 %v3497_v48, %s7964_s20  ;;  %3479 = vrot.lane.b32.xlu0 %v3475_v4, %s7973_s7  ;;  %3391 = vst.msk [vmem:[#allocation3] sm:$0xf] %vm856_vm5, %v3389_v16  ;;  %v5342_v48 = vor.u32 %v6031_v56, %v5339_v17  ;;  %v5407_v16 = vld [vmem:[%s7894_s17 + $0x30] sm:$0xf]  ;;  %v6110_v56 = vld [vmem:[#allocation9 + $0x1dc] sm:$0xf0] }
 0xac1   : > { %v6106_v17 = vld [vmem:[#allocation9 + $0x1c4] sm:$0xf] }
 0xac3   : > { %v3408_v15 = vld [vmem:[#allocation2 + $0x8] sm:$0xff]  ;;  %v3435_v28 = vpop.permute.xlu1 %3434  ;;  %v3413_v49 = vpop.permute.xlu0 %3412 }
 0xac4   : > { %v3496_v26 = vmul.f32 %v3493_v58, %v3408_v15  ;;  %v3474_v30 = vmul.f32 %v3471_v7, %v3408_v15  ;;  %v3512_v63 = vpack.c.bf16 %v3408_v15, %v3408_v15  ;;  %v3388_v20 = vmul.f32 %v6296_v37, %v3408_v15  ;;  %v5337_v7 = vld [vmem:[%s7890_s13] sm:$0xf] }
 0xac5   : > { %v3437_v55 = vmul.f32 %v3523_v35, %v3435_v28  ;;  %v3415_v25 = vmul.f32 %v3523_v35, %v3413_v49  ;;  %v3416_v5 = vmul.f32 %v3413_v49, %v3408_v15  ;;  %v3438_v27 = vmul.f32 %v3435_v28, %v3408_v15  ;;  %v6046_v28 = vld [vmem:[%s7894_s17 + $0x24] sm:$0xf] }
 0xac6   : > { %v3498_v22 = vpack.c.bf16 %v3496_v26, %v3496_v26  ;;  %v3476_v31 = vpack.c.bf16 %v3474_v30, %v3474_v30  ;;  %v3390_v32 = vpack.c.bf16 %v3388_v20, %v3388_v20  ;;  %v3532_v24 = vmul.f32 %v3529_v33, %v3408_v15  ;;  %v6049_v15 = vld [vmem:[%s7894_s17 + $0x34] sm:$0xf0]  ;;  %v6048_v26 = vld [vmem:[%s7894_s17 + $0x34] sm:$0xf] }
 0xac7   : > { %v3439_v52 = vpack.c.bf16 %v3437_v55, %v3437_v55  ;;  %v3417_v45 = vpack.c.bf16 %v3415_v25, %v3415_v25  ;;  %v3418_v43 = vpack.c.bf16 %v3416_v5, %v3416_v5  ;;  %v3440_v23 = vpack.c.bf16 %v3438_v27, %v3438_v27  ;;  %v6045_v25 = vld [vmem:[%s7894_s17 + $0x14] sm:$0xf0]  ;;  %v6044_v5 = vld [vmem:[%s7894_s17 + $0x14] sm:$0xf]  ;;  %v5393_v27 = vld [vmem:[%s7894_s17 + $0x18] sm:$0xf0] }
 0xac8   : > { %3517 = vrot.lane.b32.xlu0 %v3512_v63, %s7960_s11  ;;  %3503 = vrot.lane.b32.xlu1 %v3498_v22, %s7964_s20  ;;  %3392 = vst.msk [vmem:[#allocation3 + $0x4] sm:$0xf] %vm856_vm5, %v3390_v32  ;;  %s7974_s11 = smov 127   ;;  %v3534_v40 = vpack.c.bf16 %v3532_v24, %v3532_v24  ;;  %v5408_v30 = vor.u32 %v6049_v15, %v5407_v16  ;;  %v5399_v22 = vld [vmem:[%s7894_s17 + $0x20] sm:$0xf] }
 0xac9   : > { %3481 = vrot.lane.b32.xlu2 %v3476_v31, %s7973_s7  ;;  %v6047_v31 = vld [vmem:[%s7894_s17 + $0x24] sm:$0xf0]  ;;  %v5401_v32 = vld [vmem:[%s7894_s17 + $0x28] sm:$0xf0]  ;;  %v5396_v33 = vor.u32 %v6044_v5, %v5393_v27 }
 0xaca   : > { %3755 = vmatpush.bf16.msrb.mxu3 %v5408_v30  ;;  %v5400_v55 = vor.u32 %v6047_v31, %v5399_v22  ;;  %v5404_v49 = vor.u32 %v6046_v28, %v5401_v32  ;;  %v6158_v30 = vld [vmem:[#allocation9 + $0x35c] sm:$0xf0]  ;;  %v5835_v22 = vld [vmem:[#allocation9 + $0x360] sm:$0xf0] }
 0xacb   : > { %v5609_v31 = vld [vmem:[#allocation9 + $0x180] sm:$0xf]  ;;  %v6098_v32 = vld [vmem:[#allocation9 + $0x184] sm:$0xf] }
 0xacc   : > { %v6150_v5 = vld [vmem:[#allocation9 + $0x31c] sm:$0xf0] }
 0xace   : > { %3756 = vmatpush.bf16.msrb.mxu3 %v5400_v55  ;;  %v5611_v55 = vld [vmem:[#allocation9 + $0x1a0] sm:$0xf0] }
 0xacf   : > { %v6033_v61 = vld [vmem:[#allocation3] sm:$0xff] }
 0xad0   : > { %3459 = vrot.lane.b32.xlu0 %v3512_v63, %s7962_s23  ;;  %3457 = vrot.lane.b32.xlu1 %v3511_v13, %s7962_s23 }
 0xad1   : > { %3443 = vrot.lane.b32.xlu2 %v3439_v52, %s7961_s27  ;;  %v5391_v52 = vld [vmem:[%s7894_s17 + $0x10] sm:$0xf] }
 0xad8   : > { %3421 = vrot.lane.b32.xlu0 %v3417_v45, %s7963_s0  ;;  %3445 = vrot.lane.b32.xlu1 %v3440_v23, %s7961_s27  ;;  %v5392_v45 = vor.u32 %v6045_v25, %v5391_v52  ;;  %v5614_v52 = vor.u32 %v6098_v32, %v5611_v55  ;;  %v5801_v25 = vld [vmem:[#allocation9 + $0x300] sm:$0xf]  ;;  %v5905_v32 = vld [vmem:[#allocation9 + $0x3c8] sm:$0xf] }
 0xad9   : > { %3423 = vrot.lane.b32.xlu2 %v3418_v43, %s7963_s0  ;;  %v6175_v55 = vld [vmem:[#allocation9 + $0x3e4] sm:$0xf0]  ;;  %s6178_s0 = sshll.u32 %s6621_s1, 5  ;;  %s7978_s1 = sand.u32 1, %s6466_s30  }
 0xada   : > { %3757 = vmatpush.bf16.msrb.mxu3 %v5392_v45  ;;  %v5577_v45 = vld [vmem:[#allocation9 + $0x140] sm:$0xf]  ;;  %s4791_s22 = scalar_lea.hbm %s7976_s19, %s6178_s0  ;;  %s4780_s5 = scalar_lea.sflag [#allocation6], %s7978_s1 }
 0xae0   : > { %3401 = vrot.lane.b32.xlu0 %v3512_v63, %s7974_s11  ;;  %3399 = vrot.lane.b32.xlu1 %v3511_v13, %s7974_s11  ;;  %v5338_v13 = vor.u32 %v6032_v60, %v5337_v7  ;;  %v5409_v63 = vld [vmem:[%s7894_s17 + $0x38] sm:$0xf0]  ;;  %v6162_v7 = vld [vmem:[#allocation9 + $0x384] sm:$0xf] }
 0xae1   : > { %3537 = vrot.lane.b32.xlu2 %v3533_v18, %s7965_s3  ;;  %v5412_v20 = vor.u32 %v6048_v26, %v5409_v63  ;;  %v5867_v60 = vld [vmem:[#allocation9 + $0x3a0] sm:$0xf0]  ;;  %v5833_v26 = vld [vmem:[#allocation9 + $0x340] sm:$0xf] }
 0xae2   : > { %v6154_v63 = vld [vmem:[#allocation9 + $0x344] sm:$0xf] }
 0xae3   : > { %v5838_v27 = vor.u32 %v6154_v63, %v5835_v22  ;;  %v6118_v22 = vld [vmem:[#allocation9 + $0x21c] sm:$0xf0] }
 0xae8   : > { %2227 = vperm.xlu0 %6270, %v2223_v36   ;;  %3539 = vrot.lane.b32.xlu1 %v3534_v40, %s7965_s3  ;;  %s4793_s3 = sshll.u32 %s6699_s26, 4  ;;  %s4794_s3 = int_to_ptr.vmem [resolvable:$true] %s4793_s3 }
 0xae9   : > { %2232 = vperm.xlu2 %6272, %v2224_v9  }
 0xaf0   : > { %3574 = vperm.xlu0 %6270, %v3566_v41   ;;  %3569 = vperm.xlu1 %6271, %v3565_v47  }
 0xaf1   : > { %3680 = vperm.xlu2 %6272, %v3677_v59  }
 0xb1a   : > { %v3502_v50 = vpop.permute.xlu2 %3501 }
 0xb1b   : > { %3507 = vst.msk [vmem:[#allocation3 + $0x30] sm:$0xf] %vm856_vm5, %v3502_v50 }
 0xb23   : > { %v3482_v21 = vpop.permute.xlu2 %3481 }
 0xb24   : > { %3486 = vst.msk [vmem:[#allocation3 + $0x2c] sm:$0xf] %vm856_vm5, %v3482_v21 }
 0xb2b   : > { %v3444_v42 = vpop.permute.xlu2 %3443 }
 0xb2c   : > { %3449 = vst.msk [vmem:[#allocation3 + $0x18] sm:$0xf] %vm856_vm5, %v3444_v42 }
 0xb30   : > { %v3516_v51 = vpop.permute.xlu1 %3515 }
 0xb31   : > { %3521 = vst.msk [vmem:[#allocation3 + $0x38] sm:$0xf] %vm856_vm5, %v3516_v51 }
 0xb32   : > { %v3480_v38 = vpop.permute.xlu0 %3479 }
 0xb33   : > { %3485 = vst.msk [vmem:[#allocation3 + $0x28] sm:$0xf] %vm856_vm5, %v3480_v38  ;;  %v3424_v44 = vpop.permute.xlu2 %3423 }
 0xb34   : > { %3428 = vst.msk [vmem:[#allocation3 + $0x14] sm:$0xf] %vm856_vm5, %v3424_v44 }
 0xb3a   : > { %v3518_v2 = vpop.permute.xlu0 %3517  ;;  %v3504_v3 = vpop.permute.xlu1 %3503  ;;  %v6038_v8 = vld [vmem:[#allocation3 + $0x28] sm:$0xff] }
 0xb3b   : > { %3522 = vst.msk [vmem:[#allocation3 + $0x3c] sm:$0xf] %vm856_vm5, %v3518_v2  ;;  %v3538_v19 = vpop.permute.xlu2 %3537 }
 0xb3c   : > { %3543 = vst.msk [vmem:[#allocation3 + $0x40] sm:$0xf] %vm856_vm5, %v3538_v19 }
 0xb3d   : > { %3508 = vst.msk [vmem:[#allocation3 + $0x34] sm:$0xf] %vm856_vm5, %v3504_v3 }
 0xb42   : > { %v3460_v46 = vpop.permute.xlu0 %3459  ;;  %v6040_v10 = vld [vmem:[#allocation3 + $0x38] sm:$0xff]  ;;  %v3458_v39 = vpop.permute.xlu1 %3457 }
 0xb43   : > { %3464 = vst.msk [vmem:[#allocation3 + $0x24] sm:$0xf] %vm856_vm5, %v3460_v46  ;;  %3643 = vmatpush.bf16.msra.mxu0 %v6040_v10  ;;  %v2233_v34 = vpop.permute.xlu2 %2232 }
 0xb44   : > { %3463 = vst.msk [vmem:[#allocation3 + $0x20] sm:$0xf] %vm856_vm5, %v3458_v39  ;;  %v6039_v14 = vld [vmem:[#allocation3 + $0x30] sm:$0xff]  ;;  %v2313_v36 = vadd.f32 %v7657_v29, %v2233_v34  ;;  %v6042_v39 = vld [vmem:[%s7894_s17 + $0x4] sm:$0xf] }
 0xb45   : > { %v5803_v34 = vld [vmem:[#allocation9 + $0x320] sm:$0xf0] }
 0xb46   : > { %v2327_v50 = vadd.f32 %v7655_v53, %v2313_v36  ;;  %v6043_v53 = vld [vmem:[%s7894_s17 + $0x4] sm:$0xf0] }
 0xb47   : > { %3644 = vmatpush.bf16.msra.mxu0 %v6039_v14 }
 0xb48   : > { %v2330_v2 = vmax.f32 %v2327_v50, 0.0 }
 0xb4a   : > { %v3422_v1 = vpop.permute.xlu0 %3421  ;;  %v3446_v62 = vpop.permute.xlu1 %3445 }
 0xb4b   : > { %3427 = vst.msk [vmem:[#allocation3 + $0x10] sm:$0xf] %vm856_vm5, %v3422_v1  ;;  %3645 = vmatpush.bf16.msra.mxu0 %v6038_v8  ;;  %v6037_v12 = vld [vmem:[#allocation3 + $0x20] sm:$0xff]  ;;  %v5385_v1 = vld [vmem:[%s7894_s17 + $0x8] sm:$0xf0] }
 0xb4c   : > { %3450 = vst.msk [vmem:[#allocation3 + $0x1c] sm:$0xf] %vm856_vm5, %v3446_v62  ;;  %v5388_v8 = vor.u32 %v6042_v39, %v5385_v1  ;;  %v5897_v62 = vld [vmem:[#allocation9 + $0x3c0] sm:$0xf]  ;;  %v6130_v39 = vld [vmem:[#allocation9 + $0x284] sm:$0xf] }
 0xb4f   : > { %3646 = vmatpush.bf16.msra.mxu0 %v6037_v12  ;;  %v6174_v12 = vld [vmem:[#allocation9 + $0x3dc] sm:$0xf0] }
 0xb52   : > { %v3402_v11 = vpop.permute.xlu0 %3401  ;;  %v3400_v57 = vpop.permute.xlu1 %3399  ;;  %v6035_v37 = vld [vmem:[#allocation3 + $0x10] sm:$0xff] }
 0xb53   : > { %3406 = vst.msk [vmem:[#allocation3 + $0xc] sm:$0xf] %vm856_vm5, %v3402_v11  ;;  %v6036_v0 = vld [vmem:[#allocation3 + $0x18] sm:$0xff]  ;;  %v6170_v11 = vld [vmem:[#allocation9 + $0x3c4] sm:$0xf] }
 0xb54   : > { %3405 = vst.msk [vmem:[#allocation3 + $0x8] sm:$0xf] %vm856_vm5, %v3400_v57  ;;  %3647 = vmatpush.bf16.msra.mxu0 %v6036_v0  ;;  %v5898_v57 = vor.u32 %v6174_v12, %v5897_v62  ;;  %v5899_v0 = vld [vmem:[#allocation9 + $0x3e0] sm:$0xf0]  ;;  %v5481_v62 = vld [vmem:[#allocation9 + $0x80] sm:$0xf] }
 0xb58   : > { %3648 = vmatpush.bf16.msra.mxu0 %v6035_v37  ;;  %v5865_v37 = vld [vmem:[#allocation9 + $0x380] sm:$0xf] }
 0xb5a   : > { %v3540_v58 = vpop.permute.xlu1 %3539  ;;  %v2228_v43 = vpop.permute.xlu0 %2227 }
 0xb5b   : > { %v6034_v35 = vld [vmem:[#allocation3 + $0x8] sm:$0xff]  ;;  %3544 = vst.msk [vmem:[#allocation3 + $0x44] sm:$0xf] %vm856_vm5, %v3540_v58  ;;  %v2311_v9 = vadd.f32 %v7653_v54, %v2228_v43  ;;  %v3673_v54 = vld [vmem:[%s7975_s25] sm:$0x3]  ;;  %s4795_s25 = sshll.u32 %s4791_s22, 4  ;;  %s4796_s25 = int_to_ptr.hbm [resolvable:$true] %s4795_s25 }
 0xb5c   : > { %3649 = vmatpush.bf16.msra.mxu0 %v6034_v35  ;;  %v6166_v58 = vld [vmem:[#allocation9 + $0x39c] sm:$0xf0]  ;;  %v5902_v35 = vor.u32 %v6170_v11, %v5899_v0  ;;  %v5483_v0 = vld [vmem:[#allocation9 + $0xa0] sm:$0xf0]  ;;  %s6414_s7 = sshra.s32 %s4796_s25, 4  ;;  %s6415_s7 = int_to_ptr.hbm [resolvable:$true] %s6414_s7 }
 0xb5d   : > { %v2325_v21 = vadd.f32 %v7651_v6, %v2311_v9  ;;  %v5383_v6 = vld [vmem:[%s7894_s17] sm:$0xf]  ;;  %v6094_v43 = vld [vmem:[#allocation9 + $0x15c] sm:$0xf0]  ;;  %s6416_s11 = scalar_lea.hbm %s6415_s7, 32  ;;  %p6421_p4 = scmp.lt.s32.totalorder %s6415_s7, %s7976_s19 }
 0xb5e   : > { %v5384_v14 = vor.u32 %v6043_v53, %v5383_v6  ;;  %v5545_v9 = vld [vmem:[#allocation9 + $0x100] sm:$0xf]  ;;  %p6417_p1 = scmp.ne.s32.totalorder %s6415_s7, %s6416_s11  ;;  %p6422_p7 = scmp.lt.s32.totalorder %s6420_s21, %s6416_s11 }
 0xb5f   : > { %v2329_v19 = vmax.f32 %v2325_v21, 0.0  ;;  %v5769_v21 = vld [vmem:[#allocation9 + $0x2c0] sm:$0xf] }
 0xb60   : > { %3650 = vmatpush.bf16.msra.mxu0 %v6033_v61  ;;  %3758 = vmatpush.bf16.msrb.mxu3 %v5384_v14  ;;  %v5641_v61 = vld [vmem:[#allocation9 + $0x1c0] sm:$0xf]  ;;  %v5739_v14 = vld [vmem:[#allocation9 + $0x2a0] sm:$0xf0]  ;;  %p6418_p2 = pnand %p6417_p1, %p6638_p5  ;;  %p6423_p8 = por %p6422_p7, %p6421_p4 }
 0xb61   : > { %v5642_v16 = vor.u32 %v6110_v56, %v5641_v61  ;;  %v5737_v6 = vld [vmem:[#allocation9 + $0x280] sm:$0xf] }
 0xb62   : > { %v6041_v4 = vld [vmem:[#allocation3 + $0x40] sm:$0xff]  ;;  %v3570_v24 = vpop.permute.xlu1 %3569  ;;  %v3575_v59 = vpop.permute.xlu0 %3574  ;;  %v6134_v53 = vld [vmem:[#allocation9 + $0x29c] sm:$0xf0]  ;;  %p6419_p3 = pneg %p6418_p2 }
 0xb63   : > { %3651 = vmatmul.bf16.vlgmr.msra.gmra.mxu0 %v5338_v13  ;;  %3664 = vmatpush.bf16.msrb.mxu1 %v6041_v4  ;;  %v5866_v13 = vor.u32 %v6166_v58, %v5865_v37  ;;  %v5643_v4 = vld [vmem:[#allocation9 + $0x1e0] sm:$0xf0]  ;;  %v5738_v12 = vor.u32 %v6134_v53, %v5737_v6  ;;  %v6070_v11 = vld [vmem:[#allocation9 + $0x9c] sm:$0xf0]  ;;  %v5742_v37 = vor.u32 %v6130_v39, %v5739_v14  ;;  %v5841_v53 = vld [vmem:[#allocation9 + $0x348] sm:$0xf] }
 0xb64   : > { %4560 = vmatpush.bf16.msra.mxu3 %v5898_v57  ;;  %v5646_v15 = vor.u32 %v6106_v17, %v5643_v4  ;;  %v6066_v57 = vld [vmem:[#allocation9 + $0x84] sm:$0xf]  ;;  %v5705_v58 = vld [vmem:[#allocation9 + $0x240] sm:$0xf]  ;;  %v5482_v61 = vor.u32 %v6070_v11, %v5481_v62  ;;  %v6159_v39 = vld [vmem:[#allocation9 + $0x364] sm:$0xf0]  ;;  %p6424_p9 = pnand %p6423_p8, %p6419_p3 }
 0xb65   : > { %v5673_v56 = vld [vmem:[#allocation9 + $0x200] sm:$0xf]  ;;  %v6155_v14 = vld [vmem:[#allocation9 + $0x34c] sm:$0xf]  ;;  %v5842_v11 = vor.u32 %v6159_v39, %v5841_v53 }
 0xb66   : > { %5379 = vmatmul.msk.bf16.vlgmr.msrb.gmra.mxu1 %vm1834_vm7, %v5342_v48  ;;  %v5870_v48 = vor.u32 %v6162_v7, %v5867_v60  ;;  %4573 = vmatpush.bf16.msrb.mxu0 %v5646_v15  ;;  %v6122_v7 = vld [vmem:[#allocation9 + $0x244] sm:$0xf]  ;;  %v5449_v17 = vld [vmem:[#allocation9 + $0x40] sm:$0xf]  ;;  %v6059_v53 = vld [vmem:[#allocation9 + $0x4c] sm:$0xf] }
 0xb67   : > { %3768 = vmatpush.bf16.msra.mxu1 %v5412_v20  ;;  %v6102_v20 = vld [vmem:[#allocation9 + $0x19c] sm:$0xf0]  ;;  %v5707_v60 = vld [vmem:[#allocation9 + $0x260] sm:$0xf0] }
 0xb68   : > { %v5610_v28 = vor.u32 %v6102_v20, %v5609_v31  ;;  %4561 = vmatpush.bf16.msra.mxu3 %v5866_v13  ;;  %v5486_v13 = vor.u32 %v6066_v57, %v5483_v0  ;;  %v5451_v15 = vld [vmem:[#allocation9 + $0x60] sm:$0xf0]  ;;  %v5710_v63 = vor.u32 %v6122_v7, %v5707_v60  ;;  %v6095_v57 = vld [vmem:[#allocation9 + $0x164] sm:$0xf0]  ;;  %v6091_v0 = vld [vmem:[#allocation9 + $0x14c] sm:$0xf] }
 0xb69   : > { %v6114_v31 = vld [vmem:[#allocation9 + $0x204] sm:$0xf]  ;;  %v6151_v7 = vld [vmem:[#allocation9 + $0x324] sm:$0xf0]  ;;  %v6147_v60 = vld [vmem:[#allocation9 + $0x30c] sm:$0xf] }
 0xb6a   : > { %4574 = vmatpush.bf16.msrb.mxu0 %v5614_v52  ;;  %v5675_v20 = vld [vmem:[#allocation9 + $0x220] sm:$0xf0]  ;;  %v5907_v52 = vld [vmem:[#allocation9 + $0x3e8] sm:$0xf0] }
 0xb6b   : > { %3769 = vmatpush.bf16.msra.mxu1 %v5404_v49  ;;  %v5834_v49 = vor.u32 %v6158_v30, %v5833_v26  ;;  %v3681_v26 = vpop.permute.xlu2 %3680 }
 0xb6d   : > { %4562 = vmatpush.bf16.msra.mxu3 %v5834_v49  ;;  %v6171_v49 = vld [vmem:[#allocation9 + $0x3cc] sm:$0xf] }
 0xb6f   : > { %3770 = vmatpush.bf16.msra.mxu1 %v5396_v33  ;;  %v6146_v33 = vld [vmem:[#allocation9 + $0x304] sm:$0xf] }
 0xb70   : > { %v5806_v50 = vor.u32 %v6146_v33, %v5803_v34  ;;  %v6050_v33 = vld [vmem:[#allocation9 + $0x4] sm:$0xf] }
 0xb71   : > { %v5419_v34 = vld [vmem:[#allocation9 + $0x20] sm:$0xf0] }
 0xb73   : > { %3771 = vmatpush.bf16.msra.mxu1 %v5388_v8 }
 0xb77   : > { %4586 = vmatpush.bf16.msrb.mxu1 %v5902_v35  ;;  %v6126_v35 = vld [vmem:[#allocation9 + $0x25c] sm:$0xf0] }
 0xb78   : > { %v5706_v4 = vor.u32 %v6126_v35, %v5705_v58  ;;  %v5809_v35 = vld [vmem:[#allocation9 + $0x308] sm:$0xf] }
 0xb7b   : > { %4587 = vmatpush.bf16.msrb.mxu1 %v5870_v48  ;;  %v6062_v48 = vld [vmem:[#allocation9 + $0x5c] sm:$0xf0] }
 0xb7f   : > { %4588 = vmatpush.bf16.msrb.mxu1 %v5838_v27  ;;  %v5417_v27 = vld [vmem:[#allocation9] sm:$0xf] }
 0xb83   : > { %4589 = vmatpush.bf16.msrb.mxu1 %v5806_v50  ;;  %v6167_v50 = vld [vmem:[#allocation9 + $0x3a4] sm:$0xf0] }
 0xbe0   : > { %v3652_v23 = vpop.f32.mrf.mxu0 }
 0xbe1   : > { %v3653_v40 = vadd.f32 %v3652_v23, %v3570_v24  ;;  %v6090_v23 = vld [vmem:[#allocation9 + $0x144] sm:$0xf]  ;;  %v5578_v24 = vor.u32 %v6094_v43, %v5577_v45  ;;  %v6054_v45 = vld [vmem:[#allocation9 + $0x1c] sm:$0xf0] }
 0xbe3   : > { %v3666_v18 = vpop.f32.mrf.mxu1 }
 0xbe4   : > { %v3667_v47 = vadd.f32 %v3666_v18, %v3653_v40  ;;  %v5579_v18 = vld [vmem:[#allocation9 + $0x160] sm:$0xf0]  ;;  %v5802_v40 = vor.u32 %v6150_v5, %v5801_v25  ;;  %v5450_v25 = vor.u32 %v6062_v48, %v5449_v17  ;;  %v5553_v17 = vld [vmem:[#allocation9 + $0x108] sm:$0xf] }
 0xbe5   : > { %v5582_v36 = vor.u32 %v6090_v23, %v5579_v18  ;;  %v5674_v23 = vor.u32 %v6118_v22, %v5673_v56  ;;  %v5649_v18 = vld [vmem:[#allocation9 + $0x1c8] sm:$0xf]  ;;  %v6139_v22 = vld [vmem:[#allocation9 + $0x2cc] sm:$0xf] }
 0xbe6   : > { %v3671_v38 = vmax.f32 %v3667_v47, 0.0  ;;  %v6082_v47 = vld [vmem:[#allocation9 + $0x104] sm:$0xf]  ;;  %4563 = vmatpush.bf16.msra.mxu3 %v5802_v40  ;;  %v6107_v40 = vld [vmem:[#allocation9 + $0x1cc] sm:$0xf] }
 0xbe7   : > { %4575 = vmatpush.bf16.msrb.mxu0 %v5582_v36  ;;  %v5906_v36 = vor.u32 %v6175_v55, %v5905_v32  ;;  %v6087_v48 = vld [vmem:[#allocation9 + $0x124] sm:$0xf0] }
 0xbe8   : > { %v3654_v41 = vpop.f32.mrf.mxu0  ;;  %v3674_v46 = vadd.f32 %v3671_v38, %v2329_v19  ;;  %v5771_v38 = vld [vmem:[#allocation9 + $0x2e0] sm:$0xf0]  ;;  %v5513_v19 = vld [vmem:[#allocation9 + $0xc0] sm:$0xf]  ;;  %v5521_v32 = vld [vmem:[#allocation9 + $0xc8] sm:$0xf] }
 0xbe9   : > { %v3655_v42 = vadd.f32 %v3654_v41, %v3575_v59  ;;  %v6086_v41 = vld [vmem:[#allocation9 + $0x11c] sm:$0xf0]  ;;  %v5547_v59 = vld [vmem:[#allocation9 + $0x120] sm:$0xf0] }
 0xbeb   : > { %v3668_v51 = vpop.f32.mrf.mxu1 }
 0xbec   : > { %v3669_v44 = vadd.f32 %v3668_v51, %v3655_v42  ;;  %v6142_v42 = vld [vmem:[#allocation9 + $0x2dc] sm:$0xf0]  ;;  %v6138_v51 = vld [vmem:[#allocation9 + $0x2c4] sm:$0xf] }
 0xbee   : > { %v3672_v3 = vmax.f32 %v3669_v44, 0.0  ;;  %v5546_v44 = vor.u32 %v6086_v41, %v5545_v9  ;;  %v6111_v9 = vld [vmem:[#allocation9 + $0x1e4] sm:$0xf0]  ;;  %v5651_v41 = vld [vmem:[#allocation9 + $0x1e8] sm:$0xf0] }
 0xbf0   : > { %v3675_v10 = vadd.f32 %v3672_v3, %v2330_v2  ;;  %v5550_v2 = vor.u32 %v6082_v47, %v5547_v59  ;;  %v5770_v3 = vor.u32 %v6142_v42, %v5769_v21  ;;  %v5910_v47 = vor.u32 %v6171_v49, %v5907_v52  ;;  %v5873_v59 = vld [vmem:[#allocation9 + $0x388] sm:$0xf]  ;;  %v6163_v21 = vld [vmem:[#allocation9 + $0x38c] sm:$0xf] }
 0xbf1   : > { %v5875_v42 = vld [vmem:[#allocation9 + $0x3a8] sm:$0xf0]  ;;  %v6079_v49 = vld [vmem:[#allocation9 + $0xe4] sm:$0xf0] }
 0xbf2   : > { %v3676_v29 = vpack.c.bf16 %v3675_v10, %v3674_v46  ;;  %v6078_v46 = vld [vmem:[#allocation9 + $0xdc] sm:$0xf0]  ;;  %v6074_v10 = vld [vmem:[#allocation9 + $0xc4] sm:$0xf]  ;;  %4576 = vmatpush.bf16.msrb.mxu0 %v5550_v2  ;;  %4564 = vmatpush.bf16.msra.mxu3 %v5770_v3  ;;  %v5654_v2 = vor.u32 %v6107_v40, %v5651_v41  ;;  %v5878_v6 = vor.u32 %v6163_v21, %v5875_v42  ;;  %v6075_v52 = vld [vmem:[#allocation9 + $0xcc] sm:$0xf] }
 0xbf3   : > { %v5514_v1 = vor.u32 %v6078_v46, %v5513_v19  ;;  %v5617_v19 = vld [vmem:[#allocation9 + $0x188] sm:$0xf]  ;;  %v5874_v46 = vor.u32 %v6167_v50, %v5873_v59  ;;  %v6123_v40 = vld [vmem:[#allocation9 + $0x24c] sm:$0xf] }
 0xbf4   : > { %3693 = vmatpush.bf16.msra.mxu2 %v3676_v29  ;;  %v5515_v29 = vld [vmem:[#allocation9 + $0xe0] sm:$0xf0]  ;;  %v5715_v41 = vld [vmem:[#allocation9 + $0x268] sm:$0xf0]  ;;  %v5489_v50 = vld [vmem:[#allocation9 + $0x88] sm:$0xf] }
 0xbf5   : > { %v5518_v8 = vor.u32 %v6074_v10, %v5515_v29  ;;  %v6103_v10 = vld [vmem:[#allocation9 + $0x1a4] sm:$0xf0]  ;;  %v6099_v29 = vld [vmem:[#allocation9 + $0x18c] sm:$0xf]  ;;  %v5718_v59 = vor.u32 %v6123_v40, %v5715_v41  ;;  %v5819_v40 = vld [vmem:[#allocation9 + $0x330] sm:$0xf0] }
 0xbf6   : > { %4565 = vmatpush.bf16.msra.mxu3 %v5738_v12  ;;  %v5585_v12 = vld [vmem:[#allocation9 + $0x148] sm:$0xf]  ;;  %v6067_v42 = vld [vmem:[#allocation9 + $0x8c] sm:$0xf] }
 0xbf7   : > { %5380 = vmatmul.msk.bf16.vlgmr.msra.gmra.mxu2 %vm1834_vm7, %v3673_v54  ;;  %v5774_v54 = vor.u32 %v6138_v51, %v5771_v38  ;;  %4577 = vmatpush.bf16.msrb.mxu0 %v5518_v8  ;;  %v5418_v51 = vor.u32 %v6054_v45, %v5417_v27  ;;  %v5422_v38 = vor.u32 %v6050_v33, %v5419_v34  ;;  %v5745_v27 = vld [vmem:[#allocation9 + $0x288] sm:$0xf] }
 0xbf8   : > { %4547 = vmatpush.bf16.msrb.mxu2 %v5642_v16  ;;  %v6058_v16 = vld [vmem:[#allocation9 + $0x44] sm:$0xf]  ;;  %v5618_v8 = vor.u32 %v6103_v10, %v5617_v19  ;;  %v6135_v45 = vld [vmem:[#allocation9 + $0x2a4] sm:$0xf0]  ;;  %v5522_v33 = vor.u32 %v6079_v49, %v5521_v32  ;;  %v5683_v10 = vld [vmem:[#allocation9 + $0x228] sm:$0xf0] }
 0xbf9   : > { %4590 = vmatpush.bf16.msrb.mxu1 %v5774_v54  ;;  %v5454_v5 = vor.u32 %v6058_v16, %v5451_v15  ;;  %v5619_v54 = vld [vmem:[#allocation9 + $0x1a8] sm:$0xf0]  ;;  %v6071_v21 = vld [vmem:[#allocation9 + $0xa4] sm:$0xf0]  ;;  %v6156_v32 = vld [vmem:[#allocation9 + $0x354] sm:$0xf] }
 0xbfa   : > { %4566 = vmatpush.bf16.msra.mxu3 %v5706_v4  ;;  %v5622_v62 = vor.u32 %v6099_v29, %v5619_v54  ;;  %v5810_v4 = vor.u32 %v6151_v7, %v5809_v35  ;;  %v6083_v16 = vld [vmem:[#allocation9 + $0x10c] sm:$0xf]  ;;  %v5457_v54 = vld [vmem:[#allocation9 + $0x48] sm:$0xf]  ;;  %v6172_v35 = vld [vmem:[#allocation9 + $0x3d4] sm:$0xf] }
 0xbfb   : > { %4578 = vmatpush.bf16.msrb.mxu0 %v5486_v13  ;;  %v5586_v13 = vor.u32 %v6095_v57, %v5585_v12  ;;  %v5555_v15 = vld [vmem:[#allocation9 + $0x128] sm:$0xf0]  ;;  %v5915_v7 = vld [vmem:[#allocation9 + $0x3f0] sm:$0xf0] }
 0xbfc   : > { %4548 = vmatpush.bf16.msrb.mxu2 %v5610_v28  ;;  %v6051_v12 = vld [vmem:[#allocation9 + $0xc] sm:$0xf] }
 0xbfd   : > { %4591 = vmatpush.bf16.msrb.mxu1 %v5742_v37  ;;  %v5587_v37 = vld [vmem:[#allocation9 + $0x168] sm:$0xf0] }
 0xbfe   : > { %4567 = vmatpush.bf16.msra.mxu3 %v5674_v23  ;;  %v5590_v56 = vor.u32 %v6091_v0, %v5587_v37  ;;  %v5747_v23 = vld [vmem:[#allocation9 + $0x2a8] sm:$0xf0]  ;;  %v5913_v37 = vld [vmem:[#allocation9 + $0x3d0] sm:$0xf] }
 0xbff   : > { %4579 = vmatpush.bf16.msrb.mxu0 %v5454_v5 }
 0xc00   : > { %4549 = vmatpush.bf16.msrb.mxu2 %v5578_v24  ;;  %v5678_v24 = vor.u32 %v6114_v31, %v5675_v20  ;;  %v5779_v31 = vld [vmem:[#allocation9 + $0x2e8] sm:$0xf0]  ;;  %v5554_v20 = vor.u32 %v6087_v48, %v5553_v17  ;;  %v6164_v48 = vld [vmem:[#allocation9 + $0x394] sm:$0xf] }
 0xc01   : > { %4592 = vmatpush.bf16.msrb.mxu1 %v5710_v63  ;;  %v6143_v63 = vld [vmem:[#allocation9 + $0x2e4] sm:$0xf0]  ;;  %v5782_v5 = vor.u32 %v6139_v22, %v5779_v31 }
 0xc03   : > { %4580 = vmatpush.bf16.msrb.mxu0 %v5422_v38  ;;  %v5491_v38 = vld [vmem:[#allocation9 + $0xa8] sm:$0xf0] }
 0xc04   : > { %4550 = vmatpush.bf16.msrb.mxu2 %v5546_v44  ;;  %v5650_v44 = vor.u32 %v6111_v9, %v5649_v18  ;;  %v5746_v18 = vor.u32 %v6135_v45, %v5745_v27  ;;  %v6127_v9 = vld [vmem:[#allocation9 + $0x264] sm:$0xf0]  ;;  %v5494_v19 = vor.u32 %v6067_v42, %v5491_v38  ;;  %v6104_v45 = vld [vmem:[#allocation9 + $0x1ac] sm:$0xf0]  ;;  %v5595_v42 = vld [vmem:[#allocation9 + $0x170] sm:$0xf0] }
 0xc05   : > { %4593 = vmatpush.bf16.msrb.mxu1 %v5678_v24 }
 0xc07   : > { %4625 = vmatpush.bf16.msra.mxu0 %v5654_v2  ;;  %v6119_v2 = vld [vmem:[#allocation9 + $0x224] sm:$0xf0] }
 0xc08   : > { %4551 = vmatpush.bf16.msrb.mxu2 %v5514_v1  ;;  %v5843_v1 = vld [vmem:[#allocation9 + $0x368] sm:$0xf0] }
 0xc09   : > { %v5846_v58 = vor.u32 %v6155_v14, %v5843_v1  ;;  %v5459_v14 = vld [vmem:[#allocation9 + $0x68] sm:$0xf0] }
 0xc0a   : > { %v5462_v1 = vor.u32 %v6059_v53, %v5459_v14  ;;  %v6084_v53 = vld [vmem:[#allocation9 + $0x114] sm:$0xf] }
 0xc0b   : > { %4626 = vmatpush.bf16.msra.mxu0 %v5622_v62  ;;  %v6055_v62 = vld [vmem:[#allocation9 + $0x24] sm:$0xf0] }
 0xc0c   : > { %4552 = vmatpush.bf16.msrb.mxu2 %v5482_v61  ;;  %v5811_v61 = vld [vmem:[#allocation9 + $0x328] sm:$0xf0] }
 0xc0f   : > { %4627 = vmatpush.bf16.msra.mxu0 %v5590_v56  ;;  %v5881_v56 = vld [vmem:[#allocation9 + $0x390] sm:$0xf] }
 0xc10   : > { %4553 = vmatpush.bf16.msrb.mxu2 %v5450_v25  ;;  %v5523_v25 = vld [vmem:[#allocation9 + $0xe8] sm:$0xf0] }
 0xc11   : > { %v5526_v34 = vor.u32 %v6075_v52, %v5523_v25 }
 0xc14   : > { %4554 = vmatpush.bf16.msrb.mxu2 %v5418_v51  ;;  %v5490_v51 = vor.u32 %v6071_v21, %v5489_v50  ;;  %v6096_v50 = vld [vmem:[#allocation9 + $0x16c] sm:$0xf0]  ;;  %v6092_v21 = vld [vmem:[#allocation9 + $0x154] sm:$0xf] }
 0xc18   : > { %4599 = vmatpush.bf16.msra.mxu2 %v5650_v44  ;;  %v5681_v44 = vld [vmem:[#allocation9 + $0x208] sm:$0xf] }
 0xc1c   : > { %4600 = vmatpush.bf16.msra.mxu2 %v5618_v8  ;;  %v5425_v8 = vld [vmem:[#allocation9 + $0x8] sm:$0xf] }
 0xc1d   : > { %v5426_v57 = vor.u32 %v6055_v62, %v5425_v8  ;;  %v5753_v8 = vld [vmem:[#allocation9 + $0x290] sm:$0xf] }
 0xc1e   : > { %v6136_v62 = vld [vmem:[#allocation9 + $0x2ac] sm:$0xf0] }
 0xc20   : > { %4601 = vmatpush.bf16.msra.mxu2 %v5586_v13  ;;  %v5918_v13 = vor.u32 %v6172_v35, %v5915_v7  ;;  %v6076_v35 = vld [vmem:[#allocation9 + $0xd4] sm:$0xf] }
 0xc21   : > { %v5531_v7 = vld [vmem:[#allocation9 + $0xf0] sm:$0xf0] }
 0xc24   : > { %4602 = vmatpush.bf16.msra.mxu2 %v5554_v20  ;;  %v5849_v20 = vld [vmem:[#allocation9 + $0x350] sm:$0xf] }
 0xc28   : > { %4603 = vmatpush.bf16.msra.mxu2 %v5522_v33 }
 0xc2c   : > { %4604 = vmatpush.bf16.msra.mxu2 %v5490_v51 }
 0xc7a   : > { %v3695_v30 = vpop.f32.mrf.mxu2 }
 0xc7b   : > { %v3696_v28 = vadd.f32 %v3695_v30, %v3681_v26  ;;  %v5814_v26 = vor.u32 %v6147_v60, %v5811_v61  ;;  %v5777_v30 = vld [vmem:[#allocation9 + $0x2c8] sm:$0xf] }
 0xc7c   : > { %v5778_v55 = vor.u32 %v6143_v63, %v5777_v30  ;;  %v6108_v30 = vld [vmem:[#allocation9 + $0x1d4] sm:$0xf] }
 0xc7d   : > { %v3699_v43 = vpack.c.bf16 %v3696_v28, %v3696_v28  ;;  %v5558_v28 = vor.u32 %v6083_v16, %v5555_v15  ;;  %v5883_v16 = vld [vmem:[#allocation9 + $0x3b0] sm:$0xf0]  ;;  %v5657_v15 = vld [vmem:[#allocation9 + $0x1d0] sm:$0xf] }
 0xc7e   : > { %v5659_v63 = vld [vmem:[#allocation9 + $0x1f0] sm:$0xf0]  ;;  %v5886_v31 = vor.u32 %v6164_v48, %v5883_v16 }
 0xc7f   : > { %5413 = vmatmul.msk.bf16.vlgmr.msrb.gmra.mxu3 %vm1719_vm6, %v3699_v43  ;;  %5414 = vmatmul.msk.bf16.vlgmr.msra.gmra.mxu1 %vm1719_vm6, %v3699_v43  ;;  %v6131_v43 = vld [vmem:[#allocation9 + $0x28c] sm:$0xf]  ;;  %v5662_v25 = vor.u32 %v6108_v30, %v5659_v63  ;;  %v5723_v48 = vld [vmem:[#allocation9 + $0x270] sm:$0xf0]  ;;  %v6072_v30 = vld [vmem:[#allocation9 + $0xac] sm:$0xf0] }
 0xc80   : > { %4612 = vmatpush.bf16.msrb.mxu3 %v5906_v36  ;;  %4638 = vmatpush.bf16.msra.mxu1 %v5910_v47  ;;  %v5750_v24 = vor.u32 %v6131_v43, %v5747_v23  ;;  %v5713_v36 = vld [vmem:[#allocation9 + $0x248] sm:$0xf]  ;;  %v6100_v43 = vld [vmem:[#allocation9 + $0x194] sm:$0xf] }
 0xc81   : > { %4628 = vmatpush.bf16.msra.mxu0 %v5558_v28  ;;  %v5714_v47 = vor.u32 %v6127_v9, %v5713_v36  ;;  %v6160_v28 = vld [vmem:[#allocation9 + $0x36c] sm:$0xf0]  ;;  %v5627_v23 = vld [vmem:[#allocation9 + $0x1b0] sm:$0xf0] }
 0xc82   : > { %v3697_v3 = vpop.f32.mrf.mxu2  ;;  %v6152_v36 = vld [vmem:[#allocation9 + $0x32c] sm:$0xf0]  ;;  %v6148_v9 = vld [vmem:[#allocation9 + $0x314] sm:$0xf] }
 0xc83   : > { %v5682_v3 = vor.u32 %v6119_v2, %v5681_v44  ;;  %v5822_v38 = vor.u32 %v6148_v9, %v5819_v40  ;;  %v5785_v44 = vld [vmem:[#allocation9 + $0x2d0] sm:$0xf]  ;;  %v6068_v63 = vld [vmem:[#allocation9 + $0x94] sm:$0xf] }
 0xc84   : > { %4613 = vmatpush.bf16.msrb.mxu3 %v5874_v46  ;;  %4639 = vmatpush.bf16.msra.mxu1 %v5878_v6  ;;  %v6115_v46 = vld [vmem:[#allocation9 + $0x20c] sm:$0xf]  ;;  %v6063_v6 = vld [vmem:[#allocation9 + $0x64] sm:$0xf0]  ;;  %v6144_v2 = vld [vmem:[#allocation9 + $0x2ec] sm:$0xf0] }
 0xc85   : > { %4629 = vmatpush.bf16.msra.mxu0 %v5526_v34  ;;  %v5686_v29 = vor.u32 %v6115_v46, %v5683_v10  ;;  %v5458_v39 = vor.u32 %v6063_v6, %v5457_v54  ;;  %v5850_v34 = vor.u32 %v6160_v28, %v5849_v20  ;;  %v5561_v54 = vld [vmem:[#allocation9 + $0x110] sm:$0xf]  ;;  %v5786_v14 = vor.u32 %v6144_v2, %v5785_v44  ;;  %v6052_v2 = vld [vmem:[#allocation9 + $0x14] sm:$0xf] }
 0xc86   : > { %v6088_v6 = vld [vmem:[#allocation9 + $0x12c] sm:$0xf0] }
 0xc87   : > { %4605 = vmatpush.bf16.msra.mxu2 %v5458_v39  ;;  %v5563_v39 = vld [vmem:[#allocation9 + $0x130] sm:$0xf0]  ;;  %v5689_v28 = vld [vmem:[#allocation9 + $0x210] sm:$0xf] }
 0xc88   : > { %4614 = vmatpush.bf16.msrb.mxu3 %v5842_v11  ;;  %4640 = vmatpush.bf16.msra.mxu1 %v5846_v58  ;;  %v5427_v11 = vld [vmem:[#allocation9 + $0x28] sm:$0xf0]  ;;  %v6176_v58 = vld [vmem:[#allocation9 + $0x3ec] sm:$0xf0] }
 0xc89   : > { %4630 = vmatpush.bf16.msra.mxu0 %v5494_v19  ;;  %v5430_v0 = vor.u32 %v6051_v12, %v5427_v11  ;;  %v5914_v61 = vor.u32 %v6176_v58, %v5913_v37  ;;  %v6140_v19 = vld [vmem:[#allocation9 + $0x2d4] sm:$0xf]  ;;  %v5529_v37 = vld [vmem:[#allocation9 + $0xd0] sm:$0xf] }
 0xc8a   : > { %v6132_v12 = vld [vmem:[#allocation9 + $0x294] sm:$0xf]  ;;  %v6080_v58 = vld [vmem:[#allocation9 + $0xec] sm:$0xf0] }
 0xc8b   : > { %4606 = vmatpush.bf16.msra.mxu2 %v5426_v57  ;;  %v5755_v11 = vld [vmem:[#allocation9 + $0x2b0] sm:$0xf0]  ;;  %v5562_v57 = vor.u32 %v6088_v6, %v5561_v54  ;;  %v5530_v16 = vor.u32 %v6080_v58, %v5529_v37  ;;  %v6056_v44 = vld [vmem:[#allocation9 + $0x2c] sm:$0xf0]  ;;  %v6101_v37 = vld [vmem:[#allocation9 + $0x19c] sm:$0xf] }
 0xc8c   : > { %4615 = vmatpush.bf16.msrb.mxu3 %v5810_v4  ;;  %4641 = vmatpush.bf16.msra.mxu1 %v5814_v26  ;;  %v6168_v4 = vld [vmem:[#allocation9 + $0x3ac] sm:$0xf0]  ;;  %v5635_v58 = vld [vmem:[#allocation9 + $0x1b8] sm:$0xf0] }
 0xc8d   : > { %4631 = vmatpush.bf16.msra.mxu0 %v5462_v1  ;;  %v6112_v26 = vld [vmem:[#allocation9 + $0x1ec] sm:$0xf0]  ;;  %v5882_v22 = vor.u32 %v6168_v4, %v5881_v56  ;;  %v6124_v4 = vld [vmem:[#allocation9 + $0x254] sm:$0xf] }
 0xc8e   : > { %v5658_v52 = vor.u32 %v6112_v26, %v5657_v15  ;;  %v6128_v56 = vld [vmem:[#allocation9 + $0x26c] sm:$0xf0]  ;;  %v5534_v15 = vor.u32 %v6076_v35, %v5531_v7  ;;  %v5726_v20 = vor.u32 %v6124_v4, %v5723_v48  ;;  %v5638_v48 = vor.u32 %v6101_v37, %v5635_v58 }
 0xc8f   : > { %v5497_v26 = vld [vmem:[#allocation9 + $0x90] sm:$0xf] }
 0xc90   : > { %4616 = vmatpush.bf16.msrb.mxu3 %v5778_v55  ;;  %4642 = vmatpush.bf16.msra.mxu1 %v5782_v5  ;;  %v5851_v55 = vld [vmem:[#allocation9 + $0x370] sm:$0xf0]  ;;  %v5625_v5 = vld [vmem:[#allocation9 + $0x190] sm:$0xf] }
 0xc91   : > { %4632 = vmatpush.bf16.msra.mxu0 %v5430_v0  ;;  %v5626_v41 = vor.u32 %v6104_v45, %v5625_v5  ;;  %v5566_v0 = vor.u32 %v6084_v53, %v5563_v39  ;;  %v5498_v5 = vor.u32 %v6072_v30, %v5497_v26  ;;  %v5857_v53 = vld [vmem:[#allocation9 + $0x358] sm:$0xf]  ;;  %v6093_v26 = vld [vmem:[#allocation9 + $0x15c] sm:$0xf] }
 0xc92   : > { %v5603_v30 = vld [vmem:[#allocation9 + $0x178] sm:$0xf0] }
 0xc94   : > { %4617 = vmatpush.bf16.msrb.mxu3 %v5746_v18  ;;  %4643 = vmatpush.bf16.msra.mxu1 %v5750_v24  ;;  %v5854_v18 = vor.u32 %v6156_v32, %v5851_v55  ;;  %v5817_v24 = vld [vmem:[#allocation9 + $0x310] sm:$0xf]  ;;  %v6116_v55 = vld [vmem:[#allocation9 + $0x214] sm:$0xf] }
 0xc95   : > { %v5818_v51 = vor.u32 %v6152_v36, %v5817_v24  ;;  %v6120_v32 = vld [vmem:[#allocation9 + $0x22c] sm:$0xf0]  ;;  %v5467_v24 = vld [vmem:[#allocation9 + $0x70] sm:$0xf0] }
 0xc96   : > { %v5690_v36 = vor.u32 %v6120_v32, %v5689_v28  ;;  %v6141_v28 = vld [vmem:[#allocation9 + $0x2dc] sm:$0xf] }
 0xc97   : > { %v5795_v32 = vld [vmem:[#allocation9 + $0x2f8] sm:$0xf0] }
 0xc98   : > { %4618 = vmatpush.bf16.msrb.mxu3 %v5714_v47  ;;  %4644 = vmatpush.bf16.msra.mxu1 %v5718_v59  ;;  %v5630_v47 = vor.u32 %v6100_v43, %v5627_v23  ;;  %v5593_v59 = vld [vmem:[#allocation9 + $0x150] sm:$0xf]  ;;  %v6173_v43 = vld [vmem:[#allocation9 + $0x3dc] sm:$0xf] }
 0xc99   : > { %v5594_v10 = vor.u32 %v6096_v50, %v5593_v59  ;;  %v5923_v23 = vld [vmem:[#allocation9 + $0x3f8] sm:$0xf0]  ;;  %v6169_v59 = vld [vmem:[#allocation9 + $0x3b4] sm:$0xf0] }
 0xc9a   : > { %v6165_v50 = vld [vmem:[#allocation9 + $0x39c] sm:$0xf] }
 0xc9c   : > { %4619 = vmatpush.bf16.msrb.mxu3 %v5682_v3  ;;  %4645 = vmatpush.bf16.msra.mxu1 %v5686_v29  ;;  %v5787_v3 = vld [vmem:[#allocation9 + $0x2f0] sm:$0xf0]  ;;  %v5598_v29 = vor.u32 %v6092_v21, %v5595_v42 }
 0xc9d   : > { %v5790_v1 = vor.u32 %v6140_v19, %v5787_v3  ;;  %v5435_v19 = vld [vmem:[#allocation9 + $0x30] sm:$0xf0]  ;;  %v5665_v3 = vld [vmem:[#allocation9 + $0x1d8] sm:$0xf] }
 0xcfc   : > { %v3773_v60 = vpop.f32.mrf.mxu1 }
 0xcfd   : > { %v7815_v17 = vpack.c.bf16 %v3773_v60, %v3773_v60  ;;  %v5754_v60 = vor.u32 %v6136_v62, %v5753_v8  ;;  %v6157_v8 = vld [vmem:[#allocation9 + $0x35c] sm:$0xf] }
 0xcfe   : > { %v5859_v62 = vld [vmem:[#allocation9 + $0x378] sm:$0xf0] }
 0xcff   : > { %4568 = vmatmul.bf16.vlgmr.msra.gmra.mxu3 %v7815_v17  ;;  %4594 = vmatmul.bf16.vlgmr.msrb.gmra.mxu1 %v7815_v17  ;;  %v5862_v7 = vor.u32 %v6157_v8, %v5859_v62 }
 0xd00   : > { %4664 = vmatpush.bf16.msra.mxu3 %v5914_v61  ;;  %4690 = vmatpush.bf16.msrb.mxu1 %v5918_v13  ;;  %v5758_v61 = vor.u32 %v6132_v12, %v5755_v11  ;;  %v5721_v13 = vld [vmem:[#allocation9 + $0x250] sm:$0xf] }
 0xd02   : > { %v3760_v49 = vpop.f32.mrf.mxu3 }
 0xd03   : > { %v7819_v27 = vpack.c.bf16 %v3760_v49, %v3760_v49  ;;  %v5691_v49 = vld [vmem:[#allocation9 + $0x230] sm:$0xf0] }
 0xd04   : > { %4665 = vmatpush.bf16.msra.mxu3 %v5882_v22  ;;  %4691 = vmatpush.bf16.msrb.mxu1 %v5886_v31  ;;  %v3775_v33 = vpop.f32.mrf.mxu1  ;;  %v5499_v22 = vld [vmem:[#allocation9 + $0xb0] sm:$0xf0]  ;;  %v5722_v31 = vor.u32 %v6128_v56, %v5721_v13  ;;  %v5694_v9 = vor.u32 %v6116_v55, %v5691_v49  ;;  %v6149_v13 = vld [vmem:[#allocation9 + $0x31c] sm:$0xf]  ;;  %v5606_v49 = vor.u32 %v6093_v26, %v5603_v30 }
 0xd05   : > { %4555 = vmatmul.bf16.vlgmr.msrb.gmra.mxu2 %v7819_v27  ;;  %4581 = vmatmul.bf16.vlgmr.msrb.gmra.mxu0 %v7819_v27  ;;  %v5502_v45 = vor.u32 %v6068_v63, %v5499_v22  ;;  %v5465_v33 = vld [vmem:[#allocation9 + $0x50] sm:$0xf]  ;;  %v5827_v56 = vld [vmem:[#allocation9 + $0x338] sm:$0xf0] }
 0xd06   : > { %4651 = vmatpush.bf16.msrb.mxu2 %v5658_v52  ;;  %4677 = vmatpush.bf16.msrb.mxu0 %v5662_v25  ;;  %v5921_v52 = vld [vmem:[#allocation9 + $0x3d8] sm:$0xf]  ;;  %v5830_v22 = vor.u32 %v6149_v13, %v5827_v56  ;;  %v6053_v13 = vld [vmem:[#allocation9 + $0x1c] sm:$0xf] }
 0xd07   : > { %v6177_v25 = vld [vmem:[#allocation9 + $0x3f4] sm:$0xf0]  ;;  %v5443_v56 = vld [vmem:[#allocation9 + $0x38] sm:$0xf0] }
 0xd08   : > { %4666 = vmatpush.bf16.msra.mxu3 %v5850_v34  ;;  %4692 = vmatpush.bf16.msrb.mxu1 %v5854_v18  ;;  %v6064_v34 = vld [vmem:[#allocation9 + $0x6c] sm:$0xf0]  ;;  %v6060_v18 = vld [vmem:[#allocation9 + $0x54] sm:$0xf]  ;;  %v5922_v40 = vor.u32 %v6177_v25, %v5921_v52  ;;  %v5569_v52 = vld [vmem:[#allocation9 + $0x118] sm:$0xf] }
 0xd09   : > { %v5466_v21 = vor.u32 %v6064_v34, %v5465_v33  ;;  %v5470_v42 = vor.u32 %v6060_v18, %v5467_v24  ;;  %v6089_v25 = vld [vmem:[#allocation9 + $0x134] sm:$0xf0]  ;;  %v6133_v18 = vld [vmem:[#allocation9 + $0x29c] sm:$0xf] }
 0xd0a   : > { %4652 = vmatpush.bf16.msrb.mxu2 %v5626_v41  ;;  %4678 = vmatpush.bf16.msrb.mxu0 %v5630_v47  ;;  %v3762_v46 = vpop.f32.mrf.mxu3  ;;  %v5926_v41 = vor.u32 %v6173_v43, %v5923_v23  ;;  %v5889_v47 = vld [vmem:[#allocation9 + $0x398] sm:$0xf]  ;;  %v5798_v23 = vor.u32 %v6141_v28, %v5795_v32  ;;  %v5763_v24 = vld [vmem:[#allocation9 + $0x2b8] sm:$0xf0] }
 0xd0b   : > { %v6113_v46 = vld [vmem:[#allocation9 + $0x1f4] sm:$0xf0]  ;;  %v5890_v54 = vor.u32 %v6169_v59, %v5889_v47  ;;  %v6077_v47 = vld [vmem:[#allocation9 + $0xdc] sm:$0xf] }
 0xd0c   : > { %4667 = vmatpush.bf16.msra.mxu3 %v5818_v51  ;;  %4693 = vmatpush.bf16.msrb.mxu1 %v5822_v38  ;;  %v5891_v51 = vld [vmem:[#allocation9 + $0x3b8] sm:$0xf0]  ;;  %v5433_v38 = vld [vmem:[#allocation9 + $0x10] sm:$0xf]  ;;  %v5666_v12 = vor.u32 %v6113_v46, %v5665_v3  ;;  %v5761_v33 = vld [vmem:[#allocation9 + $0x298] sm:$0xf] }
 0xd0d   : > { %v5894_v6 = vor.u32 %v6165_v50, %v5891_v51  ;;  %v5434_v39 = vor.u32 %v6056_v44, %v5433_v38  ;;  %v6137_v34 = vld [vmem:[#allocation9 + $0x2b4] sm:$0xf0]  ;;  %v5539_v59 = vld [vmem:[#allocation9 + $0xf8] sm:$0xf0] }
 0xd0e   : > { %4653 = vmatpush.bf16.msrb.mxu2 %v5594_v10  ;;  %4679 = vmatpush.bf16.msrb.mxu0 %v5598_v29  ;;  %v6109_v10 = vld [vmem:[#allocation9 + $0x1dc] sm:$0xf]  ;;  %v5762_v50 = vor.u32 %v6137_v34, %v5761_v33  ;;  %v6129_v51 = vld [vmem:[#allocation9 + $0x274] sm:$0xf0] }
 0xd0f   : > { %4620 = vmatmul.bf16.vlgmr.msrb.gmra.mxu3 %v7815_v17  ;;  %4646 = vmatmul.bf16.vlgmr.msra.gmra.mxu1 %v7815_v17  ;;  %v5667_v29 = vld [vmem:[#allocation9 + $0x1f8] sm:$0xf0]  ;;  %v5505_v3 = vld [vmem:[#allocation9 + $0x98] sm:$0xf] }
 0xd10   : > { %4668 = vmatpush.bf16.msra.mxu3 %v5786_v14  ;;  %4694 = vmatpush.bf16.msrb.mxu1 %v5790_v1  ;;  %v5438_v14 = vor.u32 %v6052_v2, %v5435_v19  ;;  %v6161_v1 = vld [vmem:[#allocation9 + $0x374] sm:$0xf0]  ;;  %v5670_v11 = vor.u32 %v6109_v10, %v5667_v29  ;;  %v6125_v38 = vld [vmem:[#allocation9 + $0x25c] sm:$0xf]  ;;  %v5542_v19 = vor.u32 %v6077_v47, %v5539_v59 }
 0xd11   : > { %v5858_v35 = vor.u32 %v6161_v1, %v5857_v53  ;;  %v5731_v44 = vld [vmem:[#allocation9 + $0x278] sm:$0xf0]  ;;  %v6073_v46 = vld [vmem:[#allocation9 + $0xb4] sm:$0xf0] }
 0xd12   : > { %4654 = vmatpush.bf16.msrb.mxu2 %v5562_v57  ;;  %4680 = vmatpush.bf16.msrb.mxu0 %v5566_v0  ;;  %v5633_v57 = vld [vmem:[#allocation9 + $0x198] sm:$0xf]  ;;  %v6069_v10 = vld [vmem:[#allocation9 + $0x9c] sm:$0xf]  ;;  %v5506_v8 = vor.u32 %v6073_v46, %v5505_v3 }
 0xd13   : > { %v6105_v0 = vld [vmem:[#allocation9 + $0x1b4] sm:$0xf0]  ;;  %v5507_v29 = vld [vmem:[#allocation9 + $0xb8] sm:$0xf0] }
 0xd14   : > { %4669 = vmatpush.bf16.msra.mxu3 %v5754_v60  ;;  %4695 = vmatpush.bf16.msrb.mxu1 %v5758_v61  ;;  %v5825_v60 = vld [vmem:[#allocation9 + $0x318] sm:$0xf]  ;;  %v5634_v4 = vor.u32 %v6105_v0, %v5633_v57  ;;  %v5699_v1 = vld [vmem:[#allocation9 + $0x238] sm:$0xf0]  ;;  %v5510_v62 = vor.u32 %v6069_v10, %v5507_v29 }
 0xd15   : > { %4607 = vmatmul.bf16.vlgmr.msra.gmra.mxu2 %v7819_v27  ;;  %4633 = vmatmul.bf16.vlgmr.msra.gmra.mxu0 %v7819_v27  ;;  %v6153_v61 = vld [vmem:[#allocation9 + $0x334] sm:$0xf0]  ;;  %v6061_v57 = vld [vmem:[#allocation9 + $0x5c] sm:$0xf] }
 0xd16   : > { %4655 = vmatpush.bf16.msrb.mxu2 %v5530_v16  ;;  %4681 = vmatpush.bf16.msrb.mxu0 %v5534_v15  ;;  %v5601_v16 = vld [vmem:[#allocation9 + $0x158] sm:$0xf]  ;;  %v5826_v63 = vor.u32 %v6153_v61, %v5825_v60  ;;  %v5475_v0 = vld [vmem:[#allocation9 + $0x78] sm:$0xf0] }
 0xd17   : > { %v6097_v15 = vld [vmem:[#allocation9 + $0x174] sm:$0xf0] }
 0xd18   : > { %4670 = vmatpush.bf16.msra.mxu3 %v5722_v31  ;;  %4696 = vmatpush.bf16.msrb.mxu1 %v5726_v20  ;;  %v5793_v31 = vld [vmem:[#allocation9 + $0x2d8] sm:$0xf]  ;;  %v5602_v55 = vor.u32 %v6097_v15, %v5601_v16 }
 0xd19   : > { %v6145_v20 = vld [vmem:[#allocation9 + $0x2f4] sm:$0xf0] }
 0xd1a   : > { %4656 = vmatpush.bf16.msrb.mxu2 %v5498_v5  ;;  %4682 = vmatpush.bf16.msrb.mxu0 %v5502_v45  ;;  %v6085_v5 = vld [vmem:[#allocation9 + $0x11c] sm:$0xf]  ;;  %v5794_v43 = vor.u32 %v6145_v20, %v5793_v31  ;;  %v5697_v53 = vld [vmem:[#allocation9 + $0x218] sm:$0xf] }
 0xd1b   : > { %v5571_v45 = vld [vmem:[#allocation9 + $0x138] sm:$0xf0]  ;;  %v5441_v60 = vld [vmem:[#allocation9 + $0x18] sm:$0xf] }
 0xd1c   : > { %4671 = vmatpush.bf16.msra.mxu3 %v5690_v36  ;;  %4697 = vmatpush.bf16.msrb.mxu1 %v5694_v9  ;;  %v5570_v36 = vor.u32 %v6089_v25, %v5569_v52  ;;  %v5574_v9 = vor.u32 %v6085_v5, %v5571_v45  ;;  %v6057_v61 = vld [vmem:[#allocation9 + $0x34] sm:$0xf0] }
 0xd1e   : > { %4657 = vmatpush.bf16.msrb.mxu2 %v5466_v21  ;;  %4683 = vmatpush.bf16.msrb.mxu0 %v5470_v42  ;;  %v5766_v21 = vor.u32 %v6133_v18, %v5763_v24  ;;  %v5729_v42 = vld [vmem:[#allocation9 + $0x258] sm:$0xf] }
 0xd1f   : > { %4672 = vmatmul.bf16.vlgmr.msra.gmra.mxu3 %v7815_v17  ;;  %4698 = vmatmul.bf16.vlgmr.msrb.gmra.mxu1 %v7815_v17 }
 0xd20   : > { %4716 = vmatpush.bf16.msrb.mxu3 %v5922_v40  ;;  %4742 = vmatpush.bf16.msra.mxu1 %v5926_v41  ;;  %v5537_v40 = vld [vmem:[#allocation9 + $0xd8] sm:$0xf] }
 0xd21   : > { %v6081_v41 = vld [vmem:[#allocation9 + $0xf4] sm:$0xf0] }
 0xd22   : > { %4658 = vmatpush.bf16.msrb.mxu2 %v5434_v39  ;;  %4684 = vmatpush.bf16.msrb.mxu0 %v5438_v14  ;;  %v5538_v2 = vor.u32 %v6081_v41, %v5537_v40  ;;  %v6121_v39 = vld [vmem:[#allocation9 + $0x234] sm:$0xf0]  ;;  %v6117_v14 = vld [vmem:[#allocation9 + $0x21c] sm:$0xf] }
 0xd23   : > { %v5698_v37 = vor.u32 %v6121_v39, %v5697_v53  ;;  %v5702_v58 = vor.u32 %v6117_v14, %v5699_v1 }
 0xd24   : > { %4717 = vmatpush.bf16.msrb.mxu3 %v5890_v54  ;;  %4743 = vmatpush.bf16.msra.mxu1 %v5894_v6  ;;  %v5730_v54 = vor.u32 %v6129_v51, %v5729_v42  ;;  %v5734_v6 = vor.u32 %v6125_v38, %v5731_v44 }
 0xd25   : > { %4659 = vmatmul.bf16.vlgmr.msrb.gmra.mxu2 %v7819_v27  ;;  %4685 = vmatmul.bf16.vlgmr.msrb.gmra.mxu0 %v7819_v27 }
 0xd26   : > { %4703 = vmatpush.bf16.msra.mxu2 %v5666_v12  ;;  %4729 = vmatpush.bf16.msra.mxu0 %v5670_v11  ;;  %v5473_v12 = vld [vmem:[#allocation9 + $0x58] sm:$0xf] }
 0xd27   : > { %v6065_v11 = vld [vmem:[#allocation9 + $0x74] sm:$0xf0] }
 0xd28   : > { %4718 = vmatpush.bf16.msrb.mxu3 %v5858_v35  ;;  %4744 = vmatpush.bf16.msra.mxu1 %v5862_v7  ;;  %v5474_v35 = vor.u32 %v6065_v11, %v5473_v12  ;;  %v5478_v7 = vor.u32 %v6061_v57, %v5475_v0 }
 0xd2a   : > { %4704 = vmatpush.bf16.msra.mxu2 %v5634_v4  ;;  %4730 = vmatpush.bf16.msra.mxu0 %v5638_v48  ;;  %v5442_v4 = vor.u32 %v6057_v61, %v5441_v60  ;;  %v5446_v48 = vor.u32 %v6053_v13, %v5443_v56 }
 0xd2c   : > { %4719 = vmatpush.bf16.msrb.mxu3 %v5826_v63  ;;  %4745 = vmatpush.bf16.msra.mxu1 %v5830_v22 }
 0xd2e   : > { %4705 = vmatpush.bf16.msra.mxu2 %v5602_v55  ;;  %4731 = vmatpush.bf16.msra.mxu0 %v5606_v49 }
 0xd30   : > { %4720 = vmatpush.bf16.msrb.mxu3 %v5794_v43  ;;  %4746 = vmatpush.bf16.msra.mxu1 %v5798_v23 }
 0xd32   : > { %4706 = vmatpush.bf16.msra.mxu2 %v5570_v36  ;;  %4732 = vmatpush.bf16.msra.mxu0 %v5574_v9 }
 0xd34   : > { %4721 = vmatpush.bf16.msrb.mxu3 %v5762_v50  ;;  %4747 = vmatpush.bf16.msra.mxu1 %v5766_v21 }
 0xd36   : > { %4707 = vmatpush.bf16.msra.mxu2 %v5538_v2  ;;  %4733 = vmatpush.bf16.msra.mxu0 %v5542_v19 }
 0xd38   : > { %4722 = vmatpush.bf16.msrb.mxu3 %v5730_v54  ;;  %4748 = vmatpush.bf16.msra.mxu1 %v5734_v6 }
 0xd3a   : > { %4708 = vmatpush.bf16.msra.mxu2 %v5506_v8  ;;  %4734 = vmatpush.bf16.msra.mxu0 %v5510_v62 }
 0xd3c   : > { %4723 = vmatpush.bf16.msrb.mxu3 %v5698_v37  ;;  %4749 = vmatpush.bf16.msra.mxu1 %v5702_v58 }
 0xd3e   : > { %4709 = vmatpush.bf16.msra.mxu2 %v5474_v35  ;;  %4735 = vmatpush.bf16.msra.mxu0 %v5478_v7 }
 0xd3f   : > { %4724 = vmatmul.bf16.vlgmr.msrb.gmra.mxu3 %v7815_v17  ;;  %4750 = vmatmul.bf16.vlgmr.msra.gmra.mxu1 %v7815_v17 }
 0xd42   : > { %4710 = vmatpush.bf16.msra.mxu2 %v5442_v4  ;;  %4736 = vmatpush.bf16.msra.mxu0 %v5446_v48 }
 0xd45   : > { %4711 = vmatmul.bf16.vlgmr.msra.gmra.mxu2 %v7819_v27  ;;  %4737 = vmatmul.bf16.vlgmr.msra.gmra.mxu0 %v7819_v27 }
 0xd7c   : > { %v4595_v16 = vpop.f32.mrf.mxu1 }
 0xd82   : > { %v4569_v15 = vpop.f32.mrf.mxu3  ;;  %v4582_v26 = vpop.f32.mrf.mxu0 }
 0xd83   : > { %v4596_v63 = vadd.f32 %v4595_v16, %v4582_v26 }
 0xd84   : > { %v4597_v30 = vpop.f32.mrf.mxu1 }
 0xd85   : > { %v4763_v31 = vrot.slane %v4596_v63, 4 }
 0xd88   : > { %v4556_v22 = vpop.f32.mrf.mxu2 }
 0xd89   : > { %v4570_v20 = vadd.f32 %v4569_v15, %v4556_v22 }
 0xd8a   : > { %v4571_v28 = vpop.f32.mrf.mxu3  ;;  %v4584_v32 = vpop.f32.mrf.mxu0 }
 0xd8b   : > { %v4767_v17 = vsel %vm1892_vm8, %v4570_v20, %v4763_v31 }
 0xd8c   : > { %4775 = vst [vmem:[%s6699_s26] sm:$0xff] %v4767_v17  ;;  %v4647_v55 = vpop.f32.mrf.mxu1 }
 0xd90   : > { %v4558_v49 = vpop.f32.mrf.mxu2 }
 0xd92   : > { %v4621_v52 = vpop.f32.mrf.mxu3  ;;  %v4634_v25 = vpop.f32.mrf.mxu0 }
 0xd93   : > { %v4648_v27 = vadd.f32 %v4647_v55, %v4634_v25 }
 0xd94   : > { %v4649_v5 = vpop.f32.mrf.mxu1 }
 0xd95   : > { %v4764_v43 = vrot.slane %v4648_v27, 4 }
 0xd98   : > { %v4608_v45 = vpop.f32.mrf.mxu2 }
 0xd99   : > { %v4622_v23 = vadd.f32 %v4621_v52, %v4608_v45 }
 0xd9a   : > { %v4623_v33 = vpop.f32.mrf.mxu3  ;;  %v4636_v34 = vpop.f32.mrf.mxu0 }
 0xd9b   : > { %v4768_v18 = vsel %vm1892_vm8, %v4622_v23, %v4764_v43 }
 0xd9c   : > { %4776 = vst [vmem:[%s6699_s26 + $0x8] sm:$0xff] %v4768_v18  ;;  %v4699_v24 = vpop.f32.mrf.mxu1 }
 0xda0   : > { %v4610_v36 = vpop.f32.mrf.mxu2 }
 0xda2   : > { %v4673_v9 = vpop.f32.mrf.mxu3  ;;  %v4686_v40 = vpop.f32.mrf.mxu0 }
 0xda3   : > { %v4700_v47 = vadd.f32 %v4699_v24, %v4686_v40 }
 0xda4   : > { %v4701_v41 = vpop.f32.mrf.mxu1 }
 0xda5   : > { %v4765_v50 = vrot.slane %v4700_v47, 4 }
 0xda8   : > { %v4660_v59 = vpop.f32.mrf.mxu2 }
 0xda9   : > { %v4674_v21 = vadd.f32 %v4673_v9, %v4660_v59 }
 0xdaa   : > { %v4675_v42 = vpop.f32.mrf.mxu3  ;;  %v4688_v51 = vpop.f32.mrf.mxu0 }
 0xdab   : > { %v4769_v38 = vsel %vm1892_vm8, %v4674_v21, %v4765_v50 }
 0xdac   : > { %4777 = vst [vmem:[%s6699_s26 + $0x10] sm:$0xff] %v4769_v38 }
 0xdb0   : > { %v4662_v44 = vpop.f32.mrf.mxu2 }
 0xdbc   : > { %v4751_v2 = vpop.f32.mrf.mxu1 }
 0xdc2   : > { %v4725_v19 = vpop.f32.mrf.mxu3  ;;  %v4738_v3 = vpop.f32.mrf.mxu0 }
 0xdc3   : > { %v4752_v10 = vadd.f32 %v4751_v2, %v4738_v3 }
 0xdc4   : > { %v4753_v46 = vpop.f32.mrf.mxu1 }
 0xdc5   : > { %v4766_v54 = vrot.slane %v4752_v10, 4 }
 0xdc8   : > { %v4712_v29 = vpop.f32.mrf.mxu2 }
 0xdc9   : > { %v4726_v6 = vadd.f32 %v4725_v19, %v4712_v29 }
 0xdca   : > { %v4727_v53 = vpop.f32.mrf.mxu3  ;;  %v4740_v39 = vpop.f32.mrf.mxu0 }
 0xdcb   : > { %v4770_v14 = vsel %vm1892_vm8, %v4726_v6, %v4766_v54 }
 0xdcc   : > { %4778 = vst [vmem:[%s6699_s26 + $0x18] sm:$0xff] %v4770_v14 }
 0xdcd   : > { %6427 = shalt.err (!%p6424_p9)
}
 0xdce   : > { %6191 = dma.vmem_to_hbm [thread:$0]  (%p6638_p5), %s4794_s3, 512, %s4796_s25, %s4780_s5  }
 0xdd0   : > { %v4714_v1 = vpop.f32.mrf.mxu2 }
 0xdd1 PF: > { %s7979_s26 = sld [smem:[#allocation18_spill]] }
 0xdd2   : > { %s7980_s0 = sld [smem:[#allocation16_spill]] }
 0xdd7   : > { %p6213_p10 = scmp.ge.s32.totalorder %s7979_s26, 2 }
 0xdd8   : > { %s4807_s29 = sand.u32 1, %s7980_s0  }
 0xdd9   : > { %p6204_p11 = pnand %p6213_p10, %p6642_p6  ;;  %s4808_s22 = scalar_lea.sflag [#allocation6], %s4807_s29 }
 0xddb   : > { %p6205_p12 = pneg %p6204_p11 }
 0xddd   : > { %6457 = dma.done.wait (%p6205_p12), %s4808_s22, 512  }
 0xdde   : > { %6459 = vsyncadd (%p6205_p12), %s4808_s22, 4294966784  ;;  %s7982_s21 = sld [smem:[#allocation19_spill]]  ;;  %s7985_s0 = smov %s6466_s30 }
 0xddf   : > { %s7983_s1 = sld [smem:[#allocation17_spill]] }
 0xde0   : > { %s7984_s20 = sld [smem:[#allocation20_spill]] }
 0xde4   : > { %p32_p13 = scmp.ge.s32.totalorder %s7982_s21, 4  }
 0xde5   : > { %s7986_s30 = smov %s7983_s1 }
 0xde6   :  { %34 = sbr.rel (!%p32_p13) target bundleno = 17 (0x11), region = 154 }
 0xdeb   :  { %4814 = vsyncpa [#allocation5], 1 }
 0xdec   :  { %4816 = vsyncpa [#allocation5 + $0x1], 1 }
 0xded   :  { %4817 = vsyncpa [#allocation10], 1 }
 0xdee   :  { %4818 = vsyncpa [#allocation6], 1 }
 0xdef   :  { %4820 = vsyncpa [#allocation6 + $0x1], 1 }
 0xdf0   :  { %4821 = vsyncpa [#allocation7], 1 }
 0xdf1   :  { %4823 = vsyncpa [#allocation7 + $0x1], 1 }

</bundles_post_ra>
